<compile_context>
chip_gen: v6e
topology: v6e:2x2x1
jax: 0.10.0
libtpu: 0.0.40
codegen_flags: <defaults>
</compile_context>

<pallas_src>
import jax
import jax.numpy as jnp
from jax import lax
from jax.experimental import pallas as pl
from jax.experimental.pallas import tpu as pltpu

_BN_EPS = 1e-5


# ---------------------------------------------------------------------------
# Fused Pallas kernel: (M, K) @ (K, C) + bias -> ReLU
# ---------------------------------------------------------------------------
def _matmul_bias_relu_kernel(p_ref, w_ref, b_ref, o_ref):
    # p_ref: (TM, Kp) bf16   im2col-patch / activation tile
    # w_ref: (Kp, Cp) bf16   conv weights with BN scale folded in
    # b_ref: (1,  Cp) f32    folded BN bias
    # o_ref: (TM, Cp) f32
    acc = jnp.dot(p_ref[...], w_ref[...], preferred_element_type=jnp.float32)
    o_ref[...] = jnp.maximum(acc + b_ref[...], 0.0).astype(o_ref.dtype)


def _round_up(x, m):
    return (x + m - 1) // m * m


def _choose_tile_m(m):
    # Largest 128-multiple tile that divides m and still gives >= 2 grid steps
    # (so v7x megacore can shard the M axis across its two TensorCores).
    for t in (2048, 1024, 512, 256, 128):
        if m % t == 0 and m // t >= 2:
            return t
    for t in (2048, 1024, 512, 256, 128):
        if m % t == 0:
            return t
    return 256


def _fused_matmul_bias_relu(p_mat, w_mat, bias):
    """p_mat: (M, K) f32, w_mat: (K, C) f32 (BN scale folded), bias: (C,) f32."""
    m, k = p_mat.shape
    _, c = w_mat.shape

    # Pad K and C_out to multiples of 128 (lane-dense loads/stores, full MXU feed).
    k_pad = _round_up(k, 128)
    c_pad = _round_up(c, 128)
    if k_pad != k:
        p_mat = jnp.pad(p_mat, ((0, 0), (0, k_pad - k)))
        w_mat = jnp.pad(w_mat, ((0, k_pad - k), (0, 0)))
    if c_pad != c:
        w_mat = jnp.pad(w_mat, ((0, 0), (0, c_pad - c)))
        bias = jnp.pad(bias, (0, c_pad - c))

    # bf16 MXU operands; accumulation and BN/ReLU stay f32.
    p_bf = p_mat.astype(jnp.bfloat16)
    w_bf = w_mat.astype(jnp.bfloat16)
    b_row = bias.reshape(1, c_pad).astype(jnp.float32)

    tile_m = _choose_tile_m(m)
    m_pad = _round_up(m, tile_m)
    if m_pad != m:
        p_bf = jnp.pad(p_bf, ((0, m_pad - m), (0, 0)))
    grid = (m_pad // tile_m,)

    out = pl.pallas_call(
        _matmul_bias_relu_kernel,
        out_shape=jax.ShapeDtypeStruct((m_pad, c_pad), jnp.float32),
        grid_spec=pltpu.PrefetchScalarGridSpec(
            num_scalar_prefetch=0,
            grid=grid,
            in_specs=[
                pl.BlockSpec((tile_m, k_pad), lambda i: (i, 0)),
                pl.BlockSpec((k_pad, c_pad), lambda i: (0, 0)),
                pl.BlockSpec((1, c_pad), lambda i: (0, 0)),
            ],
            out_specs=pl.BlockSpec((tile_m, c_pad), lambda i: (i, 0)),
        ),
        compiler_params=pltpu.CompilerParams(
            dimension_semantics=("parallel",),
            vmem_limit_bytes=64 * 1024 * 1024,
        ),
    )(p_bf, w_bf, b_row)

    return out[:m, :c]


# ---------------------------------------------------------------------------
# BasicConv2d = Conv(bias=False) -> BatchNorm2d(eval) -> ReLU, as kernel calls
# ---------------------------------------------------------------------------
# TODO(synk): training-mode BatchNorm (batch statistics + running-stat updates)
# is not implemented; this reproduces eval-mode BN semantics (folded into conv).
def _fold_bn(p):
    scale = p["gamma"] * lax.rsqrt(p["var"] + _BN_EPS)
    bias = p["beta"] - p["mean"] * scale
    return scale, bias


def conv_bn_relu_1x1(x_mat, p):
    """1x1 conv: no im2col needed -- x_mat is just (M, C_in)."""
    c_out, c_in = p["w"].shape[:2]
    scale, bias = _fold_bn(p)
    w_mat = p["w"].reshape(c_out, c_in).T * scale[None, :]       # (C_in, C_out)
    return _fused_matmul_bias_relu(x_mat, w_mat, bias)


def conv_bn_relu_kxk(x_nhwc, p):
    """KxK 'same' conv via channels-last im2col: patch order (KH, KW, C_in)."""
    n, h, w, c_in = x_nhwc.shape
    c_out, _, kh, kw = p["w"].shape
    pad = (kh - 1) // 2
    xp = jnp.pad(x_nhwc, ((0, 0), (pad, pad), (pad, pad), (0, 0)))
    cols = [xp[:, i:i + h, j:j + w, :] for i in range(kh) for j in range(kw)]
    p_mat = jnp.concatenate(cols, axis=-1).reshape(n * h * w, kh * kw * c_in)
    scale, bias = _fold_bn(p)
    w_mat = (jnp.transpose(p["w"], (2, 3, 1, 0))                 # (KH, KW, C_in, C_out)
             .reshape(kh * kw * c_in, c_out) * scale[None, :])
    return _fused_matmul_bias_relu(p_mat, w_mat, bias)


def _avg_pool_3x3_same(x_nhwc):
    """AvgPool2d(kernel=3, stride=1, padding=1), count_include_pad=True."""
    n, h, w, c = x_nhwc.shape
    xp = jnp.pad(x_nhwc, ((0, 0), (1, 1), (1, 1), (0, 0)))
    s = sum(xp[:, i:i + h, j:j + w, :] for i in range(3) for j in range(3))
    return s / 9.0


# ---------------------------------------------------------------------------
# InceptionA forward
# ---------------------------------------------------------------------------
def inception_a(x, params):
    """x: (N, C_in, H, W) float32 -> (N, 64+64+96+pool_features, H, W)."""
    n, c_in, h, w = x.shape
    x_nhwc = jnp.transpose(x, (0, 2, 3, 1))          # single NCHW->NHWC transpose
    m = n * h * w
    x_mat = x_nhwc.reshape(m, c_in)

    # branch1: 1x1 -> 64
    b1 = conv_bn_relu_1x1(x_mat, params["b1"])

    # branch2: 1x1 -> 48, then 5x5 (pad 2) -> 64
    b2 = conv_bn_relu_1x1(x_mat, params["b2a"])
    b2 = conv_bn_relu_kxk(b2.reshape(n, h, w, -1), params["b2b"])

    # branch3: 1x1 -> 64, 3x3 -> 96, 3x3 -> 96
    b3 = conv_bn_relu_1x1(x_mat, params["b3a"])
    b3 = conv_bn_relu_kxk(b3.reshape(n, h, w, -1), params["b3b"])
    b3 = conv_bn_relu_kxk(b3.reshape(n, h, w, -1), params["b3c"])

    # branch4: avgpool 3x3/s1/p1, then 1x1 -> pool_features
    pooled = _avg_pool_3x3_same(x_nhwc).reshape(m, c_in)
    b4 = conv_bn_relu_1x1(pooled, params["b4"])

    # concat on the channel (lane) dim, then back to NCHW at the boundary
    out = jnp.concatenate([b1, b2, b3, b4], axis=-1)
    return out.reshape(n, h, w, -1).transpose(0, 3, 1, 2)


# ---------------------------------------------------------------------------
# Pure-JAX reference (PyTorch semantics)
# ---------------------------------------------------------------------------
def _ref_basic_conv(x, p, padding):
    y = lax.conv_general_dilated(
        x, p["w"], window_strides=(1, 1),
        padding=[(padding, padding), (padding, padding)],
        dimension_numbers=("NCHW", "OIHW", "NCHW"))
    scale = p["gamma"] / jnp.sqrt(p["var"] + _BN_EPS)
    bias = p["beta"] - p["mean"] * scale
    y = y * scale[None, :, None, None] + bias[None, :, None, None]
    return jnp.maximum(y, 0.0)


def _ref_inception_a(x, params):
    b1 = _ref_basic_conv(x, params["b1"], 0)
    b2 = _ref_basic_conv(_ref_basic_conv(x, params["b2a"], 0), params["b2b"], 2)
    b3 = _ref_basic_conv(x, params["b3a"], 0)
    b3 = _ref_basic_conv(b3, params["b3b"], 1)
    b3 = _ref_basic_conv(b3, params["b3c"], 1)
    n, c, h, w = x.shape
    xp = jnp.pad(x, ((0, 0), (0, 0), (1, 1), (1, 1)))
    pooled = sum(xp[:, :, i:i + h, j:j + w] for i in range(3) for j in range(3)) / 9.0
    b4 = _ref_basic_conv(pooled, params["b4"], 0)
    return jnp.concatenate([b1, b2, b3, b4], axis=1)


# ---------------------------------------------------------------------------
# Test
# ---------------------------------------------------------------------------
def _init_basic_conv2d(key, c_in, c_out, ksize):
    kw_, kg, kb, km, kv = jax.random.split(key, 5)
    fan_in = c_in * ksize * ksize
    return dict(
        w=jax.random.normal(kw_, (c_out, c_in, ksize, ksize), jnp.float32) * (fan_in ** -0.5),
        gamma=1.0 + 0.1 * jax.random.normal(kg, (c_out,), jnp.float32),
        beta=0.1 * jax.random.normal(kb, (c_out,), jnp.float32),
        mean=0.1 * jax.random.normal(km, (c_out,), jnp.float32),
        var=jnp.abs(1.0 + 0.1 * jax.random.normal(kv, (c_out,), jnp.float32)),
    )


if __name__ == "__main__":
    key = jax.random.PRNGKey(0)
    N, C_IN, H, W = 2, 4, 16, 16
    POOL_FEATURES = 32

    kx, k1, k2a, k2b, k3a, k3b, k3c, k4 = jax.random.split(key, 8)
    x = jax.random.normal(kx, (N, C_IN, H, W), dtype=jnp.float32)

    params = {
        "b1":  _init_basic_conv2d(k1,  C_IN, 64, 1),
        "b2a": _init_basic_conv2d(k2a, C_IN, 48, 1),
        "b2b": _init_basic_conv2d(k2b, 48,   64, 5),
        "b3a": _init_basic_conv2d(k3a, C_IN, 64, 1),
        "b3b": _init_basic_conv2d(k3b, 64,   96, 3),
        "b3c": _init_basic_conv2d(k3c, 96,   96, 3),
        "b4":  _init_basic_conv2d(k4,  C_IN, POOL_FEATURES, 1),
    }

    out = jax.jit(inception_a)(x, params)
    out = jax.block_until_ready(out)

    ref = _ref_inception_a(x, params)
    c_total = 64 + 64 + 96 + POOL_FEATURES
    assert out.shape == (N, c_total, H, W), out.shape
    # bf16 MXU operands -> tolerance loosened accordingly (accumulation is f32).
    max_err = float(jnp.max(jnp.abs(out - ref)))
    assert jnp.allclose(out, ref, atol=3e-2, rtol=3e-2), max_err

    print("KERNEL_OK")
</pallas_src>

<mosaic_0001>
module attributes {stable_mosaic.version = 11 : i64} {
  func.func @_matmul_bias_relu_kernel(%arg0: i32, %arg1: memref<256x128xbf16, #tpu.memory_space<vmem>>, %arg2: memref<128x128xbf16, #tpu.memory_space<vmem>>, %arg3: memref<1x128xf32, #tpu.memory_space<vmem>>, %arg4: memref<256x128xf32, #tpu.memory_space<vmem>>) attributes {dimension_semantics = [#tpu.dimension_semantics<parallel>], iteration_bounds = array<i64: 2>, scalar_prefetch = 0 : i64, scratch_operands = 0 : i64, tpu.core_type = #tpu.core_type<tc>, window_params = [{transform_indices = @transform_0, window_bounds = array<i64: 256, 128>}, {pipeline_mode = #tpu.pipeline_mode<synchronous>, transform_indices = @transform_1, window_bounds = array<i64: 128, 128>}, {pipeline_mode = #tpu.pipeline_mode<synchronous>, transform_indices = @transform_2, window_bounds = array<i64: 1, 128>}, {transform_indices = @transform_3, window_bounds = array<i64: 256, 128>}]} {
    %c0 = arith.constant 0 : index
    %c0_0 = arith.constant 0 : index
    %0 = vector.load %arg1[%c0, %c0_0] : memref<256x128xbf16, #tpu.memory_space<vmem>>, vector<256x128xbf16>
    %c0_1 = arith.constant 0 : index
    %c0_2 = arith.constant 0 : index
    %1 = vector.load %arg2[%c0_1, %c0_2] : memref<128x128xbf16, #tpu.memory_space<vmem>>, vector<128x128xbf16>
    %cst = arith.constant dense<0.000000e+00> : vector<256x128xf32>
    %2 = tpu.matmul %0, %1, %cst {dimension_numbers = #tpu.dot_dimension_numbers<[1], [0], [0], [1], [0, 0, 1, 1], [], []>} : vector<256x128xbf16>, vector<128x128xbf16>, vector<256x128xf32> -> vector<256x128xf32>
    %c0_3 = arith.constant 0 : index
    %c0_4 = arith.constant 0 : index
    %3 = vector.load %arg3[%c0_3, %c0_4] : memref<1x128xf32, #tpu.memory_space<vmem>>, vector<1x128xf32>
    %4 = vector.broadcast %3 : vector<1x128xf32> to vector<256x128xf32>
    %5 = arith.addf %2, %4 : vector<256x128xf32>
    %cst_5 = arith.constant 0.000000e+00 : f32
    %6 = vector.broadcast %cst_5 : f32 to vector<256x128xf32>
    %7 = arith.maximumf %5, %6 : vector<256x128xf32>
    %c0_6 = arith.constant 0 : index
    %c0_7 = arith.constant 0 : index
    %8 = vector.load %arg4[%c0_6, %c0_7] : memref<256x128xf32, #tpu.memory_space<vmem>>, vector<256x128xf32>
    tpu.vector_store %arg4[%c0_6, %c0_7], %7 {strides = array<i32>} : memref<256x128xf32, #tpu.memory_space<vmem>>, vector<256x128xf32>,
    return
  }
  func.func @transform_0(%arg0: i32) -> (i32, i32) {
    %c0_i32 = arith.constant 0 : i32
    %c0_i32_0 = arith.constant 0 : i32
    return %arg0, %c0_i32 : i32, i32
  }
  func.func @transform_1(%arg0: i32) -> (i32, i32) {
    %c0_i32 = arith.constant 0 : i32
    %c0_i32_0 = arith.constant 0 : i32
    %c0_i32_1 = arith.constant 0 : i32
    return %c0_i32, %c0_i32_0 : i32, i32
  }
  func.func @transform_2(%arg0: i32) -> (i32, i32) {
    %c0_i32 = arith.constant 0 : i32
    %c0_i32_0 = arith.constant 0 : i32
    %c0_i32_1 = arith.constant 0 : i32
    return %c0_i32, %c0_i32_0 : i32, i32
  }
  func.func @transform_3(%arg0: i32) -> (i32, i32) {
    %c0_i32 = arith.constant 0 : i32
    %c0_i32_0 = arith.constant 0 : i32
    return %arg0, %c0_i32 : i32, i32
  }
}

module attributes {stable_mosaic.version = 11 : i64} {
  func.func @_matmul_bias_relu_kernel(%arg0: i32, %arg1: memref<256x1280xbf16, #tpu.memory_space<vmem>>, %arg2: memref<1280x128xbf16, #tpu.memory_space<vmem>>, %arg3: memref<1x128xf32, #tpu.memory_space<vmem>>, %arg4: memref<256x128xf32, #tpu.memory_space<vmem>>) attributes {dimension_semantics = [#tpu.dimension_semantics<parallel>], iteration_bounds = array<i64: 2>, scalar_prefetch = 0 : i64, scratch_operands = 0 : i64, tpu.core_type = #tpu.core_type<tc>, window_params = [{transform_indices = @transform_0, window_bounds = array<i64: 256, 1280>}, {pipeline_mode = #tpu.pipeline_mode<synchronous>, transform_indices = @transform_1, window_bounds = array<i64: 1280, 128>}, {pipeline_mode = #tpu.pipeline_mode<synchronous>, transform_indices = @transform_2, window_bounds = array<i64: 1, 128>}, {transform_indices = @transform_3, window_bounds = array<i64: 256, 128>}]} {
    %c0 = arith.constant 0 : index
    %c0_0 = arith.constant 0 : index
    %0 = vector.load %arg1[%c0, %c0_0] : memref<256x1280xbf16, #tpu.memory_space<vmem>>, vector<256x1280xbf16>
    %c0_1 = arith.constant 0 : index
    %c0_2 = arith.constant 0 : index
    %1 = vector.load %arg2[%c0_1, %c0_2] : memref<1280x128xbf16, #tpu.memory_space<vmem>>, vector<1280x128xbf16>
    %cst = arith.constant dense<0.000000e+00> : vector<256x128xf32>
    %2 = tpu.matmul %0, %1, %cst {dimension_numbers = #tpu.dot_dimension_numbers<[1], [0], [0], [1], [0, 0, 1, 1], [], []>} : vector<256x1280xbf16>, vector<1280x128xbf16>, vector<256x128xf32> -> vector<256x128xf32>
    %c0_3 = arith.constant 0 : index
    %c0_4 = arith.constant 0 : index
    %3 = vector.load %arg3[%c0_3, %c0_4] : memref<1x128xf32, #tpu.memory_space<vmem>>, vector<1x128xf32>
    %4 = vector.broadcast %3 : vector<1x128xf32> to vector<256x128xf32>
    %5 = arith.addf %2, %4 : vector<256x128xf32>
    %cst_5 = arith.constant 0.000000e+00 : f32
    %6 = vector.broadcast %cst_5 : f32 to vector<256x128xf32>
    %7 = arith.maximumf %5, %6 : vector<256x128xf32>
    %c0_6 = arith.constant 0 : index
    %c0_7 = arith.constant 0 : index
    %8 = vector.load %arg4[%c0_6, %c0_7] : memref<256x128xf32, #tpu.memory_space<vmem>>, vector<256x128xf32>
    tpu.vector_store %arg4[%c0_6, %c0_7], %7 {strides = array<i32>} : memref<256x128xf32, #tpu.memory_space<vmem>>, vector<256x128xf32>,
    return
  }
  func.func @transform_0(%arg0: i32) -> (i32, i32) {
    %c0_i32 = arith.constant 0 : i32
    %c0_i32_0 = arith.constant 0 : i32
    return %arg0, %c0_i32 : i32, i32
  }
  func.func @transform_1(%arg0: i32) -> (i32, i32) {
    %c0_i32 = arith.constant 0 : i32
    %c0_i32_0 = arith.constant 0 : i32
    %c0_i32_1 = arith.constant 0 : i32
    return %c0_i32, %c0_i32_0 : i32, i32
  }
  func.func @transform_2(%arg0: i32) -> (i32, i32) {
    %c0_i32 = arith.constant 0 : i32
    %c0_i32_0 = arith.constant 0 : i32
    %c0_i32_1 = arith.constant 0 : i32
    return %c0_i32, %c0_i32_0 : i32, i32
  }
  func.func @transform_3(%arg0: i32) -> (i32, i32) {
    %c0_i32 = arith.constant 0 : i32
    %c0_i32_0 = arith.constant 0 : i32
    return %arg0, %c0_i32 : i32, i32
  }
}

module attributes {stable_mosaic.version = 11 : i64} {
  func.func @_matmul_bias_relu_kernel(%arg0: i32, %arg1: memref<256x640xbf16, #tpu.memory_space<vmem>>, %arg2: memref<640x128xbf16, #tpu.memory_space<vmem>>, %arg3: memref<1x128xf32, #tpu.memory_space<vmem>>, %arg4: memref<256x128xf32, #tpu.memory_space<vmem>>) attributes {dimension_semantics = [#tpu.dimension_semantics<parallel>], iteration_bounds = array<i64: 2>, scalar_prefetch = 0 : i64, scratch_operands = 0 : i64, tpu.core_type = #tpu.core_type<tc>, window_params = [{transform_indices = @transform_0, window_bounds = array<i64: 256, 640>}, {pipeline_mode = #tpu.pipeline_mode<synchronous>, transform_indices = @transform_1, window_bounds = array<i64: 640, 128>}, {pipeline_mode = #tpu.pipeline_mode<synchronous>, transform_indices = @transform_2, window_bounds = array<i64: 1, 128>}, {transform_indices = @transform_3, window_bounds = array<i64: 256, 128>}]} {
    %c0 = arith.constant 0 : index
    %c0_0 = arith.constant 0 : index
    %0 = vector.load %arg1[%c0, %c0_0] : memref<256x640xbf16, #tpu.memory_space<vmem>>, vector<256x640xbf16>
    %c0_1 = arith.constant 0 : index
    %c0_2 = arith.constant 0 : index
    %1 = vector.load %arg2[%c0_1, %c0_2] : memref<640x128xbf16, #tpu.memory_space<vmem>>, vector<640x128xbf16>
    %cst = arith.constant dense<0.000000e+00> : vector<256x128xf32>
    %2 = tpu.matmul %0, %1, %cst {dimension_numbers = #tpu.dot_dimension_numbers<[1], [0], [0], [1], [0, 0, 1, 1], [], []>} : vector<256x640xbf16>, vector<640x128xbf16>, vector<256x128xf32> -> vector<256x128xf32>
    %c0_3 = arith.constant 0 : index
    %c0_4 = arith.constant 0 : index
    %3 = vector.load %arg3[%c0_3, %c0_4] : memref<1x128xf32, #tpu.memory_space<vmem>>, vector<1x128xf32>
    %4 = vector.broadcast %3 : vector<1x128xf32> to vector<256x128xf32>
    %5 = arith.addf %2, %4 : vector<256x128xf32>
    %cst_5 = arith.constant 0.000000e+00 : f32
    %6 = vector.broadcast %cst_5 : f32 to vector<256x128xf32>
    %7 = arith.maximumf %5, %6 : vector<256x128xf32>
    %c0_6 = arith.constant 0 : index
    %c0_7 = arith.constant 0 : index
    %8 = vector.load %arg4[%c0_6, %c0_7] : memref<256x128xf32, #tpu.memory_space<vmem>>, vector<256x128xf32>
    tpu.vector_store %arg4[%c0_6, %c0_7], %7 {strides = array<i32>} : memref<256x128xf32, #tpu.memory_space<vmem>>, vector<256x128xf32>,
    return
  }
  func.func @transform_0(%arg0: i32) -> (i32, i32) {
    %c0_i32 = arith.constant 0 : i32
    %c0_i32_0 = arith.constant 0 : i32
    return %arg0, %c0_i32 : i32, i32
  }
  func.func @transform_1(%arg0: i32) -> (i32, i32) {
    %c0_i32 = arith.constant 0 : i32
    %c0_i32_0 = arith.constant 0 : i32
    %c0_i32_1 = arith.constant 0 : i32
    return %c0_i32, %c0_i32_0 : i32, i32
  }
  func.func @transform_2(%arg0: i32) -> (i32, i32) {
    %c0_i32 = arith.constant 0 : i32
    %c0_i32_0 = arith.constant 0 : i32
    %c0_i32_1 = arith.constant 0 : i32
    return %c0_i32, %c0_i32_0 : i32, i32
  }
  func.func @transform_3(%arg0: i32) -> (i32, i32) {
    %c0_i32 = arith.constant 0 : i32
    %c0_i32_0 = arith.constant 0 : i32
    return %arg0, %c0_i32 : i32, i32
  }
}

module attributes {stable_mosaic.version = 11 : i64} {
  func.func @_matmul_bias_relu_kernel(%arg0: i32, %arg1: memref<256x896xbf16, #tpu.memory_space<vmem>>, %arg2: memref<896x128xbf16, #tpu.memory_space<vmem>>, %arg3: memref<1x128xf32, #tpu.memory_space<vmem>>, %arg4: memref<256x128xf32, #tpu.memory_space<vmem>>) attributes {dimension_semantics = [#tpu.dimension_semantics<parallel>], iteration_bounds = array<i64: 2>, scalar_prefetch = 0 : i64, scratch_operands = 0 : i64, tpu.core_type = #tpu.core_type<tc>, window_params = [{transform_indices = @transform_0, window_bounds = array<i64: 256, 896>}, {pipeline_mode = #tpu.pipeline_mode<synchronous>, transform_indices = @transform_1, window_bounds = array<i64: 896, 128>}, {pipeline_mode = #tpu.pipeline_mode<synchronous>, transform_indices = @transform_2, window_bounds = array<i64: 1, 128>}, {transform_indices = @transform_3, window_bounds = array<i64: 256, 128>}]} {
    %c0 = arith.constant 0 : index
    %c0_0 = arith.constant 0 : index
    %0 = vector.load %arg1[%c0, %c0_0] : memref<256x896xbf16, #tpu.memory_space<vmem>>, vector<256x896xbf16>
    %c0_1 = arith.constant 0 : index
    %c0_2 = arith.constant 0 : index
    %1 = vector.load %arg2[%c0_1, %c0_2] : memref<896x128xbf16, #tpu.memory_space<vmem>>, vector<896x128xbf16>
    %cst = arith.constant dense<0.000000e+00> : vector<256x128xf32>
    %2 = tpu.matmul %0, %1, %cst {dimension_numbers = #tpu.dot_dimension_numbers<[1], [0], [0], [1], [0, 0, 1, 1], [], []>} : vector<256x896xbf16>, vector<896x128xbf16>, vector<256x128xf32> -> vector<256x128xf32>
    %c0_3 = arith.constant 0 : index
    %c0_4 = arith.constant 0 : index
    %3 = vector.load %arg3[%c0_3, %c0_4] : memref<1x128xf32, #tpu.memory_space<vmem>>, vector<1x128xf32>
    %4 = vector.broadcast %3 : vector<1x128xf32> to vector<256x128xf32>
    %5 = arith.addf %2, %4 : vector<256x128xf32>
    %cst_5 = arith.constant 0.000000e+00 : f32
    %6 = vector.broadcast %cst_5 : f32 to vector<256x128xf32>
    %7 = arith.maximumf %5, %6 : vector<256x128xf32>
    %c0_6 = arith.constant 0 : index
    %c0_7 = arith.constant 0 : index
    %8 = vector.load %arg4[%c0_6, %c0_7] : memref<256x128xf32, #tpu.memory_space<vmem>>, vector<256x128xf32>
    tpu.vector_store %arg4[%c0_6, %c0_7], %7 {strides = array<i32>} : memref<256x128xf32, #tpu.memory_space<vmem>>, vector<256x128xf32>,
    return
  }
  func.func @transform_0(%arg0: i32) -> (i32, i32) {
    %c0_i32 = arith.constant 0 : i32
    %c0_i32_0 = arith.constant 0 : i32
    return %arg0, %c0_i32 : i32, i32
  }
  func.func @transform_1(%arg0: i32) -> (i32, i32) {
    %c0_i32 = arith.constant 0 : i32
    %c0_i32_0 = arith.constant 0 : i32
    %c0_i32_1 = arith.constant 0 : i32
    return %c0_i32, %c0_i32_0 : i32, i32
  }
  func.func @transform_2(%arg0: i32) -> (i32, i32) {
    %c0_i32 = arith.constant 0 : i32
    %c0_i32_0 = arith.constant 0 : i32
    %c0_i32_1 = arith.constant 0 : i32
    return %c0_i32, %c0_i32_0 : i32, i32
  }
  func.func @transform_3(%arg0: i32) -> (i32, i32) {
    %c0_i32 = arith.constant 0 : i32
    %c0_i32_0 = arith.constant 0 : i32
    return %arg0, %c0_i32 : i32, i32
  }
}

</mosaic_0001>

<bundles_post_ra>
// kernel: inception_a.8
= control target key start
LH: loop header
LB: loop body
LE: loop exit
PB: predicated region body
PF: predicated region fallthrough
CT: control target
= control target key end

     0   :  { %s839_s12 = smov 0   ;;  %s973_s0 = inlined_call_operand.vmem [shape: bf16[512,128], index: 0, kind: input, shape index: {}]   ;;  %s974_s1 = inlined_call_operand.vmem [shape: bf16[128,128], index: 1, kind: input, shape index: {}]   ;;  %s975_s2 = inlined_call_operand.vmem [shape: f32[1,128], index: 2, kind: input, shape index: {}]   ;;  %s976_s3 = inlined_call_operand.vmem [shape: f32[512,128], index: 3, kind: output, shape index: {}]  }
   0x1 LB: > { %s655_s13 = sadd.s32 4294967295, %s817_s12   ;;  %p659_p0 = scmp.ge.s32.totalorder %s817_s12, 1  ;;  %s817_s12 = sphi %s839_s12, %s13_s12  }
   0x2   : > { %p138_p1 = scmp.lt.s32.totalorder %s817_s12, 3 }
   0x4   : > { %p139_p2 = pnand %p659_p0, %p138_p1 }
   0x5   : > { %s660_s16 = sshll.u32 (!%p139_p2), %s655_s13, 5 }
   0x6   : > { %142 = sbr.rel (%p139_p2) target bundleno = 272 (0x110), region = 32  ;;  %p163_p3 = scmp.lt.s32.totalorder (!%p139_p2), %s660_s16, 63 }
   0xb   : > { %v787_v0 = vld [vmem:[%s974_s1 + $0x38] sm:$0xff]   ;;  %v788_v1 = vld [vmem:[%s974_s1 + $0x30] sm:$0xff]   ;;  %s978_s16 = smov (!%p163_p3, %s660_s16), 63  ;;  %v789_v2 = vld [vmem:[%s974_s1 + $0x28] sm:$0xff]  }
   0xc   : > { %715 = vmatprep.subr.bf16.mxu0 %v787_v0  ;;  %763 = vmatprep.subr.bf16.mxu1 %v787_v0  ;;  %s661_s21 = sshll.u32 %s978_s16, 2  ;;  %v790_v3 = vld [vmem:[%s974_s1 + $0x20] sm:$0xff]   ;;  %v791_v6 = vld [vmem:[%s974_s1 + $0x18] sm:$0xff]   ;;  %v792_v7 = vld [vmem:[%s974_s1 + $0x10] sm:$0xff]   ;;  %s663_s10 = sshll.u32 %s978_s16, 3 }
   0xd   : > { %716 = vmatpush3.bf16.msra.mxu0 %v787_v0  ;;  %771 = vmatpush3.bf16.msra.mxu1 %v787_v0  ;;  %s862_s24 = scalar_lea.vmem %s973_s0, %s661_s21  ;;  %v793_v8 = vld [vmem:[%s974_s1 + $0x8] sm:$0xff]   ;;  %v794_v9 = vld [vmem:[%s974_s1] sm:$0xff]   ;;  %s906_s14 = scalar_lea.vmem %s976_s3, %s663_s10 }
   0xe   : > { %717 = vmatprep.subr.bf16.mxu0 %v788_v1  ;;  %764 = vmatprep.subr.bf16.mxu1 %v788_v1  ;;  %v795_v4 = vld [vmem:[%s862_s24] sm:$0xff]   ;;  %v797_v10 = vld [vmem:[%s862_s24 + $0x8] sm:$0xff]   ;;  %v799_v12 = vld [vmem:[%s862_s24 + $0x10] sm:$0xff]  }
   0xf   : > { %v796_v5 = vld [vmem:[%s862_s24 + $0x40] sm:$0xff]   ;;  %731 = vmatprep.mubr.bf16.mxu0 %v795_v4  ;;  %v798_v11 = vld [vmem:[%s862_s24 + $0x48] sm:$0xff]   ;;  %v800_v13 = vld [vmem:[%s862_s24 + $0x50] sm:$0xff]  }
  0x10   : > { %747 = vmatprep.mubr.bf16.mxu1 %v796_v5  ;;  %v801_v14 = vld [vmem:[%s862_s24 + $0x18] sm:$0xff]   ;;  %v803_v16 = vld [vmem:[%s862_s24 + $0x20] sm:$0xff]   ;;  %v805_v18 = vld [vmem:[%s862_s24 + $0x28] sm:$0xff]  }
  0x11   : > { %718 = vmatpush3.bf16.msra.mxu0 %v788_v1  ;;  %772 = vmatpush3.bf16.msra.mxu1 %v788_v1  ;;  %v802_v15 = vld [vmem:[%s862_s24 + $0x58] sm:$0xff]   ;;  %v804_v17 = vld [vmem:[%s862_s24 + $0x60] sm:$0xff]   ;;  %v806_v19 = vld [vmem:[%s862_s24 + $0x68] sm:$0xff]  }
  0x12   : > { %719 = vmatprep.subr.bf16.mxu0 %v789_v2  ;;  %765 = vmatprep.subr.bf16.mxu1 %v789_v2  ;;  %v807_v20 = vld [vmem:[%s862_s24 + $0x30] sm:$0xff]   ;;  %v809_v22 = vld [vmem:[%s862_s24 + $0x38] sm:$0xff]   ;;  %v898_v24 = vld [vmem:[%s975_s2] ss:$0 sm:$0xff] }
  0x13   : > { %v808_v21 = vld [vmem:[%s862_s24 + $0x70] sm:$0xff]   ;;  %v810_v23 = vld [vmem:[%s862_s24 + $0x78] sm:$0xff]  }
  0x15   : > { %720 = vmatpush3.bf16.msra.mxu0 %v789_v2  ;;  %773 = vmatpush3.bf16.msra.mxu1 %v789_v2 }
  0x16   : > { %721 = vmatprep.subr.bf16.mxu0 %v790_v3  ;;  %766 = vmatprep.subr.bf16.mxu1 %v790_v3 }
  0x19   : > { %722 = vmatpush3.bf16.msra.mxu0 %v790_v3  ;;  %774 = vmatpush3.bf16.msra.mxu1 %v790_v3 }
  0x1a   : > { %723 = vmatprep.subr.bf16.mxu0 %v791_v6  ;;  %767 = vmatprep.subr.bf16.mxu1 %v791_v6 }
  0x1d   : > { %724 = vmatpush3.bf16.msra.mxu0 %v791_v6  ;;  %775 = vmatpush3.bf16.msra.mxu1 %v791_v6 }
  0x1e   : > { %725 = vmatprep.subr.bf16.mxu0 %v792_v7  ;;  %768 = vmatprep.subr.bf16.mxu1 %v792_v7 }
  0x21   : > { %726 = vmatpush3.bf16.msra.mxu0 %v792_v7  ;;  %776 = vmatpush3.bf16.msra.mxu1 %v792_v7 }
  0x22   : > { %727 = vmatprep.subr.bf16.mxu0 %v793_v8  ;;  %769 = vmatprep.subr.bf16.mxu1 %v793_v8 }
  0x25   : > { %728 = vmatpush3.bf16.msra.mxu0 %v793_v8  ;;  %777 = vmatpush3.bf16.msra.mxu1 %v793_v8 }
  0x26   : > { %729 = vmatprep.subr.bf16.mxu0 %v794_v9  ;;  %770 = vmatprep.subr.bf16.mxu1 %v794_v9 }
  0x29   : > { %730 = vmatpush3.bf16.msra.mxu0 %v794_v9  ;;  %778 = vmatpush3.bf16.msra.mxu1 %v794_v9 }
  0x2c   : > { %732 = vmatmul.mubr.bf16.vlgmr.msra.gmra.mxu0 %v797_v10  ;;  %748 = vmatmul.mubr.bf16.vlgmr.msra.gmra.mxu1 %v798_v11 }
  0x2d   : > { %735 = vmatprep.mubr.bf16.mxu0 %v799_v12  ;;  %751 = vmatprep.mubr.bf16.mxu1 %v800_v13 }
  0x34   : > { %736 = vmatmul.mubr.bf16.gmra.mxu0 %v801_v14  ;;  %752 = vmatmul.mubr.bf16.gmra.mxu1 %v802_v15 }
  0x35   : > { %739 = vmatprep.mubr.bf16.mxu0 %v803_v16  ;;  %755 = vmatprep.mubr.bf16.mxu1 %v804_v17 }
  0x3c   : > { %740 = vmatmul.mubr.bf16.gmra.mxu0 %v805_v18  ;;  %756 = vmatmul.mubr.bf16.gmra.mxu1 %v806_v19 }
  0x3d   : > { %743 = vmatprep.mubr.bf16.mxu0 %v807_v20  ;;  %759 = vmatprep.mubr.bf16.mxu1 %v808_v21 }
  0x44   : > { %744 = vmatmul.mubr.bf16.gmra.mxu0 %v809_v22  ;;  %760 = vmatmul.mubr.bf16.gmra.mxu1 %v810_v23 }
  0xec   : > { %v733_v25 = vpop.f32.mrf.mxu0  ;;  %v749_v26 = vpop.f32.mrf.mxu1 }
  0xed   : > { %v417_v27 = vadd.f32 %v733_v25, %v898_v24  ;;  %v481_v28 = vadd.f32 %v749_v26, %v898_v24 }
  0xee   : > { %v408_v29 = vpop.f32.mrf.mxu0  ;;  %v472_v30 = vpop.f32.mrf.mxu1 }
  0xef   : > { %v537_v31 = vmax.f32 %v417_v27, 0.0  ;;  %v553_v32 = vmax.f32 %v481_v28, 0.0  ;;  %v409_v33 = vadd.f32 %v898_v24, %v408_v29  ;;  %v473_v34 = vadd.f32 %v898_v24, %v472_v30 }
  0xf0   : > { %v734_v35 = vpop.f32.mrf.mxu0  ;;  %v750_v36 = vpop.f32.mrf.mxu1 }
  0xf1   : > { %569 = vst [vmem:[%s906_s14 + $0x10] sm:$0xff] %v537_v31  ;;  %585 = vst [vmem:[%s906_s14 + $0x90] sm:$0xff] %v553_v32  ;;  %v535_v37 = vmax.f32 %v409_v33, 0.0  ;;  %v551_v38 = vmax.f32 %v473_v34, 0.0  ;;  %v420_v39 = vadd.f32 %v734_v35, %v898_v24  ;;  %v484_v40 = vadd.f32 %v750_v36, %v898_v24 }
  0xf2   : > { %v411_v41 = vpop.f32.mrf.mxu0  ;;  %v475_v42 = vpop.f32.mrf.mxu1 }
  0xf3   : > { %567 = vst [vmem:[%s906_s14] sm:$0xff] %v535_v37  ;;  %583 = vst [vmem:[%s906_s14 + $0x80] sm:$0xff] %v551_v38  ;;  %v538_v43 = vmax.f32 %v420_v39, 0.0  ;;  %v554_v44 = vmax.f32 %v484_v40, 0.0  ;;  %v412_v45 = vadd.f32 %v898_v24, %v411_v41  ;;  %v476_v46 = vadd.f32 %v898_v24, %v475_v42 }
  0xf4   : > { %v737_v47 = vpop.f32.mrf.mxu0  ;;  %v753_v48 = vpop.f32.mrf.mxu1 }
  0xf5   : > { %570 = vst [vmem:[%s906_s14 + $0x18] sm:$0xff] %v538_v43  ;;  %586 = vst [vmem:[%s906_s14 + $0x98] sm:$0xff] %v554_v44  ;;  %v536_v49 = vmax.f32 %v412_v45, 0.0  ;;  %v552_v50 = vmax.f32 %v476_v46, 0.0  ;;  %v433_v51 = vadd.f32 %v737_v47, %v898_v24  ;;  %v497_v52 = vadd.f32 %v753_v48, %v898_v24 }
  0xf6   : > { %v424_v53 = vpop.f32.mrf.mxu0  ;;  %v488_v54 = vpop.f32.mrf.mxu1 }
  0xf7   : > { %568 = vst [vmem:[%s906_s14 + $0x8] sm:$0xff] %v536_v49  ;;  %584 = vst [vmem:[%s906_s14 + $0x88] sm:$0xff] %v552_v50  ;;  %v541_v55 = vmax.f32 %v433_v51, 0.0  ;;  %v557_v56 = vmax.f32 %v497_v52, 0.0  ;;  %v425_v57 = vadd.f32 %v898_v24, %v424_v53  ;;  %v489_v58 = vadd.f32 %v898_v24, %v488_v54 }
  0xf8   : > { %v738_v59 = vpop.f32.mrf.mxu0  ;;  %v754_v60 = vpop.f32.mrf.mxu1 }
  0xf9   : > { %573 = vst [vmem:[%s906_s14 + $0x30] sm:$0xff] %v541_v55  ;;  %589 = vst [vmem:[%s906_s14 + $0xb0] sm:$0xff] %v557_v56  ;;  %v539_v61 = vmax.f32 %v425_v57, 0.0  ;;  %v555_v62 = vmax.f32 %v489_v58, 0.0  ;;  %v436_v63 = vadd.f32 %v738_v59, %v898_v24  ;;  %v500_v0 = vadd.f32 %v754_v60, %v898_v24 }
  0xfa   : > { %v427_v1 = vpop.f32.mrf.mxu0  ;;  %v491_v2 = vpop.f32.mrf.mxu1 }
  0xfb   : > { %571 = vst [vmem:[%s906_s14 + $0x20] sm:$0xff] %v539_v61  ;;  %587 = vst [vmem:[%s906_s14 + $0xa0] sm:$0xff] %v555_v62  ;;  %v542_v3 = vmax.f32 %v436_v63, 0.0  ;;  %v558_v4 = vmax.f32 %v500_v0, 0.0  ;;  %v428_v5 = vadd.f32 %v898_v24, %v427_v1  ;;  %v492_v6 = vadd.f32 %v898_v24, %v491_v2 }
  0xfc   : > { %v741_v7 = vpop.f32.mrf.mxu0  ;;  %v757_v8 = vpop.f32.mrf.mxu1 }
  0xfd   : > { %574 = vst [vmem:[%s906_s14 + $0x38] sm:$0xff] %v542_v3  ;;  %590 = vst [vmem:[%s906_s14 + $0xb8] sm:$0xff] %v558_v4  ;;  %v540_v9 = vmax.f32 %v428_v5, 0.0  ;;  %v556_v10 = vmax.f32 %v492_v6, 0.0  ;;  %v449_v11 = vadd.f32 %v741_v7, %v898_v24  ;;  %v513_v12 = vadd.f32 %v757_v8, %v898_v24 }
  0xfe   : > { %v440_v13 = vpop.f32.mrf.mxu0  ;;  %v504_v14 = vpop.f32.mrf.mxu1 }
  0xff   : > { %572 = vst [vmem:[%s906_s14 + $0x28] sm:$0xff] %v540_v9  ;;  %588 = vst [vmem:[%s906_s14 + $0xa8] sm:$0xff] %v556_v10  ;;  %v545_v15 = vmax.f32 %v449_v11, 0.0  ;;  %v561_v16 = vmax.f32 %v513_v12, 0.0  ;;  %v441_v17 = vadd.f32 %v898_v24, %v440_v13  ;;  %v505_v18 = vadd.f32 %v898_v24, %v504_v14 }
 0x100   : > { %v742_v19 = vpop.f32.mrf.mxu0  ;;  %v758_v20 = vpop.f32.mrf.mxu1 }
 0x101   : > { %577 = vst [vmem:[%s906_s14 + $0x50] sm:$0xff] %v545_v15  ;;  %593 = vst [vmem:[%s906_s14 + $0xd0] sm:$0xff] %v561_v16  ;;  %v543_v21 = vmax.f32 %v441_v17, 0.0  ;;  %v559_v22 = vmax.f32 %v505_v18, 0.0  ;;  %v452_v23 = vadd.f32 %v742_v19, %v898_v24  ;;  %v516_v25 = vadd.f32 %v758_v20, %v898_v24 }
 0x102   : > { %v443_v26 = vpop.f32.mrf.mxu0  ;;  %v507_v27 = vpop.f32.mrf.mxu1 }
 0x103   : > { %575 = vst [vmem:[%s906_s14 + $0x40] sm:$0xff] %v543_v21  ;;  %591 = vst [vmem:[%s906_s14 + $0xc0] sm:$0xff] %v559_v22  ;;  %v546_v28 = vmax.f32 %v452_v23, 0.0  ;;  %v562_v29 = vmax.f32 %v516_v25, 0.0  ;;  %v444_v30 = vadd.f32 %v898_v24, %v443_v26  ;;  %v508_v31 = vadd.f32 %v898_v24, %v507_v27 }
 0x104   : > { %v745_v32 = vpop.f32.mrf.mxu0  ;;  %v761_v33 = vpop.f32.mrf.mxu1 }
 0x105   : > { %578 = vst [vmem:[%s906_s14 + $0x58] sm:$0xff] %v546_v28  ;;  %594 = vst [vmem:[%s906_s14 + $0xd8] sm:$0xff] %v562_v29  ;;  %v544_v34 = vmax.f32 %v444_v30, 0.0  ;;  %v560_v35 = vmax.f32 %v508_v31, 0.0  ;;  %v465_v36 = vadd.f32 %v745_v32, %v898_v24  ;;  %v529_v37 = vadd.f32 %v761_v33, %v898_v24 }
 0x106   : > { %v456_v38 = vpop.f32.mrf.mxu0  ;;  %v520_v39 = vpop.f32.mrf.mxu1 }
 0x107   : > { %576 = vst [vmem:[%s906_s14 + $0x48] sm:$0xff] %v544_v34  ;;  %592 = vst [vmem:[%s906_s14 + $0xc8] sm:$0xff] %v560_v35  ;;  %v549_v40 = vmax.f32 %v465_v36, 0.0  ;;  %v565_v41 = vmax.f32 %v529_v37, 0.0  ;;  %v457_v42 = vadd.f32 %v898_v24, %v456_v38  ;;  %v521_v43 = vadd.f32 %v898_v24, %v520_v39 }
 0x108   : > { %v746_v44 = vpop.f32.mrf.mxu0  ;;  %v762_v45 = vpop.f32.mrf.mxu1 }
 0x109   : > { %581 = vst [vmem:[%s906_s14 + $0x70] sm:$0xff] %v549_v40  ;;  %597 = vst [vmem:[%s906_s14 + $0xf0] sm:$0xff] %v565_v41  ;;  %v547_v46 = vmax.f32 %v457_v42, 0.0  ;;  %v563_v47 = vmax.f32 %v521_v43, 0.0  ;;  %v468_v48 = vadd.f32 %v746_v44, %v898_v24  ;;  %v532_v49 = vadd.f32 %v762_v45, %v898_v24 }
 0x10a   : > { %v459_v50 = vpop.f32.mrf.mxu0  ;;  %v523_v51 = vpop.f32.mrf.mxu1 }
 0x10b   : > { %579 = vst [vmem:[%s906_s14 + $0x60] sm:$0xff] %v547_v46  ;;  %595 = vst [vmem:[%s906_s14 + $0xe0] sm:$0xff] %v563_v47  ;;  %v550_v52 = vmax.f32 %v468_v48, 0.0  ;;  %v566_v53 = vmax.f32 %v532_v49, 0.0  ;;  %v460_v54 = vadd.f32 %v898_v24, %v459_v50  ;;  %v524_v55 = vadd.f32 %v898_v24, %v523_v51 }
 0x10d   : > { %582 = vst [vmem:[%s906_s14 + $0x78] sm:$0xff] %v550_v52  ;;  %598 = vst [vmem:[%s906_s14 + $0xf8] sm:$0xff] %v566_v53  ;;  %v548_v56 = vmax.f32 %v460_v54, 0.0  ;;  %v564_v57 = vmax.f32 %v524_v55, 0.0 }
 0x10f   : > { %580 = vst [vmem:[%s906_s14 + $0x68] sm:$0xff] %v548_v56  ;;  %596 = vst [vmem:[%s906_s14 + $0xe8] sm:$0xff] %v564_v57 }
 0x110 PF: > { %s13_s12 = sadd.s32 1, %s817_s12  }
 0x111   : > { %p10_p4 = scmp.ge.s32.totalorder %s13_s12, 4  }
 0x113   :  { %12 = sbr.rel (!%p10_p4) target bundleno = 1 (0x1), region = 62 }

// kernel: inception_a.9
= control target key start
LH: loop header
LB: loop body
LE: loop exit
PB: predicated region body
PF: predicated region fallthrough
CT: control target
= control target key end

     0   :  { %s3895_s12 = smov 0   ;;  %s4581_s0 = inlined_call_operand.vmem [shape: bf16[512,1280], index: 0, kind: input, shape index: {}]   ;;  %s4582_s1 = inlined_call_operand.vmem [shape: bf16[1280,128], index: 1, kind: input, shape index: {}]   ;;  %s4583_s2 = inlined_call_operand.vmem [shape: f32[1,128], index: 2, kind: input, shape index: {}]   ;;  %s4584_s3 = inlined_call_operand.vmem [shape: f32[512,128], index: 3, kind: output, shape index: {}]  }
   0x1 LB: > { %s2710_s13 = sadd.s32 4294967295, %s3873_s12   ;;  %p2714_p0 = scmp.ge.s32.totalorder %s3873_s12, 1  ;;  %s3873_s12 = sphi %s3895_s12, %s13_s12  }
   0x2   : > { %p139_p1 = scmp.lt.s32.totalorder %s3873_s12, 3 }
   0x4   : > { %p140_p2 = pnand %p2714_p0, %p139_p1 }
   0x5   : > { %s2715_s16 = sshll.u32 (!%p140_p2), %s2710_s13, 5 }
   0x6   : > { %143 = sbr.rel (%p140_p2) target bundleno = 564 (0x234), region = 32  ;;  %p165_p3 = scmp.lt.s32.totalorder (!%p140_p2), %s2715_s16, 63 }
   0xb   : > { %v3547_v0 = vld [vmem:[%s4582_s1 + $0x78] sm:$0xff]   ;;  %v3549_v2 = vld [vmem:[%s4582_s1 + $0x70] sm:$0xff]   ;;  %v3551_v4 = vld [vmem:[%s4582_s1 + $0x68] sm:$0xff]   ;;  %s4586_s16 = smov (!%p165_p3, %s2715_s16), 63 }
   0xc   : > { %v3548_v1 = vld [vmem:[%s4582_s1 + $0x38] sm:$0xff]   ;;  %2962 = vmatprep.subr.bf16.mxu0 %v3547_v0  ;;  %3522 = vmatprep.subr.bf16.mxu1 %v3547_v0  ;;  %v3550_v3 = vld [vmem:[%s4582_s1 + $0x30] sm:$0xff]   ;;  %v3552_v5 = vld [vmem:[%s4582_s1 + $0x28] sm:$0xff]   ;;  %s3538_s29 = smul.u32 40, %s4586_s16 }
   0xd   : > { %2963 = vmatpush3.bf16.msra.mxu0 %v3548_v1  ;;  %3530 = vmatpush3.bf16.msra.mxu1 %v3548_v1  ;;  %v3553_v6 = vld [vmem:[%s4582_s1 + $0x60] sm:$0xff]   ;;  %v3555_v8 = vld [vmem:[%s4582_s1 + $0x58] sm:$0xff]   ;;  %v3557_v10 = vld [vmem:[%s4582_s1 + $0x50] sm:$0xff]  }
   0xe   : > { %2964 = vmatprep.subr.bf16.mxu0 %v3549_v2  ;;  %3523 = vmatprep.subr.bf16.mxu1 %v3549_v2  ;;  %v3554_v7 = vld [vmem:[%s4582_s1 + $0x20] sm:$0xff]   ;;  %s3936_s9 = scalar_lea.vmem %s4581_s0, %s3538_s29  ;;  %v3556_v9 = vld [vmem:[%s4582_s1 + $0x18] sm:$0xff]   ;;  %v3558_v13 = vld [vmem:[%s4582_s1 + $0x10] sm:$0xff]  }
   0xf   : > { %v3565_v11 = vld [vmem:[%s3936_s9 + $0x4] ss:$40 sps:$4 sm:$0xff]   ;;  %v3569_v18 = vld [vmem:[%s4582_s1 + $0xf8] sm:$0xff]   ;;  %v3563_v19 = vld [vmem:[%s3936_s9] ss:$40 sps:$4 sm:$0xff]  }
  0x10   : > { %v3568_v12 = vld [vmem:[%s3936_s9 + $0x284] ss:$40 sps:$4 sm:$0xff]   ;;  %1817 = vmatprep.mubr.bf16.mxu0 %v3565_v11  ;;  %v3571_v20 = vld [vmem:[%s4582_s1 + $0x178] sm:$0xff]   ;;  %v3566_v21 = vld [vmem:[%s3936_s9 + $0x280] ss:$40 sps:$4 sm:$0xff]  }
  0x11   : > { %2965 = vmatpush3.bf16.msra.mxu0 %v3550_v3  ;;  %3531 = vmatpush3.bf16.msra.mxu1 %v3550_v3  ;;  %v3559_v14 = vld [vmem:[%s4582_s1 + $0x48] sm:$0xff]   ;;  %v3561_v16 = vld [vmem:[%s4582_s1 + $0x40] sm:$0xff]   ;;  %v3570_v22 = vld [vmem:[%s4582_s1 + $0xb8] sm:$0xff]  }
  0x12   : > { %2966 = vmatprep.subr.bf16.mxu0 %v3551_v4  ;;  %3524 = vmatprep.subr.bf16.mxu1 %v3551_v4  ;;  %v3560_v15 = vld [vmem:[%s4582_s1 + $0x8] sm:$0xff]   ;;  %v3562_v17 = vld [vmem:[%s4582_s1] sm:$0xff]   ;;  %v3572_v23 = vld [vmem:[%s4582_s1 + $0x138] sm:$0xff]  }
  0x13   : > { %1881 = vmatprep.mubr.bf16.mxu1 %v3568_v12  ;;  %v3573_v24 = vld [vmem:[%s3936_s9 + $0x54] ss:$40 sps:$4 sm:$0xff]   ;;  %v3589_v30 = vld [vmem:[%s4582_s1 + $0xe8] sm:$0xff]   ;;  %v3577_v31 = vld [vmem:[%s3936_s9 + $0x50] ss:$40 sps:$4 sm:$0xff]  }
  0x14   : > { %v3575_v25 = vld [vmem:[%s3936_s9 + $0x2d4] ss:$40 sps:$4 sm:$0xff]   ;;  %v3578_v32 = vld [vmem:[%s3936_s9 + $0x2d0] ss:$40 sps:$4 sm:$0xff]   ;;  %v3591_v33 = vld [vmem:[%s4582_s1 + $0x168] sm:$0xff]  }
  0x15   : > { %2967 = vmatpush3.bf16.msra.mxu0 %v3552_v5  ;;  %3532 = vmatpush3.bf16.msra.mxu1 %v3552_v5  ;;  %v3579_v26 = vld [vmem:[%s4582_s1 + $0xf0] sm:$0xff]   ;;  %v3583_v34 = vld [vmem:[%s3936_s9 + $0xa4] ss:$40 sps:$4 sm:$0xff]   ;;  %v3587_v40 = vld [vmem:[%s3936_s9 + $0xa0] ss:$40 sps:$4 sm:$0xff]  }
  0x16   : > { %2968 = vmatprep.subr.bf16.mxu0 %v3553_v6  ;;  %3525 = vmatprep.subr.bf16.mxu1 %v3553_v6  ;;  %v3580_v27 = vld [vmem:[%s4582_s1 + $0xb0] sm:$0xff]   ;;  %v3585_v35 = vld [vmem:[%s3936_s9 + $0x324] ss:$40 sps:$4 sm:$0xff]   ;;  %v3588_v41 = vld [vmem:[%s3936_s9 + $0x320] ss:$40 sps:$4 sm:$0xff]  }
  0x17   : > { %v3581_v28 = vld [vmem:[%s4582_s1 + $0x170] sm:$0xff]   ;;  %v3590_v36 = vld [vmem:[%s4582_s1 + $0xa8] sm:$0xff]   ;;  %v3599_v38 = vld [vmem:[%s4582_s1 + $0xe0] sm:$0xff]  }
  0x18   : > { %v3582_v29 = vld [vmem:[%s4582_s1 + $0x130] sm:$0xff]   ;;  %v3592_v37 = vld [vmem:[%s4582_s1 + $0x128] sm:$0xff]   ;;  %v3601_v39 = vld [vmem:[%s4582_s1 + $0x160] sm:$0xff]  }
  0x19   : > { %2969 = vmatpush3.bf16.msra.mxu0 %v3554_v7  ;;  %3533 = vmatpush3.bf16.msra.mxu1 %v3554_v7  ;;  %v3600_v42 = vld [vmem:[%s4582_s1 + $0xa0] sm:$0xff]   ;;  %v3593_v44 = vld [vmem:[%s3936_s9 + $0xf4] ss:$40 sps:$4 sm:$0xff]   ;;  %v3597_v50 = vld [vmem:[%s3936_s9 + $0xf0] ss:$40 sps:$4 sm:$0xff]  }
  0x1a   : > { %2970 = vmatprep.subr.bf16.mxu0 %v3555_v8  ;;  %3526 = vmatprep.subr.bf16.mxu1 %v3555_v8  ;;  %v3602_v43 = vld [vmem:[%s4582_s1 + $0x120] sm:$0xff]   ;;  %v3595_v45 = vld [vmem:[%s3936_s9 + $0x374] ss:$40 sps:$4 sm:$0xff]   ;;  %v3598_v51 = vld [vmem:[%s3936_s9 + $0x370] ss:$40 sps:$4 sm:$0xff]  }
  0x1b   : > { %v3609_v46 = vld [vmem:[%s4582_s1 + $0xd8] sm:$0xff]   ;;  %v3619_v52 = vld [vmem:[%s4582_s1 + $0xd0] sm:$0xff]   ;;  %v3603_v53 = vld [vmem:[%s3936_s9 + $0x144] ss:$40 sps:$4 sm:$0xff]  }
  0x1c   : > { %v3610_v47 = vld [vmem:[%s4582_s1 + $0x98] sm:$0xff]   ;;  %v3605_v54 = vld [vmem:[%s3936_s9 + $0x3c4] ss:$40 sps:$4 sm:$0xff]   ;;  %v3620_v55 = vld [vmem:[%s4582_s1 + $0x90] sm:$0xff]  }
  0x1d   : > { %2971 = vmatpush3.bf16.msra.mxu0 %v3556_v9  ;;  %3534 = vmatpush3.bf16.msra.mxu1 %v3556_v9  ;;  %v3611_v48 = vld [vmem:[%s4582_s1 + $0x158] sm:$0xff]   ;;  %v3621_v56 = vld [vmem:[%s4582_s1 + $0x150] sm:$0xff]   ;;  %v3629_v58 = vld [vmem:[%s4582_s1 + $0xc8] sm:$0xff]  }
  0x1e   : > { %2972 = vmatprep.subr.bf16.mxu0 %v3557_v10  ;;  %3527 = vmatprep.subr.bf16.mxu1 %v3557_v10  ;;  %v3612_v49 = vld [vmem:[%s4582_s1 + $0x118] sm:$0xff]   ;;  %v3622_v57 = vld [vmem:[%s4582_s1 + $0x110] sm:$0xff]   ;;  %v3607_v59 = vld [vmem:[%s3936_s9 + $0x140] ss:$40 sps:$4 sm:$0xff]  }
  0x1f   : > { %v3608_v60 = vld [vmem:[%s3936_s9 + $0x3c0] ss:$40 sps:$4 sm:$0xff]   ;;  %v3613_v62 = vld [vmem:[%s3936_s9 + $0x194] ss:$40 sps:$4 sm:$0xff]   ;;  %v3617_v6 = vld [vmem:[%s3936_s9 + $0x190] ss:$40 sps:$4 sm:$0xff]  }
  0x20   : > { %v3630_v61 = vld [vmem:[%s4582_s1 + $0x88] sm:$0xff]   ;;  %v3615_v1 = vld [vmem:[%s3936_s9 + $0x414] ss:$40 sps:$4 sm:$0xff]   ;;  %v3639_v2 = vld [vmem:[%s4582_s1 + $0xc0] sm:$0xff]  }
  0x21   : > { %2973 = vmatpush3.bf16.msra.mxu0 %v3558_v13  ;;  %3535 = vmatpush3.bf16.msra.mxu1 %v3558_v13  ;;  %v3631_v63 = vld [vmem:[%s4582_s1 + $0x148] sm:$0xff]   ;;  %v3640_v3 = vld [vmem:[%s4582_s1 + $0x80] sm:$0xff]   ;;  %v3618_v7 = vld [vmem:[%s3936_s9 + $0x410] ss:$40 sps:$4 sm:$0xff]  }
  0x22   : > { %2974 = vmatprep.subr.bf16.mxu0 %v3559_v14  ;;  %3528 = vmatprep.subr.bf16.mxu1 %v3559_v14  ;;  %v3632_v0 = vld [vmem:[%s4582_s1 + $0x108] sm:$0xff]   ;;  %v3641_v4 = vld [vmem:[%s4582_s1 + $0x140] sm:$0xff]   ;;  %v3649_v10 = vld [vmem:[%s4582_s1 + $0x1f8] sm:$0xff]  }
  0x23   : > { %v3642_v5 = vld [vmem:[%s4582_s1 + $0x100] sm:$0xff]   ;;  %v3651_v11 = vld [vmem:[%s4582_s1 + $0x278] sm:$0xff]  }
  0x24   : > { %v3623_v8 = vld [vmem:[%s3936_s9 + $0x1e4] ss:$40 sps:$4 sm:$0xff]   ;;  %v3627_v12 = vld [vmem:[%s3936_s9 + $0x1e0] ss:$40 sps:$4 sm:$0xff]   ;;  %v3633_v14 = vld [vmem:[%s3936_s9 + $0x234] ss:$40 sps:$4 sm:$0xff]  }
  0x25   : > { %2975 = vmatpush3.bf16.msra.mxu0 %v3560_v15  ;;  %3536 = vmatpush3.bf16.msra.mxu1 %v3560_v15  ;;  %v3625_v9 = vld [vmem:[%s3936_s9 + $0x464] ss:$40 sps:$4 sm:$0xff]   ;;  %v3628_v13 = vld [vmem:[%s3936_s9 + $0x460] ss:$40 sps:$4 sm:$0xff]   ;;  %v3635_v15 = vld [vmem:[%s3936_s9 + $0x4b4] ss:$40 sps:$4 sm:$0xff]  }
  0x26   : > { %2976 = vmatprep.subr.bf16.mxu0 %v3561_v16  ;;  %3529 = vmatprep.subr.bf16.mxu1 %v3561_v16  ;;  %v3637_v16 = vld [vmem:[%s3936_s9 + $0x230] ss:$40 sps:$4 sm:$0xff]  }
  0x29   : > { %2977 = vmatpush3.bf16.msra.mxu0 %v3562_v17  ;;  %3537 = vmatpush3.bf16.msra.mxu1 %v3562_v17  ;;  %v3638_v17 = vld [vmem:[%s3936_s9 + $0x4b0] ss:$40 sps:$4 sm:$0xff]  }
  0x2a   : > { %3074 = vmatprep.subr.bf16.mxu1 %v3569_v18  ;;  %3186 = vmatprep.subr.bf16.mxu0 %v3571_v20  ;;  %v3645_v18 = vld [vmem:[%s3936_s9 + $0xc] ss:$40 sps:$4 sm:$0xff]   ;;  %v3643_v20 = vld [vmem:[%s3936_s9 + $0x8] ss:$40 sps:$4 sm:$0xff]  }
  0x2c   : > { %1818 = vmatmul.mubr.bf16.vlgmr.msra.gmra.mxu0 %v3563_v19  ;;  %1882 = vmatmul.mubr.bf16.vlgmr.msra.gmra.mxu1 %v3566_v21  ;;  %v3648_v19 = vld [vmem:[%s3936_s9 + $0x14] ss:$40 sps:$4 sm:$0xff]   ;;  %v3646_v21 = vld [vmem:[%s3936_s9 + $0x10] ss:$40 sps:$4 sm:$0xff]  }
  0x2d   : > { %3075 = vmatpush3.bf16.msra.mxu1 %v3570_v22  ;;  %3187 = vmatpush3.bf16.msra.mxu0 %v3572_v23  ;;  %v3650_v22 = vld [vmem:[%s4582_s1 + $0x1b8] sm:$0xff]  }
  0x2e   : > { %1825 = vmatprep.mubr.bf16.mxu0 %v3573_v24  ;;  %1889 = vmatprep.mubr.bf16.mxu1 %v3575_v25  ;;  %v3652_v23 = vld [vmem:[%s4582_s1 + $0x238] sm:$0xff]   ;;  %v3655_v25 = vld [vmem:[%s3936_s9 + $0x64] ss:$40 sps:$4 sm:$0xff]  }
  0x2f   : > { %3076 = vmatprep.subr.bf16.mxu1 %v3579_v26  ;;  %3188 = vmatprep.subr.bf16.mxu0 %v3581_v28  ;;  %v3653_v24 = vld [vmem:[%s3936_s9 + $0x5c] ss:$40 sps:$4 sm:$0xff]   ;;  %v3665_v26 = vld [vmem:[%s4582_s1 + $0x1f0] sm:$0xff]  }
  0x30   : > { %v3666_v28 = vld [vmem:[%s4582_s1 + $0x1b0] sm:$0xff]  }
  0x31   : > { %3077 = vmatpush3.bf16.msra.mxu1 %v3580_v27  ;;  %3189 = vmatpush3.bf16.msra.mxu0 %v3582_v29  ;;  %v3667_v27 = vld [vmem:[%s4582_s1 + $0x270] sm:$0xff]  }
  0x32   : > { %3078 = vmatprep.subr.bf16.mxu1 %v3589_v30  ;;  %3190 = vmatprep.subr.bf16.mxu0 %v3591_v33  ;;  %v3668_v29 = vld [vmem:[%s4582_s1 + $0x230] sm:$0xff]   ;;  %v3681_v30 = vld [vmem:[%s4582_s1 + $0x1e8] sm:$0xff]  }
  0x33   : > { %v3683_v33 = vld [vmem:[%s4582_s1 + $0x268] sm:$0xff]  }
  0x34   : > { %1826 = vmatmul.mubr.bf16.gmra.mxu0 %v3577_v31  ;;  %1890 = vmatmul.mubr.bf16.gmra.mxu1 %v3578_v32  ;;  %v3657_v31 = vld [vmem:[%s3936_s9 + $0x58] ss:$40 sps:$4 sm:$0xff]  }
  0x35   : > { %1833 = vmatprep.mubr.bf16.mxu0 %v3583_v34  ;;  %1897 = vmatprep.mubr.bf16.mxu1 %v3585_v35  ;;  %v3658_v32 = vld [vmem:[%s3936_s9 + $0x60] ss:$40 sps:$4 sm:$0xff]   ;;  %v3659_v34 = vld [vmem:[%s3936_s9 + $0xac] ss:$40 sps:$4 sm:$0xff]  }
  0x36   : > { %3079 = vmatpush3.bf16.msra.mxu1 %v3590_v36  ;;  %3191 = vmatpush3.bf16.msra.mxu0 %v3592_v37  ;;  %v3661_v35 = vld [vmem:[%s3936_s9 + $0xb4] ss:$40 sps:$4 sm:$0xff]   ;;  %v3682_v36 = vld [vmem:[%s4582_s1 + $0x1a8] sm:$0xff]  }
  0x37   : > { %3080 = vmatprep.subr.bf16.mxu1 %v3599_v38  ;;  %3192 = vmatprep.subr.bf16.mxu0 %v3601_v39  ;;  %v3684_v37 = vld [vmem:[%s4582_s1 + $0x228] sm:$0xff]   ;;  %v3697_v38 = vld [vmem:[%s4582_s1 + $0x1e0] sm:$0xff]  }
  0x38   : > { %v3699_v39 = vld [vmem:[%s4582_s1 + $0x260] sm:$0xff]  }
  0x3a   : > { %3081 = vmatpush3.bf16.msra.mxu1 %v3600_v42  ;;  %3193 = vmatpush3.bf16.msra.mxu0 %v3602_v43  ;;  %v3698_v42 = vld [vmem:[%s4582_s1 + $0x1a0] sm:$0xff]  }
  0x3b   : > { %3082 = vmatprep.subr.bf16.mxu1 %v3609_v46  ;;  %3194 = vmatprep.subr.bf16.mxu0 %v3611_v48  ;;  %v3700_v43 = vld [vmem:[%s4582_s1 + $0x220] sm:$0xff]   ;;  %v3713_v46 = vld [vmem:[%s4582_s1 + $0x1d8] sm:$0xff]  }
  0x3c   : > { %1834 = vmatmul.mubr.bf16.gmra.mxu0 %v3587_v40  ;;  %1898 = vmatmul.mubr.bf16.gmra.mxu1 %v3588_v41  ;;  %v3663_v40 = vld [vmem:[%s3936_s9 + $0xa8] ss:$40 sps:$4 sm:$0xff]   ;;  %v3715_v48 = vld [vmem:[%s4582_s1 + $0x258] sm:$0xff]  }
  0x3d   : > { %1841 = vmatprep.mubr.bf16.mxu0 %v3593_v44  ;;  %1905 = vmatprep.mubr.bf16.mxu1 %v3595_v45  ;;  %v3664_v41 = vld [vmem:[%s3936_s9 + $0xb0] ss:$40 sps:$4 sm:$0xff]   ;;  %v3669_v44 = vld [vmem:[%s3936_s9 + $0xfc] ss:$40 sps:$4 sm:$0xff]  }
  0x3e   : > { %3083 = vmatpush3.bf16.msra.mxu1 %v3610_v47  ;;  %3195 = vmatpush3.bf16.msra.mxu0 %v3612_v49  ;;  %v3671_v45 = vld [vmem:[%s3936_s9 + $0x104] ss:$40 sps:$4 sm:$0xff]   ;;  %v3714_v47 = vld [vmem:[%s4582_s1 + $0x198] sm:$0xff]  }
  0x3f   : > { %3084 = vmatprep.subr.bf16.mxu1 %v3619_v52  ;;  %3196 = vmatprep.subr.bf16.mxu0 %v3621_v56  ;;  %v3716_v49 = vld [vmem:[%s4582_s1 + $0x218] sm:$0xff]   ;;  %v3675_v52 = vld [vmem:[%s3936_s9 + $0x14c] ss:$40 sps:$4 sm:$0xff]  }
  0x40   : > { %v3731_v56 = vld [vmem:[%s4582_s1 + $0x250] sm:$0xff]  }
  0x42   : > { %3085 = vmatpush3.bf16.msra.mxu1 %v3620_v55  ;;  %3197 = vmatpush3.bf16.msra.mxu0 %v3622_v57  ;;  %v3730_v55 = vld [vmem:[%s4582_s1 + $0x190] sm:$0xff]  }
  0x43   : > { %3086 = vmatprep.subr.bf16.mxu1 %v3629_v58  ;;  %3198 = vmatprep.subr.bf16.mxu0 %v3631_v63  ;;  %v3732_v57 = vld [vmem:[%s4582_s1 + $0x210] sm:$0xff]   ;;  %v3746_v63 = vld [vmem:[%s4582_s1 + $0x188] sm:$0xff]  }
  0x44   : > { %1842 = vmatmul.mubr.bf16.gmra.mxu0 %v3597_v50  ;;  %1906 = vmatmul.mubr.bf16.gmra.mxu1 %v3598_v51  ;;  %v3673_v50 = vld [vmem:[%s3936_s9 + $0xf8] ss:$40 sps:$4 sm:$0xff]   ;;  %v3679_v58 = vld [vmem:[%s3936_s9 + $0x148] ss:$40 sps:$4 sm:$0xff]  }
  0x45   : > { %1849 = vmatprep.mubr.bf16.mxu0 %v3603_v53  ;;  %1913 = vmatprep.mubr.bf16.mxu1 %v3605_v54  ;;  %v3674_v51 = vld [vmem:[%s3936_s9 + $0x100] ss:$40 sps:$4 sm:$0xff]   ;;  %v3677_v53 = vld [vmem:[%s3936_s9 + $0x154] ss:$40 sps:$4 sm:$0xff]  }
  0x46   : > { %3087 = vmatpush3.bf16.msra.mxu1 %v3630_v61  ;;  %3199 = vmatpush3.bf16.msra.mxu0 %v3632_v0  ;;  %v3729_v54 = vld [vmem:[%s4582_s1 + $0x1d0] sm:$0xff]   ;;  %v3687_v61 = vld [vmem:[%s3936_s9 + $0x1a4] ss:$40 sps:$4 sm:$0xff]  }
  0x47   : > { %3088 = vmatprep.subr.bf16.mxu1 %v3639_v2  ;;  %3200 = vmatprep.subr.bf16.mxu0 %v3641_v4  ;;  %v3747_v0 = vld [vmem:[%s4582_s1 + $0x248] sm:$0xff]   ;;  %v3689_v2 = vld [vmem:[%s3936_s9 + $0x198] ss:$40 sps:$4 sm:$0xff]  }
  0x48   : > { %v3691_v4 = vld [vmem:[%s3936_s9 + $0x1ec] ss:$40 sps:$4 sm:$0xff]  }
  0x4a   : > { %3089 = vmatpush3.bf16.msra.mxu1 %v3640_v3  ;;  %3201 = vmatpush3.bf16.msra.mxu0 %v3642_v5  ;;  %v3690_v3 = vld [vmem:[%s3936_s9 + $0x1a0] ss:$40 sps:$4 sm:$0xff]   ;;  %v3693_v5 = vld [vmem:[%s3936_s9 + $0x1f4] ss:$40 sps:$4 sm:$0xff]  }
  0x4b   : > { %3298 = vmatprep.subr.bf16.mxu1 %v3649_v10  ;;  %3410 = vmatprep.subr.bf16.mxu0 %v3651_v11  ;;  %v3764_v10 = vld [vmem:[%s4582_s1 + $0x200] sm:$0xff]   ;;  %v3696_v11 = vld [vmem:[%s3936_s9 + $0x1f0] ss:$40 sps:$4 sm:$0xff]  }
  0x4c   : > { %1850 = vmatmul.mubr.bf16.gmra.mxu0 %v3607_v59  ;;  %1914 = vmatmul.mubr.bf16.gmra.mxu1 %v3608_v60  ;;  %v3680_v59 = vld [vmem:[%s3936_s9 + $0x150] ss:$40 sps:$4 sm:$0xff]   ;;  %v3685_v60 = vld [vmem:[%s3936_s9 + $0x19c] ss:$40 sps:$4 sm:$0xff]  }
  0x4d   : > { %1857 = vmatprep.mubr.bf16.mxu0 %v3613_v62  ;;  %1921 = vmatprep.mubr.bf16.mxu1 %v3615_v1  ;;  %v3745_v62 = vld [vmem:[%s4582_s1 + $0x1c8] sm:$0xff]  }
  0x4e   : > { %v3748_v1 = vld [vmem:[%s4582_s1 + $0x208] sm:$0xff]  }
  0x54   : > { %1858 = vmatmul.mubr.bf16.gmra.mxu0 %v3617_v6  ;;  %1922 = vmatmul.mubr.bf16.gmra.mxu1 %v3618_v7  ;;  %v3761_v6 = vld [vmem:[%s4582_s1 + $0x1c0] sm:$0xff]  }
  0x55   : > { %1865 = vmatprep.mubr.bf16.mxu0 %v3623_v8  ;;  %1929 = vmatprep.mubr.bf16.mxu1 %v3625_v9  ;;  %v3762_v7 = vld [vmem:[%s4582_s1 + $0x180] sm:$0xff]   ;;  %v3695_v8 = vld [vmem:[%s3936_s9 + $0x1e8] ss:$40 sps:$4 sm:$0xff]  }
  0x56   : > { %v3763_v9 = vld [vmem:[%s4582_s1 + $0x240] sm:$0xff]  }
  0x5c   : > { %1866 = vmatmul.mubr.bf16.gmra.mxu0 %v3627_v12  ;;  %1930 = vmatmul.mubr.bf16.gmra.mxu1 %v3628_v13  ;;  %v3701_v12 = vld [vmem:[%s3936_s9 + $0x23c] ss:$40 sps:$4 sm:$0xff]  }
  0x5d   : > { %1873 = vmatprep.mubr.bf16.mxu0 %v3633_v14  ;;  %1937 = vmatprep.mubr.bf16.mxu1 %v3635_v15  ;;  %v3703_v13 = vld [vmem:[%s3936_s9 + $0x244] ss:$40 sps:$4 sm:$0xff]   ;;  %v3705_v14 = vld [vmem:[%s3936_s9 + $0x238] ss:$40 sps:$4 sm:$0xff]  }
  0x5e   : > { %v3706_v15 = vld [vmem:[%s3936_s9 + $0x240] ss:$40 sps:$4 sm:$0xff]  }
  0x64   : > { %1874 = vmatmul.mubr.bf16.gmra.mxu0 %v3637_v16  ;;  %1938 = vmatmul.mubr.bf16.gmra.mxu1 %v3638_v17  ;;  %v3707_v16 = vld [vmem:[%s3936_s9 + $0x28c] ss:$40 sps:$4 sm:$0xff]  }
  0x65   : > { %1978 = vmatprep.mubr.bf16.mxu1 %v3645_v18  ;;  %2139 = vmatprep.mubr.bf16.mxu0 %v3648_v19  ;;  %v3709_v17 = vld [vmem:[%s3936_s9 + $0x294] ss:$40 sps:$4 sm:$0xff]   ;;  %v3711_v18 = vld [vmem:[%s3936_s9 + $0x288] ss:$40 sps:$4 sm:$0xff]  }
  0x66   : > { %v3712_v19 = vld [vmem:[%s3936_s9 + $0x290] ss:$40 sps:$4 sm:$0xff]  }
  0x6c   : > { %1979 = vmatmul.mubr.bf16.vlgmr.msra.gmra.mxu1 %v3643_v20  ;;  %2140 = vmatmul.mubr.bf16.vlgmr.msra.gmra.mxu0 %v3646_v21  ;;  %v3717_v20 = vld [vmem:[%s3936_s9 + $0x2dc] ss:$40 sps:$4 sm:$0xff]  }
  0x6d   : > { %3299 = vmatpush3.bf16.msra.mxu1 %v3650_v22  ;;  %3411 = vmatpush3.bf16.msra.mxu0 %v3652_v23  ;;  %v3719_v21 = vld [vmem:[%s3936_s9 + $0x2e4] ss:$40 sps:$4 sm:$0xff]   ;;  %v3721_v22 = vld [vmem:[%s3936_s9 + $0x2d8] ss:$40 sps:$4 sm:$0xff]  }
  0x6e   : > { %1986 = vmatprep.mubr.bf16.mxu1 %v3653_v24  ;;  %2147 = vmatprep.mubr.bf16.mxu0 %v3655_v25  ;;  %v3722_v23 = vld [vmem:[%s3936_s9 + $0x2e0] ss:$40 sps:$4 sm:$0xff]   ;;  %v3723_v24 = vld [vmem:[%s3936_s9 + $0x32c] ss:$40 sps:$4 sm:$0xff]  }
  0x6f   : > { %3300 = vmatprep.subr.bf16.mxu1 %v3665_v26  ;;  %3412 = vmatprep.subr.bf16.mxu0 %v3667_v27  ;;  %v3725_v25 = vld [vmem:[%s3936_s9 + $0x334] ss:$40 sps:$4 sm:$0xff]   ;;  %v3727_v26 = vld [vmem:[%s3936_s9 + $0x328] ss:$40 sps:$4 sm:$0xff]  }
  0x70   : > { %v3728_v27 = vld [vmem:[%s3936_s9 + $0x330] ss:$40 sps:$4 sm:$0xff]  }
  0x71   : > { %3301 = vmatpush3.bf16.msra.mxu1 %v3666_v28  ;;  %3413 = vmatpush3.bf16.msra.mxu0 %v3668_v29  ;;  %v3733_v28 = vld [vmem:[%s3936_s9 + $0x37c] ss:$40 sps:$4 sm:$0xff]  }
  0x72   : > { %3302 = vmatprep.subr.bf16.mxu1 %v3681_v30  ;;  %3414 = vmatprep.subr.bf16.mxu0 %v3683_v33  ;;  %v3735_v29 = vld [vmem:[%s3936_s9 + $0x384] ss:$40 sps:$4 sm:$0xff]   ;;  %v3737_v30 = vld [vmem:[%s3936_s9 + $0x378] ss:$40 sps:$4 sm:$0xff]   ;;  %v3741_v33 = vld [vmem:[%s3936_s9 + $0x3d4] ss:$40 sps:$4 sm:$0xff]  }
  0x74   : > { %1987 = vmatmul.mubr.bf16.gmra.mxu1 %v3657_v31  ;;  %2148 = vmatmul.mubr.bf16.gmra.mxu0 %v3658_v32  ;;  %v3738_v31 = vld [vmem:[%s3936_s9 + $0x380] ss:$40 sps:$4 sm:$0xff]   ;;  %v3739_v32 = vld [vmem:[%s3936_s9 + $0x3cc] ss:$40 sps:$4 sm:$0xff]  }
  0x75   : > { %1994 = vmatprep.mubr.bf16.mxu1 %v3659_v34  ;;  %2155 = vmatprep.mubr.bf16.mxu0 %v3661_v35  ;;  %v3743_v34 = vld [vmem:[%s3936_s9 + $0x3c8] ss:$40 sps:$4 sm:$0xff]  }
  0x76   : > { %3303 = vmatpush3.bf16.msra.mxu1 %v3682_v36  ;;  %3415 = vmatpush3.bf16.msra.mxu0 %v3684_v37  ;;  %v3744_v35 = vld [vmem:[%s3936_s9 + $0x3d0] ss:$40 sps:$4 sm:$0xff]   ;;  %v3749_v36 = vld [vmem:[%s3936_s9 + $0x41c] ss:$40 sps:$4 sm:$0xff]  }
  0x77   : > { %3304 = vmatprep.subr.bf16.mxu1 %v3697_v38  ;;  %3416 = vmatprep.subr.bf16.mxu0 %v3699_v39  ;;  %v3751_v37 = vld [vmem:[%s3936_s9 + $0x424] ss:$40 sps:$4 sm:$0xff]   ;;  %v3753_v38 = vld [vmem:[%s3936_s9 + $0x418] ss:$40 sps:$4 sm:$0xff]  }
  0x78   : > { %v3754_v39 = vld [vmem:[%s3936_s9 + $0x420] ss:$40 sps:$4 sm:$0xff]  }
  0x7a   : > { %3305 = vmatpush3.bf16.msra.mxu1 %v3698_v42  ;;  %3417 = vmatpush3.bf16.msra.mxu0 %v3700_v43  ;;  %v3759_v42 = vld [vmem:[%s3936_s9 + $0x468] ss:$40 sps:$4 sm:$0xff]  }
  0x7b   : > { %3306 = vmatprep.subr.bf16.mxu1 %v3713_v46  ;;  %3418 = vmatprep.subr.bf16.mxu0 %v3715_v48  ;;  %v3760_v43 = vld [vmem:[%s3936_s9 + $0x470] ss:$40 sps:$4 sm:$0xff]   ;;  %v3773_v48 = vld [vmem:[%s3936_s9 + $0x1c] ss:$40 sps:$4 sm:$0xff]  }
  0x7c   : > { %1995 = vmatmul.mubr.bf16.gmra.mxu1 %v3663_v40  ;;  %2156 = vmatmul.mubr.bf16.gmra.mxu0 %v3664_v41  ;;  %v3755_v40 = vld [vmem:[%s3936_s9 + $0x46c] ss:$40 sps:$4 sm:$0xff]   ;;  %v3769_v46 = vld [vmem:[%s3936_s9 + $0x4b8] ss:$40 sps:$4 sm:$0xff]  }
  0x7d   : > { %2002 = vmatprep.mubr.bf16.mxu1 %v3669_v44  ;;  %2163 = vmatprep.mubr.bf16.mxu0 %v3671_v45  ;;  %v3757_v41 = vld [vmem:[%s3936_s9 + $0x474] ss:$40 sps:$4 sm:$0xff]   ;;  %v3767_v45 = vld [vmem:[%s3936_s9 + $0x4c4] ss:$40 sps:$4 sm:$0xff]  }
  0x7e   : > { %3307 = vmatpush3.bf16.msra.mxu1 %v3714_v47  ;;  %3419 = vmatpush3.bf16.msra.mxu0 %v3716_v49  ;;  %v3765_v44 = vld [vmem:[%s3936_s9 + $0x4bc] ss:$40 sps:$4 sm:$0xff]   ;;  %v3770_v47 = vld [vmem:[%s3936_s9 + $0x4c0] ss:$40 sps:$4 sm:$0xff]  }
  0x7f   : > { %3308 = vmatprep.subr.bf16.mxu1 %v3729_v54  ;;  %3420 = vmatprep.subr.bf16.mxu0 %v3731_v56  ;;  %v3776_v49 = vld [vmem:[%s3936_s9 + $0x24] ss:$40 sps:$4 sm:$0xff]   ;;  %v4256_v56 = vld [vmem:[%s4583_s2] ss:$0 sm:$0xff] }
  0x82   : > { %3309 = vmatpush3.bf16.msra.mxu1 %v3730_v55  ;;  %3421 = vmatpush3.bf16.msra.mxu0 %v3732_v57 }
  0x83   : > { %3310 = vmatprep.subr.bf16.mxu1 %v3745_v62  ;;  %3422 = vmatprep.subr.bf16.mxu0 %v3747_v0  ;;  %v3782_v0 = vld [vmem:[%s3936_s9 + $0x70] ss:$40 sps:$4 sm:$0xff]  }
  0x84   : > { %2003 = vmatmul.mubr.bf16.gmra.mxu1 %v3673_v50  ;;  %2164 = vmatmul.mubr.bf16.gmra.mxu0 %v3674_v51  ;;  %v3771_v50 = vld [vmem:[%s3936_s9 + $0x18] ss:$40 sps:$4 sm:$0xff]  }
  0x85   : > { %2010 = vmatprep.mubr.bf16.mxu1 %v3675_v52  ;;  %2171 = vmatprep.mubr.bf16.mxu0 %v3677_v53  ;;  %v3774_v51 = vld [vmem:[%s3936_s9 + $0x20] ss:$40 sps:$4 sm:$0xff]   ;;  %v3777_v52 = vld [vmem:[%s3936_s9 + $0x6c] ss:$40 sps:$4 sm:$0xff]  }
  0x86   : > { %3311 = vmatpush3.bf16.msra.mxu1 %v3746_v63  ;;  %3423 = vmatpush3.bf16.msra.mxu0 %v3748_v1  ;;  %v3779_v53 = vld [vmem:[%s3936_s9 + $0x74] ss:$40 sps:$4 sm:$0xff]   ;;  %v3781_v63 = vld [vmem:[%s3936_s9 + $0x68] ss:$40 sps:$4 sm:$0xff]  }
  0x87   : > { %3312 = vmatprep.subr.bf16.mxu1 %v3761_v6  ;;  %3424 = vmatprep.subr.bf16.mxu0 %v3763_v9 }
  0x8a   : > { %3313 = vmatpush3.bf16.msra.mxu1 %v3762_v7  ;;  %3425 = vmatpush3.bf16.msra.mxu0 %v3764_v10 }
  0x8c   : > { %2011 = vmatmul.mubr.bf16.gmra.mxu1 %v3679_v58  ;;  %2172 = vmatmul.mubr.bf16.gmra.mxu0 %v3680_v59 }
  0x8d   : > { %2018 = vmatprep.mubr.bf16.mxu1 %v3685_v60  ;;  %2179 = vmatprep.mubr.bf16.mxu0 %v3687_v61 }
  0x94   : > { %2019 = vmatmul.mubr.bf16.gmra.mxu1 %v3689_v2  ;;  %2180 = vmatmul.mubr.bf16.gmra.mxu0 %v3690_v3  ;;  %v3783_v2 = vld [vmem:[%s3936_s9 + $0xbc] ss:$40 sps:$4 sm:$0xff]  }
  0x95   : > { %2026 = vmatprep.mubr.bf16.mxu1 %v3691_v4  ;;  %2187 = vmatprep.mubr.bf16.mxu0 %v3693_v5  ;;  %v3785_v3 = vld [vmem:[%s3936_s9 + $0xc4] ss:$40 sps:$4 sm:$0xff]  }
  0x9c   : > { %2027 = vmatmul.mubr.bf16.gmra.mxu1 %v3695_v8  ;;  %2188 = vmatmul.mubr.bf16.gmra.mxu0 %v3696_v11 }
  0x9d   : > { %2034 = vmatprep.mubr.bf16.mxu1 %v3701_v12  ;;  %2195 = vmatprep.mubr.bf16.mxu0 %v3703_v13 }
  0xa4   : > { %2035 = vmatmul.mubr.bf16.gmra.mxu1 %v3705_v14  ;;  %2196 = vmatmul.mubr.bf16.gmra.mxu0 %v3706_v15 }
  0xa5   : > { %2042 = vmatprep.mubr.bf16.mxu1 %v3707_v16  ;;  %2203 = vmatprep.mubr.bf16.mxu0 %v3709_v17  ;;  %v3787_v17 = vld [vmem:[%s3936_s9 + $0xb8] ss:$40 sps:$4 sm:$0xff]  }
  0xac   : > { %2043 = vmatmul.mubr.bf16.gmra.mxu1 %v3711_v18  ;;  %2204 = vmatmul.mubr.bf16.gmra.mxu0 %v3712_v19  ;;  %v3788_v18 = vld [vmem:[%s3936_s9 + $0xc0] ss:$40 sps:$4 sm:$0xff]  }
  0xad   : > { %2050 = vmatprep.mubr.bf16.mxu1 %v3717_v20  ;;  %2211 = vmatprep.mubr.bf16.mxu0 %v3719_v21  ;;  %v3789_v20 = vld [vmem:[%s3936_s9 + $0x10c] ss:$40 sps:$4 sm:$0xff]  }
  0xae   : > { %v3791_v21 = vld [vmem:[%s3936_s9 + $0x114] ss:$40 sps:$4 sm:$0xff]  }
  0xb4   : > { %2051 = vmatmul.mubr.bf16.gmra.mxu1 %v3721_v22  ;;  %2212 = vmatmul.mubr.bf16.gmra.mxu0 %v3722_v23 }
  0xb5   : > { %2058 = vmatprep.mubr.bf16.mxu1 %v3723_v24  ;;  %2219 = vmatprep.mubr.bf16.mxu0 %v3725_v25 }
  0xbc   : > { %2059 = vmatmul.mubr.bf16.gmra.mxu1 %v3727_v26  ;;  %2220 = vmatmul.mubr.bf16.gmra.mxu0 %v3728_v27 }
  0xbd   : > { %2066 = vmatprep.mubr.bf16.mxu1 %v3733_v28  ;;  %2227 = vmatprep.mubr.bf16.mxu0 %v3735_v29 }
  0xc4   : > { %2067 = vmatmul.mubr.bf16.gmra.mxu1 %v3737_v30  ;;  %2228 = vmatmul.mubr.bf16.gmra.mxu0 %v3738_v31 }
  0xc5   : > { %2074 = vmatprep.mubr.bf16.mxu1 %v3739_v32  ;;  %2235 = vmatprep.mubr.bf16.mxu0 %v3741_v33 }
  0xcc   : > { %2075 = vmatmul.mubr.bf16.gmra.mxu1 %v3743_v34  ;;  %2236 = vmatmul.mubr.bf16.gmra.mxu0 %v3744_v35  ;;  %v3793_v35 = vld [vmem:[%s3936_s9 + $0x108] ss:$40 sps:$4 sm:$0xff]  }
  0xcd   : > { %2082 = vmatprep.mubr.bf16.mxu1 %v3749_v36  ;;  %2243 = vmatprep.mubr.bf16.mxu0 %v3751_v37  ;;  %v3794_v36 = vld [vmem:[%s3936_s9 + $0x110] ss:$40 sps:$4 sm:$0xff]  }
  0xd4   : > { %2083 = vmatmul.mubr.bf16.gmra.mxu1 %v3753_v38  ;;  %2244 = vmatmul.mubr.bf16.gmra.mxu0 %v3754_v39  ;;  %v3797_v38 = vld [vmem:[%s3936_s9 + $0x15c] ss:$40 sps:$4 sm:$0xff]  }
  0xd5   : > { %2090 = vmatprep.mubr.bf16.mxu1 %v3755_v40  ;;  %2251 = vmatprep.mubr.bf16.mxu0 %v3757_v41  ;;  %v3800_v39 = vld [vmem:[%s3936_s9 + $0x164] ss:$40 sps:$4 sm:$0xff]  }
  0xdc   : > { %2091 = vmatmul.mubr.bf16.gmra.mxu1 %v3759_v42  ;;  %2252 = vmatmul.mubr.bf16.gmra.mxu0 %v3760_v43 }
  0xdd   : > { %2098 = vmatprep.mubr.bf16.mxu1 %v3765_v44  ;;  %2259 = vmatprep.mubr.bf16.mxu0 %v3767_v45 }
  0xe4   : > { %2099 = vmatmul.mubr.bf16.gmra.mxu1 %v3769_v46  ;;  %2260 = vmatmul.mubr.bf16.gmra.mxu0 %v3770_v47 }
  0xe5   : > { %2300 = vmatprep.mubr.bf16.mxu1 %v3773_v48  ;;  %2461 = vmatprep.mubr.bf16.mxu0 %v3776_v49 }
  0xec   : > { %v2978_v54 = vpop.f32.mrf.mxu0  ;;  %v3026_v55 = vpop.f32.mrf.mxu1  ;;  %2301 = vmatmul.mubr.bf16.vlgmr.msra.gmra.mxu1 %v3771_v50  ;;  %2462 = vmatmul.mubr.bf16.vlgmr.msra.gmra.mxu0 %v3774_v51 }
  0xed   : > { %2308 = vmatprep.mubr.bf16.mxu1 %v3777_v52  ;;  %2469 = vmatprep.mubr.bf16.mxu0 %v3779_v53  ;;  %v3795_v53 = vld [vmem:[%s3936_s9 + $0x158] ss:$40 sps:$4 sm:$0xff]  }
  0xee   : > { %v2979_v57 = vpop.f32.mrf.mxu0  ;;  %v3027_v58 = vpop.f32.mrf.mxu1 }
  0xef   : > { %v4258_v59 = vadd.f32 %v2979_v57, %v2978_v54  ;;  %v3028_v60 = vadd.f32 %v3027_v58, %v3026_v55  ;;  %v3798_v54 = vld [vmem:[%s3936_s9 + $0x160] ss:$40 sps:$4 sm:$0xff]   ;;  %v3803_v57 = vld [vmem:[%s3936_s9 + $0x1ac] ss:$40 sps:$4 sm:$0xff]  }
  0xf0   : > { %v2981_v61 = vpop.f32.mrf.mxu0  ;;  %v3029_v62 = vpop.f32.mrf.mxu1  ;;  %v3806_v58 = vld [vmem:[%s3936_s9 + $0x1b4] ss:$40 sps:$4 sm:$0xff]  }
  0xf1   : > { %v4263_v1 = vadd.f32 %v3028_v60, %v4256_v56 }
  0xf2   : > { %v2982_v4 = vpop.f32.mrf.mxu0  ;;  %v3030_v5 = vpop.f32.mrf.mxu1 }
  0xf3   : > { %v4267_v6 = vadd.f32 %v2982_v4, %v2981_v61  ;;  %v3031_v7 = vadd.f32 %v3030_v5, %v3029_v62 }
  0xf4   : > { %v2984_v8 = vpop.f32.mrf.mxu0  ;;  %v3032_v9 = vpop.f32.mrf.mxu1  ;;  %2309 = vmatmul.mubr.bf16.gmra.mxu1 %v3781_v63  ;;  %2470 = vmatmul.mubr.bf16.gmra.mxu0 %v3782_v0 }
  0xf5   : > { %v4270_v10 = vadd.f32 %v3031_v7, %v4256_v56  ;;  %2316 = vmatprep.mubr.bf16.mxu1 %v3783_v2  ;;  %2477 = vmatprep.mubr.bf16.mxu0 %v3785_v3 }
  0xf6   : > { %v2985_v11 = vpop.f32.mrf.mxu0  ;;  %v3033_v12 = vpop.f32.mrf.mxu1 }
  0xf7   : > { %v4272_v13 = vadd.f32 %v2985_v11, %v2984_v8  ;;  %v3034_v14 = vadd.f32 %v3033_v12, %v3032_v9  ;;  %v3801_v12 = vld [vmem:[%s3936_s9 + $0x1a8] ss:$40 sps:$4 sm:$0xff]  }
  0xf8   : > { %v2987_v15 = vpop.f32.mrf.mxu0  ;;  %v3035_v16 = vpop.f32.mrf.mxu1 }
  0xf9   : > { %v4277_v19 = vadd.f32 %v3034_v14, %v4256_v56  ;;  %v3804_v14 = vld [vmem:[%s3936_s9 + $0x1b0] ss:$40 sps:$4 sm:$0xff]  }
  0xfa   : > { %v2988_v22 = vpop.f32.mrf.mxu0  ;;  %v3036_v23 = vpop.f32.mrf.mxu1 }
  0xfb   : > { %v4281_v24 = vadd.f32 %v2988_v22, %v2987_v15  ;;  %v3037_v25 = vadd.f32 %v3036_v23, %v3035_v16  ;;  %v3809_v16 = vld [vmem:[%s3936_s9 + $0x1fc] ss:$40 sps:$4 sm:$0xff]  }
  0xfc   : > { %v2990_v26 = vpop.f32.mrf.mxu0  ;;  %v3038_v27 = vpop.f32.mrf.mxu1  ;;  %2317 = vmatmul.mubr.bf16.gmra.mxu1 %v3787_v17  ;;  %2478 = vmatmul.mubr.bf16.gmra.mxu0 %v3788_v18  ;;  %v3812_v17 = vld [vmem:[%s3936_s9 + $0x204] ss:$40 sps:$4 sm:$0xff]  }
  0xfd   : > { %v4284_v28 = vadd.f32 %v3037_v25, %v4256_v56  ;;  %2324 = vmatprep.mubr.bf16.mxu1 %v3789_v20  ;;  %2485 = vmatprep.mubr.bf16.mxu0 %v3791_v21 }
  0xfe   : > { %v2991_v29 = vpop.f32.mrf.mxu0  ;;  %v3039_v30 = vpop.f32.mrf.mxu1 }
  0xff   : > { %v4286_v31 = vadd.f32 %v2991_v29, %v2990_v26  ;;  %v3040_v32 = vadd.f32 %v3039_v30, %v3038_v27 }
 0x100   : > { %v2993_v33 = vpop.f32.mrf.mxu0  ;;  %v3041_v34 = vpop.f32.mrf.mxu1 }
 0x101   : > { %v4291_v37 = vadd.f32 %v3040_v32, %v4256_v56 }
 0x102   : > { %v2994_v40 = vpop.f32.mrf.mxu0  ;;  %v3042_v41 = vpop.f32.mrf.mxu1 }
 0x103   : > { %v4295_v42 = vadd.f32 %v2994_v40, %v2993_v33  ;;  %v3043_v43 = vadd.f32 %v3042_v41, %v3041_v34  ;;  %v3818_v40 = vld [vmem:[%s3936_s9 + $0x254] ss:$40 sps:$4 sm:$0xff]  }
 0x104   : > { %v2996_v44 = vpop.f32.mrf.mxu0  ;;  %v3044_v45 = vpop.f32.mrf.mxu1  ;;  %2325 = vmatmul.mubr.bf16.gmra.mxu1 %v3793_v35  ;;  %2486 = vmatmul.mubr.bf16.gmra.mxu0 %v3794_v36  ;;  %v3807_v35 = vld [vmem:[%s3936_s9 + $0x1f8] ss:$40 sps:$4 sm:$0xff]  }
 0x105   : > { %v4298_v46 = vadd.f32 %v3043_v43, %v4256_v56  ;;  %2332 = vmatprep.mubr.bf16.mxu1 %v3797_v38  ;;  %2493 = vmatprep.mubr.bf16.mxu0 %v3800_v39  ;;  %v3810_v36 = vld [vmem:[%s3936_s9 + $0x200] ss:$40 sps:$4 sm:$0xff]   ;;  %v3815_v39 = vld [vmem:[%s3936_s9 + $0x24c] ss:$40 sps:$4 sm:$0xff]  }
 0x106   : > { %v2997_v47 = vpop.f32.mrf.mxu0  ;;  %v3045_v48 = vpop.f32.mrf.mxu1 }
 0x107   : > { %v4300_v49 = vadd.f32 %v2997_v47, %v2996_v44  ;;  %v3046_v50 = vadd.f32 %v3045_v48, %v3044_v45 }
 0x108   : > { %v2999_v51 = vpop.f32.mrf.mxu0  ;;  %v3047_v52 = vpop.f32.mrf.mxu1 }
 0x109   : > { %v4305_v55 = vadd.f32 %v3046_v50, %v4256_v56 }
 0x10a   : > { %v3000_v60 = vpop.f32.mrf.mxu0  ;;  %v3048_v61 = vpop.f32.mrf.mxu1 }
 0x10b   : > { %v4309_v62 = vadd.f32 %v3000_v60, %v2999_v51  ;;  %v3049_v63 = vadd.f32 %v3048_v61, %v3047_v52  ;;  %v3813_v60 = vld [vmem:[%s3936_s9 + $0x248] ss:$40 sps:$4 sm:$0xff]  }
 0x10c   : > { %v3002_v0 = vpop.f32.mrf.mxu0  ;;  %v3050_v2 = vpop.f32.mrf.mxu1  ;;  %2333 = vmatmul.mubr.bf16.gmra.mxu1 %v3795_v53  ;;  %2494 = vmatmul.mubr.bf16.gmra.mxu0 %v3798_v54  ;;  %v3816_v61 = vld [vmem:[%s3936_s9 + $0x250] ss:$40 sps:$4 sm:$0xff]  }
 0x10d   : > { %v4312_v3 = vadd.f32 %v3049_v63, %v4256_v56  ;;  %2340 = vmatprep.mubr.bf16.mxu1 %v3803_v57  ;;  %2501 = vmatprep.mubr.bf16.mxu0 %v3806_v58 }
 0x10e   : > { %v3003_v4 = vpop.f32.mrf.mxu0  ;;  %v3051_v5 = vpop.f32.mrf.mxu1 }
 0x10f   : > { %v4314_v7 = vadd.f32 %v3003_v4, %v3002_v0  ;;  %v3052_v8 = vadd.f32 %v3051_v5, %v3050_v2  ;;  %v3821_v0 = vld [vmem:[%s3936_s9 + $0x29c] ss:$40 sps:$4 sm:$0xff]  }
 0x110   : > { %v3005_v9 = vpop.f32.mrf.mxu0  ;;  %v3053_v11 = vpop.f32.mrf.mxu1  ;;  %v3824_v2 = vld [vmem:[%s3936_s9 + $0x2a4] ss:$40 sps:$4 sm:$0xff]  }
 0x111   : > { %v4319_v15 = vadd.f32 %v3052_v8, %v4256_v56 }
 0x112   : > { %v3006_v18 = vpop.f32.mrf.mxu0  ;;  %v3054_v20 = vpop.f32.mrf.mxu1 }
 0x113   : > { %v4323_v21 = vadd.f32 %v3006_v18, %v3005_v9  ;;  %v3055_v22 = vadd.f32 %v3054_v20, %v3053_v11 }
 0x114   : > { %v3008_v23 = vpop.f32.mrf.mxu0  ;;  %v3056_v25 = vpop.f32.mrf.mxu1  ;;  %2341 = vmatmul.mubr.bf16.gmra.mxu1 %v3801_v12  ;;  %2502 = vmatmul.mubr.bf16.gmra.mxu0 %v3804_v14 }
 0x115   : > { %v4326_v26 = vadd.f32 %v3055_v22, %v4256_v56  ;;  %2348 = vmatprep.mubr.bf16.mxu1 %v3809_v16  ;;  %2509 = vmatprep.mubr.bf16.mxu0 %v3812_v17 }
 0x116   : > { %v3009_v27 = vpop.f32.mrf.mxu0  ;;  %v3057_v29 = vpop.f32.mrf.mxu1 }
 0x117   : > { %v4328_v30 = vadd.f32 %v3009_v27, %v3008_v23  ;;  %v3058_v32 = vadd.f32 %v3057_v29, %v3056_v25  ;;  %v3819_v25 = vld [vmem:[%s3936_s9 + $0x298] ss:$40 sps:$4 sm:$0xff]  }
 0x118   : > { %v3011_v33 = vpop.f32.mrf.mxu0  ;;  %v3059_v34 = vpop.f32.mrf.mxu1  ;;  %v3822_v27 = vld [vmem:[%s3936_s9 + $0x2a0] ss:$40 sps:$4 sm:$0xff]  }
 0x119   : > { %v4333_v38 = vadd.f32 %v3058_v32, %v4256_v56  ;;  %v3827_v32 = vld [vmem:[%s3936_s9 + $0x2ec] ss:$40 sps:$4 sm:$0xff]  }
 0x11a   : > { %v3012_v41 = vpop.f32.mrf.mxu0  ;;  %v3060_v43 = vpop.f32.mrf.mxu1 }
 0x11b   : > { %v4337_v44 = vadd.f32 %v3012_v41, %v3011_v33  ;;  %v3061_v45 = vadd.f32 %v3060_v43, %v3059_v34  ;;  %v3830_v33 = vld [vmem:[%s3936_s9 + $0x2f4] ss:$40 sps:$4 sm:$0xff]  }
 0x11c   : > { %v3014_v47 = vpop.f32.mrf.mxu0  ;;  %v3062_v48 = vpop.f32.mrf.mxu1  ;;  %2349 = vmatmul.mubr.bf16.gmra.mxu1 %v3807_v35  ;;  %2510 = vmatmul.mubr.bf16.gmra.mxu0 %v3810_v36 }
 0x11d   : > { %v4340_v50 = vadd.f32 %v3061_v45, %v4256_v56  ;;  %2356 = vmatprep.mubr.bf16.mxu1 %v3815_v39  ;;  %2517 = vmatprep.mubr.bf16.mxu0 %v3818_v40 }
 0x11e   : > { %v3015_v51 = vpop.f32.mrf.mxu0  ;;  %v3063_v52 = vpop.f32.mrf.mxu1 }
 0x11f   : > { %v4342_v53 = vadd.f32 %v3015_v51, %v3014_v47  ;;  %v3064_v54 = vadd.f32 %v3063_v52, %v3062_v48  ;;  %v1820_v48 = vadd.f32 %v4258_v59, %v4256_v56 }
 0x120   : > { %v3017_v57 = vpop.f32.mrf.mxu0  ;;  %v3065_v58 = vpop.f32.mrf.mxu1 }
 0x121   : > { %v4347_v63 = vadd.f32 %v3064_v54, %v4256_v56 }
 0x122   : > { %v3018_v4 = vpop.f32.mrf.mxu0  ;;  %v3066_v5 = vpop.f32.mrf.mxu1 }
 0x123   : > { %v4351_v8 = vadd.f32 %v3018_v4, %v3017_v57  ;;  %v3067_v9 = vadd.f32 %v3066_v5, %v3065_v58  ;;  %v3825_v58 = vld [vmem:[%s3936_s9 + $0x2e8] ss:$40 sps:$4 sm:$0xff]  }
 0x124   : > { %v3020_v11 = vpop.f32.mrf.mxu0  ;;  %v3068_v12 = vpop.f32.mrf.mxu1  ;;  %2357 = vmatmul.mubr.bf16.gmra.mxu1 %v3813_v60  ;;  %2518 = vmatmul.mubr.bf16.gmra.mxu0 %v3816_v61  ;;  %v3828_v60 = vld [vmem:[%s3936_s9 + $0x2f0] ss:$40 sps:$4 sm:$0xff]  }
 0x125   : > { %v4354_v14 = vadd.f32 %v3067_v9, %v4256_v56  ;;  %2364 = vmatprep.mubr.bf16.mxu1 %v3821_v0  ;;  %2525 = vmatprep.mubr.bf16.mxu0 %v3824_v2  ;;  %v3833_v0 = vld [vmem:[%s3936_s9 + $0x33c] ss:$40 sps:$4 sm:$0xff]   ;;  %v1823_v9 = vadd.f32 %v4267_v6, %v4256_v56  ;;  %v1828_v6 = vadd.f32 %v4272_v13, %v4256_v56 }
 0x126   : > { %v3021_v16 = vpop.f32.mrf.mxu0  ;;  %v3069_v17 = vpop.f32.mrf.mxu1  ;;  %v3836_v2 = vld [vmem:[%s3936_s9 + $0x344] ss:$40 sps:$4 sm:$0xff]  }
 0x127   : > { %v4356_v18 = vadd.f32 %v3021_v16, %v3020_v11  ;;  %v3070_v20 = vadd.f32 %v3069_v17, %v3068_v12 }
 0x128   : > { %v3023_v22 = vpop.f32.mrf.mxu0  ;;  %v3071_v23 = vpop.f32.mrf.mxu1 }
 0x129   : > { %v4361_v29 = vadd.f32 %v3070_v20, %v4256_v56 }
 0x12a   : > { %v3024_v34 = vpop.f32.mrf.mxu0  ;;  %v3072_v35 = vpop.f32.mrf.mxu1 }
 0x12b   : > { %v4365_v36 = vadd.f32 %v3024_v34, %v3023_v22  ;;  %v3073_v39 = vadd.f32 %v3072_v35, %v3071_v23  ;;  %v3831_v35 = vld [vmem:[%s3936_s9 + $0x338] ss:$40 sps:$4 sm:$0xff]  }
 0x12c   : > { %v3090_v40 = vpop.f32.mrf.mxu1  ;;  %v3202_v41 = vpop.f32.mrf.mxu0  ;;  %2365 = vmatmul.mubr.bf16.gmra.mxu1 %v3819_v25  ;;  %2526 = vmatmul.mubr.bf16.gmra.mxu0 %v3822_v27 }
 0x12d   : > { %v4368_v43 = vadd.f32 %v3073_v39, %v4256_v56  ;;  %2372 = vmatprep.mubr.bf16.mxu1 %v3827_v32  ;;  %2533 = vmatprep.mubr.bf16.mxu0 %v3830_v33  ;;  %v3834_v39 = vld [vmem:[%s3936_s9 + $0x340] ss:$40 sps:$4 sm:$0xff]  }
 0x12e   : > { %v3091_v45 = vpop.f32.mrf.mxu1  ;;  %v3203_v47 = vpop.f32.mrf.mxu0 }
 0x12f   : > { %v3092_v51 = vadd.f32 %v3091_v45, %v3090_v40  ;;  %v3204_v52 = vadd.f32 %v3203_v47, %v3202_v41  ;;  %v3839_v41 = vld [vmem:[%s3936_s9 + $0x38c] ss:$40 sps:$4 sm:$0xff]  }
 0x130   : > { %v3093_v54 = vpop.f32.mrf.mxu1  ;;  %v3205_v57 = vpop.f32.mrf.mxu0  ;;  %v3842_v45 = vld [vmem:[%s3936_s9 + $0x394] ss:$40 sps:$4 sm:$0xff]  }
 0x131   : > { %v1981_v61 = vadd.f32 %v3092_v51, %v1820_v48  ;;  %v1831_v51 = vadd.f32 %v4281_v24, %v4256_v56  ;;  %v1836_v24 = vadd.f32 %v4286_v31, %v4256_v56 }
 0x132   : > { %v3094_v4 = vpop.f32.mrf.mxu1  ;;  %v3206_v5 = vpop.f32.mrf.mxu0 }
 0x133   : > { %v4378_v11 = vadd.f32 %v3204_v52, %v1981_v61  ;;  %v3095_v12 = vadd.f32 %v3094_v4, %v3093_v54  ;;  %v3207_v16 = vadd.f32 %v3206_v5, %v3205_v57 }
 0x134   : > { %v3096_v59 = vpop.f32.mrf.mxu1  ;;  %v3208_v17 = vpop.f32.mrf.mxu0  ;;  %2373 = vmatmul.mubr.bf16.gmra.mxu1 %v3825_v58  ;;  %2534 = vmatmul.mubr.bf16.gmra.mxu0 %v3828_v60 }
 0x135   : > { %v1984_v20 = vadd.f32 %v3095_v12, %v1823_v9  ;;  %2380 = vmatprep.mubr.bf16.mxu1 %v3833_v0  ;;  %2541 = vmatprep.mubr.bf16.mxu0 %v3836_v2 }
 0x136   : > { %v3097_v22 = vpop.f32.mrf.mxu1  ;;  %v3209_v23 = vpop.f32.mrf.mxu0 }
 0x137   : > { %v4382_v25 = vadd.f32 %v3207_v16, %v1984_v20  ;;  %v3098_v27 = vadd.f32 %v3097_v22, %v3096_v59  ;;  %v3210_v32 = vadd.f32 %v3209_v23, %v3208_v17  ;;  %v3837_v16 = vld [vmem:[%s3936_s9 + $0x388] ss:$40 sps:$4 sm:$0xff]   ;;  %v3845_v20 = vld [vmem:[%s3936_s9 + $0x3dc] ss:$40 sps:$4 sm:$0xff]  }
 0x138   : > { %v3099_v33 = vpop.f32.mrf.mxu1  ;;  %v3211_v34 = vpop.f32.mrf.mxu0  ;;  %v3840_v59 = vld [vmem:[%s3936_s9 + $0x390] ss:$40 sps:$4 sm:$0xff]   ;;  %v3848_v22 = vld [vmem:[%s3936_s9 + $0x3e4] ss:$40 sps:$4 sm:$0xff]  }
 0x139   : > { %v1989_v40 = vadd.f32 %v3098_v27, %v1828_v6  ;;  %v1839_v27 = vadd.f32 %v4295_v42, %v4256_v56  ;;  %v1844_v42 = vadd.f32 %v4300_v49, %v4256_v56 }
 0x13a   : > { %v3100_v47 = vpop.f32.mrf.mxu1  ;;  %v3212_v48 = vpop.f32.mrf.mxu0 }
 0x13b   : > { %v4390_v52 = vadd.f32 %v3210_v32, %v1989_v40  ;;  %v3101_v54 = vadd.f32 %v3100_v47, %v3099_v33  ;;  %v3213_v13 = vadd.f32 %v3212_v48, %v3211_v34 }
 0x13c   : > { %v3102_v57 = vpop.f32.mrf.mxu1  ;;  %v3214_v58 = vpop.f32.mrf.mxu0  ;;  %2381 = vmatmul.mubr.bf16.gmra.mxu1 %v3831_v35  ;;  %2542 = vmatmul.mubr.bf16.gmra.mxu0 %v3834_v39 }
 0x13d   : > { %v1992_v60 = vadd.f32 %v3101_v54, %v1831_v51  ;;  %2388 = vmatprep.mubr.bf16.mxu1 %v3839_v41  ;;  %2549 = vmatprep.mubr.bf16.mxu0 %v3842_v45 }
 0x13e   : > { %v3103_v61 = vpop.f32.mrf.mxu1  ;;  %v3215_v0 = vpop.f32.mrf.mxu0 }
 0x13f   : > { %v4394_v2 = vadd.f32 %v3213_v13, %v1992_v60  ;;  %v3104_v4 = vadd.f32 %v3103_v61, %v3102_v57  ;;  %v3216_v5 = vadd.f32 %v3215_v0, %v3214_v58  ;;  %v3843_v13 = vld [vmem:[%s3936_s9 + $0x3d8] ss:$40 sps:$4 sm:$0xff]   ;;  %v3851_v60 = vld [vmem:[%s3936_s9 + $0x42c] ss:$40 sps:$4 sm:$0xff]  }
 0x140   : > { %v3105_v9 = vpop.f32.mrf.mxu1  ;;  %v3217_v12 = vpop.f32.mrf.mxu0  ;;  %v3846_v57 = vld [vmem:[%s3936_s9 + $0x3e0] ss:$40 sps:$4 sm:$0xff]   ;;  %v3854_v61 = vld [vmem:[%s3936_s9 + $0x434] ss:$40 sps:$4 sm:$0xff]  }
 0x141   : > { %v1997_v17 = vadd.f32 %v3104_v4, %v1836_v24  ;;  %v1847_v4 = vadd.f32 %v4309_v62, %v4256_v56  ;;  %v1852_v62 = vadd.f32 %v4314_v7, %v4256_v56 }
 0x142   : > { %v3106_v23 = vpop.f32.mrf.mxu1  ;;  %v3218_v6 = vpop.f32.mrf.mxu0 }
 0x143   : > { %v4402_v32 = vadd.f32 %v3216_v5, %v1997_v17  ;;  %v3107_v33 = vadd.f32 %v3106_v23, %v3105_v9  ;;  %v3219_v31 = vadd.f32 %v3218_v6, %v3217_v12 }
 0x144   : > { %v3108_v34 = vpop.f32.mrf.mxu1  ;;  %v3220_v35 = vpop.f32.mrf.mxu0  ;;  %2389 = vmatmul.mubr.bf16.gmra.mxu1 %v3837_v16  ;;  %2550 = vmatmul.mubr.bf16.gmra.mxu0 %v3840_v59 }
 0x145   : > { %v2000_v39 = vadd.f32 %v3107_v33, %v1839_v27  ;;  %2396 = vmatprep.mubr.bf16.mxu1 %v3845_v20  ;;  %2557 = vmatprep.mubr.bf16.mxu0 %v3848_v22 }
 0x146   : > { %v3109_v40 = vpop.f32.mrf.mxu1  ;;  %v3221_v41 = vpop.f32.mrf.mxu0 }
 0x147   : > { %v4406_v45 = vadd.f32 %v3219_v31, %v2000_v39  ;;  %v3110_v47 = vadd.f32 %v3109_v40, %v3108_v34  ;;  %v3222_v48 = vadd.f32 %v3221_v41, %v3220_v35  ;;  %v3849_v31 = vld [vmem:[%s3936_s9 + $0x428] ss:$40 sps:$4 sm:$0xff]   ;;  %v3857_v39 = vld [vmem:[%s3936_s9 + $0x47c] ss:$40 sps:$4 sm:$0xff]  }
 0x148   : > { %v3111_v51 = vpop.f32.mrf.mxu1  ;;  %v3223_v54 = vpop.f32.mrf.mxu0  ;;  %v3852_v34 = vld [vmem:[%s3936_s9 + $0x430] ss:$40 sps:$4 sm:$0xff]   ;;  %v3860_v40 = vld [vmem:[%s3936_s9 + $0x484] ss:$40 sps:$4 sm:$0xff]  }
 0x149   : > { %v2005_v58 = vadd.f32 %v3110_v47, %v1844_v42  ;;  %v1855_v47 = vadd.f32 %v4323_v21, %v4256_v56  ;;  %v1860_v21 = vadd.f32 %v4328_v30, %v4256_v56 }
 0x14a   : > { %v3112_v0 = vpop.f32.mrf.mxu1  ;;  %v3224_v24 = vpop.f32.mrf.mxu0 }
 0x14b   : > { %v4414_v5 = vadd.f32 %v3222_v48, %v2005_v58  ;;  %v3113_v9 = vadd.f32 %v3112_v0, %v3111_v51  ;;  %v3225_v49 = vadd.f32 %v3224_v24, %v3223_v54 }
 0x14c   : > { %v3114_v12 = vpop.f32.mrf.mxu1  ;;  %v3226_v16 = vpop.f32.mrf.mxu0  ;;  %2397 = vmatmul.mubr.bf16.gmra.mxu1 %v3843_v13  ;;  %2558 = vmatmul.mubr.bf16.gmra.mxu0 %v3846_v57 }
 0x14d   : > { %v2008_v59 = vadd.f32 %v3113_v9, %v1847_v4  ;;  %2404 = vmatprep.mubr.bf16.mxu1 %v3851_v60  ;;  %2565 = vmatprep.mubr.bf16.mxu0 %v3854_v61 }
 0x14e   : > { %v3115_v17 = vpop.f32.mrf.mxu1  ;;  %v3227_v20 = vpop.f32.mrf.mxu0 }
 0x14f   : > { %v4418_v22 = vadd.f32 %v3225_v49, %v2008_v59  ;;  %v3116_v23 = vadd.f32 %v3115_v17, %v3114_v12  ;;  %v3228_v6 = vadd.f32 %v3227_v20, %v3226_v16  ;;  %v3855_v49 = vld [vmem:[%s3936_s9 + $0x478] ss:$40 sps:$4 sm:$0xff]   ;;  %v3863_v59 = vld [vmem:[%s3936_s9 + $0x4cc] ss:$40 sps:$4 sm:$0xff]  }
 0x150   : > { %v3117_v27 = vpop.f32.mrf.mxu1  ;;  %v3229_v33 = vpop.f32.mrf.mxu0  ;;  %v3858_v12 = vld [vmem:[%s3936_s9 + $0x480] ss:$40 sps:$4 sm:$0xff]   ;;  %v3866_v17 = vld [vmem:[%s3936_s9 + $0x4d4] ss:$40 sps:$4 sm:$0xff]  }
 0x151   : > { %v2013_v35 = vadd.f32 %v3116_v23, %v1852_v62  ;;  %v1863_v23 = vadd.f32 %v4337_v44, %v4256_v56 }
 0x152   : > { %v3118_v41 = vpop.f32.mrf.mxu1  ;;  %v3230_v42 = vpop.f32.mrf.mxu0 }
 0x153   : > { %v4426_v48 = vadd.f32 %v3228_v6, %v2013_v35  ;;  %v3119_v51 = vadd.f32 %v3118_v41, %v3117_v27  ;;  %v3231_v7 = vadd.f32 %v3230_v42, %v3229_v33 }
 0x154   : > { %v3120_v54 = vpop.f32.mrf.mxu1  ;;  %v3232_v13 = vpop.f32.mrf.mxu0  ;;  %2405 = vmatmul.mubr.bf16.gmra.mxu1 %v3849_v31  ;;  %2566 = vmatmul.mubr.bf16.gmra.mxu0 %v3852_v34 }
 0x155   : > { %v2016_v57 = vadd.f32 %v3119_v51, %v1855_v47  ;;  %2412 = vmatprep.mubr.bf16.mxu1 %v3857_v39  ;;  %2573 = vmatprep.mubr.bf16.mxu0 %v3860_v40  ;;  %v1868_v40 = vadd.f32 %v4342_v53, %v4256_v56 }
 0x156   : > { %v3121_v58 = vpop.f32.mrf.mxu1  ;;  %v3233_v60 = vpop.f32.mrf.mxu0 }
 0x157   : > { %v4430_v61 = vadd.f32 %v3231_v7, %v2016_v57  ;;  %v3122_v0 = vadd.f32 %v3121_v58, %v3120_v54  ;;  %v3234_v24 = vadd.f32 %v3233_v60, %v3232_v13  ;;  %v3861_v7 = vld [vmem:[%s3936_s9 + $0x4c8] ss:$40 sps:$4 sm:$0xff]   ;;  %v1871_v60 = vadd.f32 %v4351_v8, %v4256_v56 }
 0x158   : > { %v3123_v4 = vpop.f32.mrf.mxu1  ;;  %v3235_v9 = vpop.f32.mrf.mxu0  ;;  %v3864_v54 = vld [vmem:[%s3936_s9 + $0x4d0] ss:$40 sps:$4 sm:$0xff]   ;;  %s2718_s9 = sshll.u32 %s4586_s16, 3 }
 0x159   : > { %v2021_v16 = vadd.f32 %v3122_v0, %v1860_v21  ;;  %s4513_s13 = scalar_lea.vmem %s4584_s3, %s2718_s9 }
 0x15a   : > { %v3124_v20 = vpop.f32.mrf.mxu1  ;;  %v3236_v62 = vpop.f32.mrf.mxu0 }
 0x15b   : > { %v4438_v6 = vadd.f32 %v3234_v24, %v2021_v16  ;;  %v3125_v27 = vadd.f32 %v3124_v20, %v3123_v4  ;;  %v3237_v30 = vadd.f32 %v3236_v62, %v3235_v9  ;;  %v1876_v16 = vadd.f32 %v4356_v18, %v4256_v56 }
 0x15c   : > { %v3126_v33 = vpop.f32.mrf.mxu1  ;;  %v3238_v31 = vpop.f32.mrf.mxu0  ;;  %2413 = vmatmul.mubr.bf16.gmra.mxu1 %v3855_v49  ;;  %2574 = vmatmul.mubr.bf16.gmra.mxu0 %v3858_v12 }
 0x15d   : > { %v2024_v34 = vadd.f32 %v3125_v27, %v1863_v23  ;;  %2420 = vmatprep.mubr.bf16.mxu1 %v3863_v59  ;;  %2581 = vmatprep.mubr.bf16.mxu0 %v3866_v17 }
 0x15e   : > { %v3127_v35 = vpop.f32.mrf.mxu1  ;;  %v3239_v39 = vpop.f32.mrf.mxu0 }
 0x15f   : > { %v4442_v41 = vadd.f32 %v3237_v30, %v2024_v34  ;;  %v3128_v44 = vadd.f32 %v3127_v35, %v3126_v33  ;;  %v3240_v42 = vadd.f32 %v3239_v39, %v3238_v31  ;;  %v1879_v33 = vadd.f32 %v4365_v36, %v4256_v56 }
 0x160   : > { %v3129_v47 = vpop.f32.mrf.mxu1  ;;  %v3241_v51 = vpop.f32.mrf.mxu0 }
 0x161   : > { %v2029_v13 = vadd.f32 %v3128_v44, %v1868_v40 }
 0x162   : > { %v3130_v57 = vpop.f32.mrf.mxu1  ;;  %v3242_v58 = vpop.f32.mrf.mxu0 }
 0x163   : > { %v4448_v21 = vadd.f32 %v3240_v42, %v2029_v13  ;;  %v3131_v0 = vadd.f32 %v3130_v57, %v3129_v47  ;;  %v3243_v24 = vadd.f32 %v3242_v58, %v3241_v51 }
 0x164   : > { %v3132_v4 = vpop.f32.mrf.mxu1  ;;  %v3244_v53 = vpop.f32.mrf.mxu0  ;;  %2421 = vmatmul.mubr.bf16.gmra.mxu1 %v3861_v7  ;;  %2582 = vmatmul.mubr.bf16.gmra.mxu0 %v3864_v54 }
 0x165   : > { %v2032_v9 = vadd.f32 %v3131_v0, %v1871_v60 }
 0x166   : > { %v3133_v49 = vpop.f32.mrf.mxu1  ;;  %v3245_v12 = vpop.f32.mrf.mxu0 }
 0x167   : > { %v4452_v59 = vadd.f32 %v3243_v24, %v2032_v9  ;;  %v3134_v17 = vadd.f32 %v3133_v49, %v3132_v4  ;;  %v3246_v20 = vadd.f32 %v3245_v12, %v3244_v53 }
 0x168   : > { %v3135_v62 = vpop.f32.mrf.mxu1  ;;  %v3247_v8 = vpop.f32.mrf.mxu0 }
 0x169   : > { %v2037_v23 = vadd.f32 %v3134_v17, %v1876_v16 }
 0x16a   : > { %v3136_v27 = vpop.f32.mrf.mxu1  ;;  %v3248_v30 = vpop.f32.mrf.mxu0 }
 0x16b   : > { %v4456_v31 = vadd.f32 %v3246_v20, %v2037_v23  ;;  %v3137_v34 = vadd.f32 %v3136_v27, %v3135_v62  ;;  %v3249_v35 = vadd.f32 %v3248_v30, %v3247_v8 }
 0x16c   : > { %v3138_v39 = vpop.f32.mrf.mxu1  ;;  %v3250_v40 = vpop.f32.mrf.mxu0 }
 0x16d   : > { %v2040_v44 = vadd.f32 %v3137_v34, %v1879_v33 }
 0x16e   : > { %v3139_v18 = vpop.f32.mrf.mxu1  ;;  %v3251_v42 = vpop.f32.mrf.mxu0 }
 0x16f   : > { %v4458_v47 = vadd.f32 %v3249_v35, %v2040_v44  ;;  %v3140_v51 = vadd.f32 %v3139_v18, %v3138_v39  ;;  %v3252_v7 = vadd.f32 %v3251_v42, %v3250_v40 }
 0x170   : > { %v3141_v54 = vpop.f32.mrf.mxu1  ;;  %v3253_v13 = vpop.f32.mrf.mxu0 }
 0x171   : > { %v2045_v57 = vadd.f32 %v3140_v51, %v4263_v1 }
 0x172   : > { %v3142_v58 = vpop.f32.mrf.mxu1  ;;  %v3254_v60 = vpop.f32.mrf.mxu0 }
 0x173   : > { %v4461_v56 = vadd.f32 %v3252_v7, %v2045_v57  ;;  %v3143_v36 = vadd.f32 %v3142_v58, %v3141_v54  ;;  %v3255_v0 = vadd.f32 %v3254_v60, %v3253_v13 }
 0x174   : > { %v3144_v24 = vpop.f32.mrf.mxu1  ;;  %v3256_v4 = vpop.f32.mrf.mxu0 }
 0x175   : > { %v2048_v53 = vadd.f32 %v3143_v36, %v4270_v10 }
 0x176   : > { %v3145_v9 = vpop.f32.mrf.mxu1  ;;  %v3257_v49 = vpop.f32.mrf.mxu0 }
 0x177   : > { %v4464_v12 = vadd.f32 %v3255_v0, %v2048_v53  ;;  %v3146_v16 = vadd.f32 %v3145_v9, %v3144_v24  ;;  %v3258_v17 = vadd.f32 %v3257_v49, %v3256_v4 }
 0x178   : > { %v3147_v20 = vpop.f32.mrf.mxu1  ;;  %v3259_v62 = vpop.f32.mrf.mxu0 }
 0x179   : > { %v2053_v1 = vadd.f32 %v3146_v16, %v4277_v19 }
 0x17a   : > { %v3148_v8 = vpop.f32.mrf.mxu1  ;;  %v3260_v23 = vpop.f32.mrf.mxu0 }
 0x17b   : > { %v4467_v27 = vadd.f32 %v3258_v17, %v2053_v1  ;;  %v3149_v30 = vadd.f32 %v3148_v8, %v3147_v20  ;;  %v3261_v33 = vadd.f32 %v3260_v23, %v3259_v62 }
 0x17c   : > { %v3150_v34 = vpop.f32.mrf.mxu1  ;;  %v3262_v35 = vpop.f32.mrf.mxu0 }
 0x17d   : > { %v2056_v10 = vadd.f32 %v3149_v30, %v4284_v28 }
 0x17e   : > { %v3151_v39 = vpop.f32.mrf.mxu1  ;;  %v3263_v40 = vpop.f32.mrf.mxu0 }
 0x17f   : > { %v4470_v44 = vadd.f32 %v3261_v33, %v2056_v10  ;;  %v3152_v18 = vadd.f32 %v3151_v39, %v3150_v34  ;;  %v3264_v42 = vadd.f32 %v3263_v40, %v3262_v35 }
 0x180   : > { %v3153_v51 = vpop.f32.mrf.mxu1  ;;  %v3265_v7 = vpop.f32.mrf.mxu0 }
 0x181   : > { %v2061_v19 = vadd.f32 %v3152_v18, %v4291_v37 }
 0x182   : > { %v3154_v54 = vpop.f32.mrf.mxu1  ;;  %v3266_v13 = vpop.f32.mrf.mxu0 }
 0x183   : > { %v4473_v57 = vadd.f32 %v3264_v42, %v2061_v19  ;;  %v3155_v58 = vadd.f32 %v3154_v54, %v3153_v51  ;;  %v3267_v60 = vadd.f32 %v3266_v13, %v3265_v7 }
 0x184   : > { %v3156_v36 = vpop.f32.mrf.mxu1  ;;  %v3268_v0 = vpop.f32.mrf.mxu0 }
 0x185   : > { %v2064_v28 = vadd.f32 %v3155_v58, %v4298_v46 }
 0x186   : > { %v3157_v24 = vpop.f32.mrf.mxu1  ;;  %v3269_v4 = vpop.f32.mrf.mxu0 }
 0x187   : > { %v4476_v53 = vadd.f32 %v3267_v60, %v2064_v28  ;;  %v3158_v9 = vadd.f32 %v3157_v24, %v3156_v36  ;;  %v3270_v49 = vadd.f32 %v3269_v4, %v3268_v0 }
 0x188   : > { %v3159_v16 = vpop.f32.mrf.mxu1  ;;  %v3271_v17 = vpop.f32.mrf.mxu0 }
 0x189   : > { %v2069_v37 = vadd.f32 %v3158_v9, %v4305_v55 }
 0x18a   : > { %v3160_v20 = vpop.f32.mrf.mxu1  ;;  %v3272_v62 = vpop.f32.mrf.mxu0 }
 0x18b   : > { %v4479_v1 = vadd.f32 %v3270_v49, %v2069_v37  ;;  %v3161_v8 = vadd.f32 %v3160_v20, %v3159_v16  ;;  %v3273_v23 = vadd.f32 %v3272_v62, %v3271_v17 }
 0x18c   : > { %v3162_v30 = vpop.f32.mrf.mxu1  ;;  %v3274_v33 = vpop.f32.mrf.mxu0 }
 0x18d   : > { %v2072_v46 = vadd.f32 %v3161_v8, %v4312_v3 }
 0x18e   : > { %v3163_v34 = vpop.f32.mrf.mxu1  ;;  %v3275_v35 = vpop.f32.mrf.mxu0 }
 0x18f   : > { %v4482_v10 = vadd.f32 %v3273_v23, %v2072_v46  ;;  %v3164_v39 = vadd.f32 %v3163_v34, %v3162_v30  ;;  %v3276_v40 = vadd.f32 %v3275_v35, %v3274_v33 }
 0x190   : > { %v3165_v18 = vpop.f32.mrf.mxu1  ;;  %v3277_v42 = vpop.f32.mrf.mxu0 }
 0x191   : > { %v2077_v55 = vadd.f32 %v3164_v39, %v4319_v15 }
 0x192   : > { %v3166_v51 = vpop.f32.mrf.mxu1  ;;  %v3278_v7 = vpop.f32.mrf.mxu0 }
 0x193   : > { %v4485_v19 = vadd.f32 %v3276_v40, %v2077_v55  ;;  %v3167_v54 = vadd.f32 %v3166_v51, %v3165_v18  ;;  %v3279_v13 = vadd.f32 %v3278_v7, %v3277_v42 }
 0x194   : > { %v3168_v58 = vpop.f32.mrf.mxu1  ;;  %v3280_v60 = vpop.f32.mrf.mxu0 }
 0x195   : > { %v2080_v3 = vadd.f32 %v3167_v54, %v4326_v26 }
 0x196   : > { %v3169_v36 = vpop.f32.mrf.mxu1  ;;  %v3281_v0 = vpop.f32.mrf.mxu0 }
 0x197   : > { %v4488_v28 = vadd.f32 %v3279_v13, %v2080_v3  ;;  %v3170_v24 = vadd.f32 %v3169_v36, %v3168_v58  ;;  %v3282_v4 = vadd.f32 %v3281_v0, %v3280_v60 }
 0x198   : > { %v3171_v9 = vpop.f32.mrf.mxu1  ;;  %v3283_v49 = vpop.f32.mrf.mxu0 }
 0x199   : > { %v2085_v15 = vadd.f32 %v3170_v24, %v4333_v38 }
 0x19a   : > { %v3172_v16 = vpop.f32.mrf.mxu1  ;;  %v3284_v17 = vpop.f32.mrf.mxu0 }
 0x19b   : > { %v4491_v37 = vadd.f32 %v3282_v4, %v2085_v15  ;;  %v3173_v20 = vadd.f32 %v3172_v16, %v3171_v9  ;;  %v3285_v62 = vadd.f32 %v3284_v17, %v3283_v49 }
 0x19c   : > { %v3174_v8 = vpop.f32.mrf.mxu1  ;;  %v3286_v23 = vpop.f32.mrf.mxu0 }
 0x19d   : > { %v2088_v26 = vadd.f32 %v3173_v20, %v4340_v50 }
 0x19e   : > { %v3175_v30 = vpop.f32.mrf.mxu1  ;;  %v3287_v33 = vpop.f32.mrf.mxu0 }
 0x19f   : > { %v4494_v46 = vadd.f32 %v3285_v62, %v2088_v26  ;;  %v3176_v34 = vadd.f32 %v3175_v30, %v3174_v8  ;;  %v3288_v35 = vadd.f32 %v3287_v33, %v3286_v23 }
 0x1a0   : > { %v3177_v39 = vpop.f32.mrf.mxu1  ;;  %v3289_v40 = vpop.f32.mrf.mxu0 }
 0x1a1   : > { %v2093_v38 = vadd.f32 %v3176_v34, %v4347_v63 }
 0x1a2   : > { %v3178_v18 = vpop.f32.mrf.mxu1  ;;  %v3290_v42 = vpop.f32.mrf.mxu0 }
 0x1a3   : > { %v4497_v55 = vadd.f32 %v3288_v35, %v2093_v38  ;;  %v3179_v51 = vadd.f32 %v3178_v18, %v3177_v39  ;;  %v3291_v7 = vadd.f32 %v3290_v42, %v3289_v40 }
 0x1a4   : > { %v3180_v54 = vpop.f32.mrf.mxu1  ;;  %v3292_v13 = vpop.f32.mrf.mxu0 }
 0x1a5   : > { %v2096_v50 = vadd.f32 %v3179_v51, %v4354_v14 }
 0x1a6   : > { %v3181_v58 = vpop.f32.mrf.mxu1  ;;  %v3293_v60 = vpop.f32.mrf.mxu0 }
 0x1a7   : > { %v4500_v3 = vadd.f32 %v3291_v7, %v2096_v50  ;;  %v3182_v36 = vadd.f32 %v3181_v58, %v3180_v54  ;;  %v3294_v0 = vadd.f32 %v3293_v60, %v3292_v13 }
 0x1a8   : > { %v3183_v24 = vpop.f32.mrf.mxu1  ;;  %v3295_v4 = vpop.f32.mrf.mxu0 }
 0x1a9   : > { %v2101_v63 = vadd.f32 %v3182_v36, %v4361_v29 }
 0x1aa   : > { %v3184_v9 = vpop.f32.mrf.mxu1  ;;  %v3296_v49 = vpop.f32.mrf.mxu0 }
 0x1ab   : > { %v4503_v15 = vadd.f32 %v3294_v0, %v2101_v63  ;;  %v3185_v16 = vadd.f32 %v3184_v9, %v3183_v24  ;;  %v3297_v17 = vadd.f32 %v3296_v49, %v3295_v4 }
 0x1ac   : > { %v3314_v20 = vpop.f32.mrf.mxu1  ;;  %v3426_v62 = vpop.f32.mrf.mxu0 }
 0x1ad   : > { %v2104_v14 = vadd.f32 %v3185_v16, %v4368_v43 }
 0x1ae   : > { %v3315_v8 = vpop.f32.mrf.mxu1  ;;  %v3427_v23 = vpop.f32.mrf.mxu0 }
 0x1af   : > { %v4506_v26 = vadd.f32 %v3297_v17, %v2104_v14  ;;  %v3316_v30 = vadd.f32 %v3315_v8, %v3314_v20  ;;  %v3428_v35 = vadd.f32 %v3427_v23, %v3426_v62 }
 0x1b0   : > { %v3317_v33 = vpop.f32.mrf.mxu1  ;;  %v3429_v34 = vpop.f32.mrf.mxu0 }
 0x1b1   : > { %v2303_v29 = vadd.f32 %v3316_v30, %v4378_v11 }
 0x1b2   : > { %v3318_v39 = vpop.f32.mrf.mxu1  ;;  %v3430_v40 = vpop.f32.mrf.mxu0 }
 0x1b3   : > { %v2464_v38 = vadd.f32 %v3428_v35, %v2303_v29  ;;  %v3319_v18 = vadd.f32 %v3318_v39, %v3317_v33  ;;  %v3431_v54 = vadd.f32 %v3430_v40, %v3429_v34 }
 0x1b4   : > { %v3320_v43 = vpop.f32.mrf.mxu1  ;;  %v3432_v42 = vpop.f32.mrf.mxu0 }
 0x1b5   : > { %v2590_v51 = vmax.f32 %v2464_v38, 0.0  ;;  %v2306_v7 = vadd.f32 %v3319_v18, %v4382_v25 }
 0x1b6   : > { %v3321_v11 = vpop.f32.mrf.mxu1  ;;  %v3433_v13 = vpop.f32.mrf.mxu0 }
 0x1b7   : > { %2622 = vst [vmem:[%s4513_s13] sm:$0xff] %v2590_v51  ;;  %v2467_v50 = vadd.f32 %v3431_v54, %v2306_v7  ;;  %v3322_v58 = vadd.f32 %v3321_v11, %v3320_v43  ;;  %v3434_v4 = vadd.f32 %v3433_v13, %v3432_v42 }
 0x1b8   : > { %v3323_v60 = vpop.f32.mrf.mxu1  ;;  %v3435_v36 = vpop.f32.mrf.mxu0 }
 0x1b9   : > { %v2591_v0 = vmax.f32 %v2467_v50, 0.0  ;;  %v2311_v24 = vadd.f32 %v3322_v58, %v4390_v52 }
 0x1ba   : > { %v3324_v63 = vpop.f32.mrf.mxu1  ;;  %v3436_v9 = vpop.f32.mrf.mxu0 }
 0x1bb   : > { %2623 = vst [vmem:[%s4513_s13 + $0x8] sm:$0xff] %v2591_v0  ;;  %v2472_v49 = vadd.f32 %v3434_v4, %v2311_v24  ;;  %v3325_v16 = vadd.f32 %v3324_v63, %v3323_v60  ;;  %v3437_v14 = vadd.f32 %v3436_v9, %v3435_v36 }
 0x1bc   : > { %v3326_v17 = vpop.f32.mrf.mxu1  ;;  %v3438_v25 = vpop.f32.mrf.mxu0 }
 0x1bd   : > { %v2592_v20 = vmax.f32 %v2472_v49, 0.0  ;;  %v2314_v62 = vadd.f32 %v3325_v16, %v4394_v2 }
 0x1be   : > { %v3327_v8 = vpop.f32.mrf.mxu1  ;;  %v3439_v23 = vpop.f32.mrf.mxu0 }
 0x1bf   : > { %2624 = vst [vmem:[%s4513_s13 + $0x10] sm:$0xff] %v2592_v20  ;;  %v2475_v30 = vadd.f32 %v3437_v14, %v2314_v62  ;;  %v3328_v33 = vadd.f32 %v3327_v8, %v3326_v17  ;;  %v3440_v39 = vadd.f32 %v3439_v23, %v3438_v25 }
 0x1c0   : > { %v3329_v34 = vpop.f32.mrf.mxu1  ;;  %v3441_v52 = vpop.f32.mrf.mxu0 }
 0x1c1   : > { %v2593_v29 = vmax.f32 %v2475_v30, 0.0  ;;  %v2319_v35 = vadd.f32 %v3328_v33, %v4402_v32 }
 0x1c2   : > { %v3330_v40 = vpop.f32.mrf.mxu1  ;;  %v3442_v38 = vpop.f32.mrf.mxu0 }
 0x1c3   : > { %2625 = vst [vmem:[%s4513_s13 + $0x18] sm:$0xff] %v2593_v29  ;;  %v2480_v18 = vadd.f32 %v3440_v39, %v2319_v35  ;;  %v3331_v43 = vadd.f32 %v3330_v40, %v3329_v34  ;;  %v3443_v54 = vadd.f32 %v3442_v38, %v3441_v52 }
 0x1c4   : > { %v3332_v42 = vpop.f32.mrf.mxu1  ;;  %v3444_v2 = vpop.f32.mrf.mxu0 }
 0x1c5   : > { %v2594_v51 = vmax.f32 %v2480_v18, 0.0  ;;  %v2322_v7 = vadd.f32 %v3331_v43, %v4406_v45 }
 0x1c6   : > { %v3333_v11 = vpop.f32.mrf.mxu1  ;;  %v3445_v13 = vpop.f32.mrf.mxu0 }
 0x1c7   : > { %2626 = vst [vmem:[%s4513_s13 + $0x20] sm:$0xff] %v2594_v51  ;;  %v2483_v50 = vadd.f32 %v3443_v54, %v2322_v7  ;;  %v3334_v58 = vadd.f32 %v3333_v11, %v3332_v42  ;;  %v3446_v24 = vadd.f32 %v3445_v13, %v3444_v2 }
 0x1c8   : > { %v3335_v60 = vpop.f32.mrf.mxu1  ;;  %v3447_v32 = vpop.f32.mrf.mxu0 }
 0x1c9   : > { %v2595_v36 = vmax.f32 %v2483_v50, 0.0  ;;  %v2327_v0 = vadd.f32 %v3334_v58, %v4414_v5 }
 0x1ca   : > { %v3336_v4 = vpop.f32.mrf.mxu1  ;;  %v3448_v63 = vpop.f32.mrf.mxu0 }
 0x1cb   : > { %2627 = vst [vmem:[%s4513_s13 + $0x28] sm:$0xff] %v2595_v36  ;;  %v2488_v9 = vadd.f32 %v3446_v24, %v2327_v0  ;;  %v3337_v49 = vadd.f32 %v3336_v4, %v3335_v60  ;;  %v3449_v20 = vadd.f32 %v3448_v63, %v3447_v32 }
 0x1cc   : > { %v3338_v16 = vpop.f32.mrf.mxu1  ;;  %v3450_v45 = vpop.f32.mrf.mxu0 }
 0x1cd   : > { %v2596_v17 = vmax.f32 %v2488_v9, 0.0  ;;  %v2330_v25 = vadd.f32 %v3337_v49, %v4418_v22 }
 0x1ce   : > { %v3339_v62 = vpop.f32.mrf.mxu1  ;;  %v3451_v14 = vpop.f32.mrf.mxu0 }
 0x1cf   : > { %2628 = vst [vmem:[%s4513_s13 + $0x30] sm:$0xff] %v2596_v17  ;;  %v2491_v8 = vadd.f32 %v3449_v20, %v2330_v25  ;;  %v3340_v23 = vadd.f32 %v3339_v62, %v3338_v16  ;;  %v3452_v52 = vadd.f32 %v3451_v14, %v3450_v45 }
 0x1d0   : > { %v3341_v30 = vpop.f32.mrf.mxu1  ;;  %v3453_v5 = vpop.f32.mrf.mxu0 }
 0x1d1   : > { %v2597_v33 = vmax.f32 %v2491_v8, 0.0  ;;  %v2335_v34 = vadd.f32 %v3340_v23, %v4426_v48 }
 0x1d2   : > { %v3342_v29 = vpop.f32.mrf.mxu1  ;;  %v3454_v35 = vpop.f32.mrf.mxu0 }
 0x1d3   : > { %2629 = vst [vmem:[%s4513_s13 + $0x38] sm:$0xff] %v2597_v33  ;;  %v2496_v39 = vadd.f32 %v3452_v52, %v2335_v34  ;;  %v3343_v40 = vadd.f32 %v3342_v29, %v3341_v30  ;;  %v3455_v42 = vadd.f32 %v3454_v35, %v3453_v5 }
 0x1d4   : > { %v3344_v38 = vpop.f32.mrf.mxu1  ;;  %v3456_v22 = vpop.f32.mrf.mxu0 }
 0x1d5   : > { %v2598_v18 = vmax.f32 %v2496_v39, 0.0  ;;  %v2338_v43 = vadd.f32 %v3343_v40, %v4430_v61 }
 0x1d6   : > { %v3345_v2 = vpop.f32.mrf.mxu1  ;;  %v3457_v51 = vpop.f32.mrf.mxu0 }
 0x1d7   : > { %2630 = vst [vmem:[%s4513_s13 + $0x40] sm:$0xff] %v2598_v18  ;;  %v2499_v7 = vadd.f32 %v3455_v42, %v2338_v43  ;;  %v3346_v54 = vadd.f32 %v3345_v2, %v3344_v38  ;;  %v3458_v58 = vadd.f32 %v3457_v51, %v3456_v22 }
 0x1d8   : > { %v3347_v11 = vpop.f32.mrf.mxu1  ;;  %v3459_v48 = vpop.f32.mrf.mxu0 }
 0x1d9   : > { %v2599_v13 = vmax.f32 %v2499_v7, 0.0  ;;  %v2343_v50 = vadd.f32 %v3346_v54, %v4438_v6 }
 0x1da   : > { %v3348_v60 = vpop.f32.mrf.mxu1  ;;  %v3460_v32 = vpop.f32.mrf.mxu0 }
 0x1db   : > { %2631 = vst [vmem:[%s4513_s13 + $0x48] sm:$0xff] %v2599_v13  ;;  %v2504_v36 = vadd.f32 %v3458_v58, %v2343_v50  ;;  %v3349_v0 = vadd.f32 %v3348_v60, %v3347_v11  ;;  %v3461_v9 = vadd.f32 %v3460_v32, %v3459_v48 }
 0x1dc   : > { %v3350_v24 = vpop.f32.mrf.mxu1  ;;  %v3462_v61 = vpop.f32.mrf.mxu0 }
 0x1dd   : > { %v2600_v4 = vmax.f32 %v2504_v36, 0.0  ;;  %v2346_v63 = vadd.f32 %v3349_v0, %v4442_v41 }
 0x1de   : > { %v3351_v49 = vpop.f32.mrf.mxu1  ;;  %v3463_v16 = vpop.f32.mrf.mxu0 }
 0x1df   : > { %2632 = vst [vmem:[%s4513_s13 + $0x50] sm:$0xff] %v2600_v4  ;;  %v2507_v45 = vadd.f32 %v3461_v9, %v2346_v63  ;;  %v3352_v17 = vadd.f32 %v3351_v49, %v3350_v24  ;;  %v3464_v14 = vadd.f32 %v3463_v16, %v3462_v61 }
 0x1e0   : > { %v3353_v25 = vpop.f32.mrf.mxu1  ;;  %v3465_v6 = vpop.f32.mrf.mxu0 }
 0x1e1   : > { %v2601_v20 = vmax.f32 %v2507_v45, 0.0  ;;  %v2351_v62 = vadd.f32 %v3352_v17, %v4448_v21 }
 0x1e2   : > { %v3354_v8 = vpop.f32.mrf.mxu1  ;;  %v3466_v23 = vpop.f32.mrf.mxu0 }
 0x1e3   : > { %2633 = vst [vmem:[%s4513_s13 + $0x58] sm:$0xff] %v2601_v20  ;;  %v2512_v30 = vadd.f32 %v3464_v14, %v2351_v62  ;;  %v3355_v5 = vadd.f32 %v3354_v8, %v3353_v25  ;;  %v3467_v29 = vadd.f32 %v3466_v23, %v3465_v6 }
 0x1e4   : > { %v3356_v33 = vpop.f32.mrf.mxu1  ;;  %v3468_v41 = vpop.f32.mrf.mxu0 }
 0x1e5   : > { %v2602_v34 = vmax.f32 %v2512_v30, 0.0  ;;  %v2354_v52 = vadd.f32 %v3355_v5, %v4452_v59 }
 0x1e6   : > { %v3357_v35 = vpop.f32.mrf.mxu1  ;;  %v3469_v39 = vpop.f32.mrf.mxu0 }
 0x1e7   : > { %2634 = vst [vmem:[%s4513_s13 + $0x60] sm:$0xff] %v2602_v34  ;;  %v2515_v40 = vadd.f32 %v3467_v29, %v2354_v52  ;;  %v3358_v38 = vadd.f32 %v3357_v35, %v3356_v33  ;;  %v3470_v42 = vadd.f32 %v3469_v39, %v3468_v41 }
 0x1e8   : > { %v3359_v22 = vpop.f32.mrf.mxu1  ;;  %v3471_v21 = vpop.f32.mrf.mxu0 }
 0x1e9   : > { %v2603_v18 = vmax.f32 %v2515_v40, 0.0  ;;  %v2359_v43 = vadd.f32 %v3358_v38, %v4456_v31 }
 0x1ea   : > { %v3360_v2 = vpop.f32.mrf.mxu1  ;;  %v3472_v51 = vpop.f32.mrf.mxu0 }
 0x1eb   : > { %2635 = vst [vmem:[%s4513_s13 + $0x68] sm:$0xff] %v2603_v18  ;;  %v2520_v7 = vadd.f32 %v3470_v42, %v2359_v43  ;;  %v3361_v54 = vadd.f32 %v3360_v2, %v3359_v22  ;;  %v3473_v50 = vadd.f32 %v3472_v51, %v3471_v21 }
 0x1ec   : > { %v3362_v11 = vpop.f32.mrf.mxu1  ;;  %v3474_v59 = vpop.f32.mrf.mxu0 }
 0x1ed   : > { %v2604_v48 = vmax.f32 %v2520_v7, 0.0  ;;  %v2362_v13 = vadd.f32 %v3361_v54, %v4458_v47 }
 0x1ee   : > { %v3363_v58 = vpop.f32.mrf.mxu1  ;;  %v3475_v60 = vpop.f32.mrf.mxu0 }
 0x1ef   : > { %2636 = vst [vmem:[%s4513_s13 + $0x70] sm:$0xff] %v2604_v48  ;;  %v2523_v32 = vadd.f32 %v3473_v50, %v2362_v13  ;;  %v3364_v36 = vadd.f32 %v3363_v58, %v3362_v11  ;;  %v3476_v4 = vadd.f32 %v3475_v60, %v3474_v59 }
 0x1f0   : > { %v3365_v0 = vpop.f32.mrf.mxu1  ;;  %v3477_v31 = vpop.f32.mrf.mxu0 }
 0x1f1   : > { %v2605_v24 = vmax.f32 %v2523_v32, 0.0  ;;  %v2367_v61 = vadd.f32 %v3364_v36, %v4461_v56 }
 0x1f2   : > { %v3366_v63 = vpop.f32.mrf.mxu1  ;;  %v3478_v9 = vpop.f32.mrf.mxu0 }
 0x1f3   : > { %2637 = vst [vmem:[%s4513_s13 + $0x78] sm:$0xff] %v2605_v24  ;;  %v2528_v49 = vadd.f32 %v3476_v4, %v2367_v61  ;;  %v3367_v16 = vadd.f32 %v3366_v63, %v3365_v0  ;;  %v3479_v6 = vadd.f32 %v3478_v9, %v3477_v31 }
 0x1f4   : > { %v3368_v45 = vpop.f32.mrf.mxu1  ;;  %v3480_v47 = vpop.f32.mrf.mxu0 }
 0x1f5   : > { %v2606_v17 = vmax.f32 %v2528_v49, 0.0  ;;  %v2370_v25 = vadd.f32 %v3367_v16, %v4464_v12 }
 0x1f6   : > { %v3369_v20 = vpop.f32.mrf.mxu1  ;;  %v3481_v62 = vpop.f32.mrf.mxu0 }
 0x1f7   : > { %2638 = vst [vmem:[%s4513_s13 + $0x80] sm:$0xff] %v2606_v17  ;;  %v2531_v14 = vadd.f32 %v3479_v6, %v2370_v25  ;;  %v3370_v8 = vadd.f32 %v3369_v20, %v3368_v45  ;;  %v3482_v33 = vadd.f32 %v3481_v62, %v3480_v47 }
 0x1f8   : > { %v3371_v23 = vpop.f32.mrf.mxu1  ;;  %v3483_v56 = vpop.f32.mrf.mxu0 }
 0x1f9   : > { %v2607_v30 = vmax.f32 %v2531_v14, 0.0  ;;  %v2375_v5 = vadd.f32 %v3370_v8, %v4467_v27 }
 0x1fa   : > { %v3372_v41 = vpop.f32.mrf.mxu1  ;;  %v3484_v34 = vpop.f32.mrf.mxu0 }
 0x1fb   : > { %2639 = vst [vmem:[%s4513_s13 + $0x88] sm:$0xff] %v2607_v30  ;;  %v2536_v52 = vadd.f32 %v3482_v33, %v2375_v5  ;;  %v3373_v29 = vadd.f32 %v3372_v41, %v3371_v23  ;;  %v3485_v38 = vadd.f32 %v3484_v34, %v3483_v56 }
 0x1fc   : > { %v3374_v35 = vpop.f32.mrf.mxu1  ;;  %v3486_v12 = vpop.f32.mrf.mxu0 }
 0x1fd   : > { %v2608_v39 = vmax.f32 %v2536_v52, 0.0  ;;  %v2378_v40 = vadd.f32 %v3373_v29, %v4470_v44 }
 0x1fe   : > { %v3375_v22 = vpop.f32.mrf.mxu1  ;;  %v3487_v21 = vpop.f32.mrf.mxu0 }
 0x1ff   : > { %2640 = vst [vmem:[%s4513_s13 + $0x90] sm:$0xff] %v2608_v39  ;;  %v2539_v18 = vadd.f32 %v3485_v38, %v2378_v40  ;;  %v3376_v43 = vadd.f32 %v3375_v22, %v3374_v35  ;;  %v3488_v7 = vadd.f32 %v3487_v21, %v3486_v12 }
 0x200   : > { %v3377_v42 = vpop.f32.mrf.mxu1  ;;  %v3489_v27 = vpop.f32.mrf.mxu0 }
 0x201   : > { %v2609_v2 = vmax.f32 %v2539_v18, 0.0  ;;  %v2383_v51 = vadd.f32 %v3376_v43, %v4473_v57 }
 0x202   : > { %v3378_v54 = vpop.f32.mrf.mxu1  ;;  %v3490_v11 = vpop.f32.mrf.mxu0 }
 0x203   : > { %2641 = vst [vmem:[%s4513_s13 + $0x98] sm:$0xff] %v2609_v2  ;;  %v2544_v59 = vadd.f32 %v3488_v7, %v2383_v51  ;;  %v3379_v48 = vadd.f32 %v3378_v54, %v3377_v42  ;;  %v3491_v60 = vadd.f32 %v3490_v11, %v3489_v27 }
 0x204   : > { %v3380_v13 = vpop.f32.mrf.mxu1  ;;  %v3492_v44 = vpop.f32.mrf.mxu0 }
 0x205   : > { %v2610_v50 = vmax.f32 %v2544_v59, 0.0  ;;  %v2386_v58 = vadd.f32 %v3379_v48, %v4476_v53 }
 0x206   : > { %v3381_v32 = vpop.f32.mrf.mxu1  ;;  %v3493_v36 = vpop.f32.mrf.mxu0 }
 0x207   : > { %2642 = vst [vmem:[%s4513_s13 + $0xa0] sm:$0xff] %v2610_v50  ;;  %v2547_v0 = vadd.f32 %v3491_v60, %v2386_v58  ;;  %v3382_v31 = vadd.f32 %v3381_v32, %v3380_v13  ;;  %v3494_v63 = vadd.f32 %v3493_v36, %v3492_v44 }
 0x208   : > { %v3383_v24 = vpop.f32.mrf.mxu1  ;;  %v3495_v57 = vpop.f32.mrf.mxu0 }
 0x209   : > { %v2611_v61 = vmax.f32 %v2547_v0, 0.0  ;;  %v2391_v4 = vadd.f32 %v3382_v31, %v4479_v1 }
 0x20a   : > { %v3384_v9 = vpop.f32.mrf.mxu1  ;;  %v3496_v49 = vpop.f32.mrf.mxu0 }
 0x20b   : > { %2643 = vst [vmem:[%s4513_s13 + $0xa8] sm:$0xff] %v2611_v61  ;;  %v2552_v16 = vadd.f32 %v3494_v63, %v2391_v4  ;;  %v3385_v45 = vadd.f32 %v3384_v9, %v3383_v24  ;;  %v3497_v6 = vadd.f32 %v3496_v49, %v3495_v57 }
 0x20c   : > { %v3386_v47 = vpop.f32.mrf.mxu1  ;;  %v3498_v53 = vpop.f32.mrf.mxu0 }
 0x20d   : > { %v2612_v17 = vmax.f32 %v2552_v16, 0.0  ;;  %v2394_v25 = vadd.f32 %v3385_v45, %v4482_v10 }
 0x20e   : > { %v3387_v20 = vpop.f32.mrf.mxu1  ;;  %v3499_v62 = vpop.f32.mrf.mxu0 }
 0x20f   : > { %2644 = vst [vmem:[%s4513_s13 + $0xb0] sm:$0xff] %v2612_v17  ;;  %v2555_v14 = vadd.f32 %v3497_v6, %v2394_v25  ;;  %v3388_v8 = vadd.f32 %v3387_v20, %v3386_v47  ;;  %v3500_v5 = vadd.f32 %v3499_v62, %v3498_v53 }
 0x210   : > { %v3389_v23 = vpop.f32.mrf.mxu1  ;;  %v3501_v1 = vpop.f32.mrf.mxu0 }
 0x211   : > { %v2613_v56 = vmax.f32 %v2555_v14, 0.0  ;;  %v2399_v30 = vadd.f32 %v3388_v8, %v4485_v19 }
 0x212   : > { %v3390_v33 = vpop.f32.mrf.mxu1  ;;  %v3502_v41 = vpop.f32.mrf.mxu0 }
 0x213   : > { %2645 = vst [vmem:[%s4513_s13 + $0xb8] sm:$0xff] %v2613_v56  ;;  %v2560_v34 = vadd.f32 %v3500_v5, %v2399_v30  ;;  %v3391_v52 = vadd.f32 %v3390_v33, %v3389_v23  ;;  %v3503_v39 = vadd.f32 %v3502_v41, %v3501_v1 }
 0x214   : > { %v3392_v29 = vpop.f32.mrf.mxu1  ;;  %v3504_v10 = vpop.f32.mrf.mxu0 }
 0x215   : > { %v2614_v35 = vmax.f32 %v2560_v34, 0.0  ;;  %v2402_v12 = vadd.f32 %v3391_v52, %v4488_v28 }
 0x216   : > { %v3393_v40 = vpop.f32.mrf.mxu1  ;;  %v3505_v38 = vpop.f32.mrf.mxu0 }
 0x217   : > { %2646 = vst [vmem:[%s4513_s13 + $0xc0] sm:$0xff] %v2614_v35  ;;  %v2563_v22 = vadd.f32 %v3503_v39, %v2402_v12  ;;  %v3394_v21 = vadd.f32 %v3393_v40, %v3392_v29  ;;  %v3506_v27 = vadd.f32 %v3505_v38, %v3504_v10 }
 0x218   : > { %v3395_v18 = vpop.f32.mrf.mxu1  ;;  %v3507_v19 = vpop.f32.mrf.mxu0 }
 0x219   : > { %v2615_v43 = vmax.f32 %v2563_v22, 0.0  ;;  %v2407_v42 = vadd.f32 %v3394_v21, %v4491_v37 }
 0x21a   : > { %v3396_v2 = vpop.f32.mrf.mxu1  ;;  %v3508_v51 = vpop.f32.mrf.mxu0 }
 0x21b   : > { %2647 = vst [vmem:[%s4513_s13 + $0xc8] sm:$0xff] %v2615_v43  ;;  %v2568_v7 = vadd.f32 %v3506_v27, %v2407_v42  ;;  %v3397_v54 = vadd.f32 %v3396_v2, %v3395_v18  ;;  %v3509_v13 = vadd.f32 %v3508_v51, %v3507_v19 }
 0x21c   : > { %v3398_v11 = vpop.f32.mrf.mxu1  ;;  %v3510_v28 = vpop.f32.mrf.mxu0 }
 0x21d   : > { %v2616_v59 = vmax.f32 %v2568_v7, 0.0  ;;  %v2410_v48 = vadd.f32 %v3397_v54, %v4494_v46 }
 0x21e   : > { %v3399_v44 = vpop.f32.mrf.mxu1  ;;  %v3511_v50 = vpop.f32.mrf.mxu0 }
 0x21f   : > { %2648 = vst [vmem:[%s4513_s13 + $0xd0] sm:$0xff] %v2616_v59  ;;  %v2571_v58 = vadd.f32 %v3509_v13, %v2410_v48  ;;  %v3400_v60 = vadd.f32 %v3399_v44, %v3398_v11  ;;  %v3512_v31 = vadd.f32 %v3511_v50, %v3510_v28 }
 0x220   : > { %v3401_v32 = vpop.f32.mrf.mxu1  ;;  %v3513_v37 = vpop.f32.mrf.mxu0 }
 0x221   : > { %v2617_v36 = vmax.f32 %v2571_v58, 0.0  ;;  %v2415_v0 = vadd.f32 %v3400_v60, %v4497_v55 }
 0x222   : > { %v3402_v24 = vpop.f32.mrf.mxu1  ;;  %v3514_v57 = vpop.f32.mrf.mxu0 }
 0x223   : > { %2649 = vst [vmem:[%s4513_s13 + $0xd8] sm:$0xff] %v2617_v36  ;;  %v2576_v61 = vadd.f32 %v3512_v31, %v2415_v0  ;;  %v3403_v4 = vadd.f32 %v3402_v24, %v3401_v32  ;;  %v3515_v16 = vadd.f32 %v3514_v57, %v3513_v37 }
 0x224   : > { %v3404_v63 = vpop.f32.mrf.mxu1  ;;  %v3516_v46 = vpop.f32.mrf.mxu0 }
 0x225   : > { %v2618_v9 = vmax.f32 %v2576_v61, 0.0  ;;  %v2418_v49 = vadd.f32 %v3403_v4, %v4500_v3 }
 0x226   : > { %v3405_v45 = vpop.f32.mrf.mxu1  ;;  %v3517_v47 = vpop.f32.mrf.mxu0 }
 0x227   : > { %2650 = vst [vmem:[%s4513_s13 + $0xe0] sm:$0xff] %v2618_v9  ;;  %v2579_v53 = vadd.f32 %v3515_v16, %v2418_v49  ;;  %v3406_v17 = vadd.f32 %v3405_v45, %v3404_v63  ;;  %v3518_v62 = vadd.f32 %v3517_v47, %v3516_v46 }
 0x228   : > { %v3407_v55 = vpop.f32.mrf.mxu1  ;;  %v3519_v25 = vpop.f32.mrf.mxu0 }
 0x229   : > { %v2619_v6 = vmax.f32 %v2579_v53, 0.0  ;;  %v2423_v20 = vadd.f32 %v3406_v17, %v4503_v15 }
 0x22a   : > { %v3408_v14 = vpop.f32.mrf.mxu1  ;;  %v3520_v8 = vpop.f32.mrf.mxu0 }
 0x22b   : > { %2651 = vst [vmem:[%s4513_s13 + $0xe8] sm:$0xff] %v2619_v6  ;;  %v2584_v23 = vadd.f32 %v3518_v62, %v2423_v20  ;;  %v3409_v1 = vadd.f32 %v3408_v14, %v3407_v55  ;;  %v3521_v30 = vadd.f32 %v3520_v8, %v3519_v25 }
 0x22d   : > { %v2620_v3 = vmax.f32 %v2584_v23, 0.0  ;;  %v2426_v56 = vadd.f32 %v3409_v1, %v4506_v26 }
 0x22f   : > { %2652 = vst [vmem:[%s4513_s13 + $0xf0] sm:$0xff] %v2620_v3  ;;  %v2587_v5 = vadd.f32 %v3521_v30, %v2426_v56 }
 0x231   : > { %v2621_v33 = vmax.f32 %v2587_v5, 0.0 }
 0x233   : > { %2653 = vst [vmem:[%s4513_s13 + $0xf8] sm:$0xff] %v2621_v33 }
 0x234 PF: > { %s13_s12 = sadd.s32 1, %s3873_s12  }
 0x235   : > { %p10_p4 = scmp.ge.s32.totalorder %s13_s12, 4  }
 0x237   :  { %12 = sbr.rel (!%p10_p4) target bundleno = 1 (0x1), region = 62 }

// kernel: inception_a.11
= control target key start
LH: loop header
LB: loop body
LE: loop exit
PB: predicated region body
PF: predicated region fallthrough
CT: control target
= control target key end

     0   :  { %s2253_s12 = smov 0   ;;  %s2787_s0 = inlined_call_operand.vmem [shape: bf16[512,640], index: 0, kind: input, shape index: {}]   ;;  %s2788_s1 = inlined_call_operand.vmem [shape: bf16[640,128], index: 1, kind: input, shape index: {}]   ;;  %s2789_s2 = inlined_call_operand.vmem [shape: f32[1,128], index: 2, kind: input, shape index: {}]   ;;  %s2790_s3 = inlined_call_operand.vmem [shape: f32[512,128], index: 3, kind: output, shape index: {}]  }
   0x1 LB: > { %s1620_s13 = sadd.s32 4294967295, %s2231_s12   ;;  %p1624_p0 = scmp.ge.s32.totalorder %s2231_s12, 1  ;;  %s2231_s12 = sphi %s2253_s12, %s13_s12  }
   0x2   : > { %p139_p1 = scmp.lt.s32.totalorder %s2231_s12, 3 }
   0x4   : > { %p140_p2 = pnand %p1624_p0, %p139_p1 }
   0x6   : > { %143 = sbr.rel (%p140_p2) target bundleno = 404 (0x194), region = 32 }
   0xb   : > { %v2073_v0 = vld [vmem:[%s2788_s1 + $0x78] sm:$0xff]   ;;  %s1625_s16 = sshll.u32 %s1620_s13, 5  ;;  %v2075_v2 = vld [vmem:[%s2788_s1 + $0x70] sm:$0xff]   ;;  %v2077_v4 = vld [vmem:[%s2788_s1 + $0x68] sm:$0xff]  }
   0xc   : > { %v2074_v1 = vld [vmem:[%s2788_s1 + $0x38] sm:$0xff]   ;;  %1752 = vmatprep.subr.bf16.mxu0 %v2073_v0  ;;  %2048 = vmatprep.subr.bf16.mxu1 %v2073_v0  ;;  %p165_p3 = scmp.lt.s32.totalorder %s1625_s16, 63  ;;  %v2076_v3 = vld [vmem:[%s2788_s1 + $0x30] sm:$0xff]   ;;  %v2078_v5 = vld [vmem:[%s2788_s1 + $0x28] sm:$0xff]  }
   0xd   : > { %1753 = vmatpush3.bf16.msra.mxu0 %v2074_v1  ;;  %2056 = vmatpush3.bf16.msra.mxu1 %v2074_v1  ;;  %v2079_v6 = vld [vmem:[%s2788_s1 + $0x60] sm:$0xff]   ;;  %v2081_v8 = vld [vmem:[%s2788_s1 + $0x58] sm:$0xff]   ;;  %v2083_v10 = vld [vmem:[%s2788_s1 + $0x50] sm:$0xff]  }
   0xe   : > { %1754 = vmatprep.subr.bf16.mxu0 %v2075_v2  ;;  %2049 = vmatprep.subr.bf16.mxu1 %v2075_v2  ;;  %s2830_s16 = smov (!%p165_p3, %s1625_s16), 63  ;;  %v2080_v7 = vld [vmem:[%s2788_s1 + $0x20] sm:$0xff]   ;;  %v2082_v9 = vld [vmem:[%s2788_s1 + $0x18] sm:$0xff]   ;;  %v2084_v13 = vld [vmem:[%s2788_s1 + $0x10] sm:$0xff]  }
   0xf   : > { %s2064_s29 = smul.u32 20, %s2830_s16  ;;  %v2085_v14 = vld [vmem:[%s2788_s1 + $0x48] sm:$0xff]   ;;  %v2087_v16 = vld [vmem:[%s2788_s1 + $0x40] sm:$0xff]   ;;  %v2095_v18 = vld [vmem:[%s2788_s1 + $0xf8] sm:$0xff]   ;;  %s1628_s27 = sshll.u32 %s2830_s16, 3 }
  0x10   : > { %v2086_v15 = vld [vmem:[%s2788_s1 + $0x8] sm:$0xff]   ;;  %v2088_v17 = vld [vmem:[%s2788_s1] sm:$0xff]   ;;  %v2098_v19 = vld [vmem:[%s2788_s1 + $0x138] sm:$0xff]   ;;  %s2628_s30 = scalar_lea.vmem %s2790_s3, %s1628_s27 }
  0x11   : > { %1755 = vmatpush3.bf16.msra.mxu0 %v2076_v3  ;;  %2057 = vmatpush3.bf16.msra.mxu1 %v2076_v3  ;;  %s2294_s9 = scalar_lea.vmem %s2787_s0, %s2064_s29  ;;  %v2096_v22 = vld [vmem:[%s2788_s1 + $0xb8] sm:$0xff]   ;;  %v2097_v23 = vld [vmem:[%s2788_s1 + $0xf0] sm:$0xff]   ;;  %v2106_v29 = vld [vmem:[%s2788_s1 + $0xe8] sm:$0xff]  }
  0x12   : > { %1756 = vmatprep.subr.bf16.mxu0 %v2077_v4  ;;  %2050 = vmatprep.subr.bf16.mxu1 %v2077_v4  ;;  %v2091_v11 = vld [vmem:[%s2294_s9 + $0x4] ss:$20 sps:$4 sm:$0xff]   ;;  %v2089_v20 = vld [vmem:[%s2294_s9] ss:$20 sps:$4 sm:$0xff]   ;;  %v2104_v28 = vld [vmem:[%s2294_s9 + $0x28] ss:$20 sps:$4 sm:$0xff]  }
  0x13   : > { %v2094_v12 = vld [vmem:[%s2294_s9 + $0x1e4] ss:$20 sps:$4 sm:$0xff]   ;;  %1049 = vmatprep.mubr.bf16.mxu0 %v2091_v11  ;;  %v2092_v21 = vld [vmem:[%s2294_s9 + $0x1e0] ss:$20 sps:$4 sm:$0xff]   ;;  %v2105_v30 = vld [vmem:[%s2294_s9 + $0x208] ss:$20 sps:$4 sm:$0xff]  }
  0x14   : > { %1145 = vmatprep.mubr.bf16.mxu1 %v2094_v12  ;;  %v2100_v24 = vld [vmem:[%s2294_s9 + $0x2c] ss:$20 sps:$4 sm:$0xff]   ;;  %v2117_v26 = vld [vmem:[%s2788_s1 + $0x130] sm:$0xff]   ;;  %v2116_v36 = vld [vmem:[%s2788_s1 + $0xd8] sm:$0xff]  }
  0x15   : > { %1757 = vmatpush3.bf16.msra.mxu0 %v2078_v5  ;;  %2058 = vmatpush3.bf16.msra.mxu1 %v2078_v5  ;;  %v2102_v25 = vld [vmem:[%s2294_s9 + $0x20c] ss:$20 sps:$4 sm:$0xff]   ;;  %v2099_v27 = vld [vmem:[%s2788_s1 + $0xb0] sm:$0xff]   ;;  %v2118_v40 = vld [vmem:[%s2788_s1 + $0x98] sm:$0xff]  }
  0x16   : > { %1758 = vmatprep.subr.bf16.mxu0 %v2079_v6  ;;  %2051 = vmatprep.subr.bf16.mxu1 %v2079_v6  ;;  %v2107_v31 = vld [vmem:[%s2788_s1 + $0xa8] sm:$0xff]   ;;  %v2108_v33 = vld [vmem:[%s2788_s1 + $0xe0] sm:$0xff]   ;;  %v2119_v41 = vld [vmem:[%s2788_s1 + $0xd0] sm:$0xff]  }
  0x17   : > { %v2110_v32 = vld [vmem:[%s2294_s9 + $0x54] ss:$20 sps:$4 sm:$0xff]   ;;  %v2109_v35 = vld [vmem:[%s2788_s1 + $0xa0] sm:$0xff]   ;;  %v2121_v42 = vld [vmem:[%s2294_s9 + $0x7c] ss:$20 sps:$4 sm:$0xff]  }
  0x18   : > { %v2112_v34 = vld [vmem:[%s2294_s9 + $0x234] ss:$20 sps:$4 sm:$0xff]   ;;  %v2114_v37 = vld [vmem:[%s2294_s9 + $0x50] ss:$20 sps:$4 sm:$0xff]   ;;  %v2125_v46 = vld [vmem:[%s2294_s9 + $0x78] ss:$20 sps:$4 sm:$0xff]  }
  0x19   : > { %1759 = vmatpush3.bf16.msra.mxu0 %v2080_v7  ;;  %2059 = vmatpush3.bf16.msra.mxu1 %v2080_v7  ;;  %v2130_v38 = vld [vmem:[%s2788_s1 + $0x128] sm:$0xff]   ;;  %v2115_v39 = vld [vmem:[%s2294_s9 + $0x230] ss:$20 sps:$4 sm:$0xff]   ;;  %v2151_v52 = vld [vmem:[%s2788_s1 + $0x118] sm:$0xff]  }
  0x1a   : > { %1760 = vmatprep.subr.bf16.mxu0 %v2081_v8  ;;  %2052 = vmatprep.subr.bf16.mxu1 %v2081_v8  ;;  %v2123_v43 = vld [vmem:[%s2294_s9 + $0x25c] ss:$20 sps:$4 sm:$0xff]   ;;  %v2144_v45 = vld [vmem:[%s2788_s1 + $0x120] sm:$0xff]   ;;  %v2126_v47 = vld [vmem:[%s2294_s9 + $0x258] ss:$20 sps:$4 sm:$0xff]  }
  0x1b   : > { %v2120_v44 = vld [vmem:[%s2788_s1 + $0x90] sm:$0xff]   ;;  %v2127_v48 = vld [vmem:[%s2788_s1 + $0xc8] sm:$0xff]   ;;  %v2129_v50 = vld [vmem:[%s2788_s1 + $0xc0] sm:$0xff]  }
  0x1c   : > { %v2128_v49 = vld [vmem:[%s2788_s1 + $0x88] sm:$0xff]   ;;  %v2132_v51 = vld [vmem:[%s2294_s9 + $0xa4] ss:$20 sps:$4 sm:$0xff]   ;;  %v2137_v56 = vld [vmem:[%s2294_s9 + $0xa0] ss:$20 sps:$4 sm:$0xff]  }
  0x1d   : > { %1761 = vmatpush3.bf16.msra.mxu0 %v2082_v9  ;;  %2060 = vmatpush3.bf16.msra.mxu1 %v2082_v9  ;;  %v2136_v53 = vld [vmem:[%s2294_s9 + $0xc] ss:$20 sps:$4 sm:$0xff]   ;;  %v2134_v55 = vld [vmem:[%s2294_s9 + $0x8] ss:$20 sps:$4 sm:$0xff]   ;;  %v2164_v57 = vld [vmem:[%s2788_s1 + $0x110] sm:$0xff]  }
  0x1e   : > { %1762 = vmatprep.subr.bf16.mxu0 %v2083_v10  ;;  %2053 = vmatprep.subr.bf16.mxu1 %v2083_v10  ;;  %v2131_v54 = vld [vmem:[%s2788_s1 + $0x80] sm:$0xff]   ;;  %v2140_v59 = vld [vmem:[%s2294_s9 + $0x34] ss:$20 sps:$4 sm:$0xff]   ;;  %v2147_v0 = vld [vmem:[%s2294_s9 + $0x5c] ss:$20 sps:$4 sm:$0xff]  }
  0x1f   : > { %v2138_v58 = vld [vmem:[%s2294_s9 + $0xcc] ss:$20 sps:$4 sm:$0xff]   ;;  %v2142_v61 = vld [vmem:[%s2294_s9 + $0xc8] ss:$20 sps:$4 sm:$0xff]   ;;  %v2143_v62 = vld [vmem:[%s2294_s9 + $0x30] ss:$20 sps:$4 sm:$0xff]  }
  0x20   : > { %v2171_v60 = vld [vmem:[%s2788_s1 + $0x108] sm:$0xff]   ;;  %v2184_v1 = vld [vmem:[%s2788_s1 + $0x100] sm:$0xff]   ;;  %v2152_v4 = vld [vmem:[%s2294_s9 + $0x11c] ss:$20 sps:$4 sm:$0xff]  }
  0x21   : > { %1763 = vmatpush3.bf16.msra.mxu0 %v2084_v13  ;;  %2061 = vmatpush3.bf16.msra.mxu1 %v2084_v13  ;;  %v2145_v63 = vld [vmem:[%s2294_s9 + $0xf4] ss:$20 sps:$4 sm:$0xff]   ;;  %v2149_v2 = vld [vmem:[%s2294_s9 + $0xf0] ss:$20 sps:$4 sm:$0xff]   ;;  %v2150_v3 = vld [vmem:[%s2294_s9 + $0x58] ss:$20 sps:$4 sm:$0xff]  }
  0x22   : > { %1764 = vmatprep.subr.bf16.mxu0 %v2085_v14  ;;  %2054 = vmatprep.subr.bf16.mxu1 %v2085_v14  ;;  %v2154_v5 = vld [vmem:[%s2294_s9 + $0x84] ss:$20 sps:$4 sm:$0xff]   ;;  %v2157_v7 = vld [vmem:[%s2294_s9 + $0x80] ss:$20 sps:$4 sm:$0xff]   ;;  %v2163_v11 = vld [vmem:[%s2294_s9 + $0xa8] ss:$20 sps:$4 sm:$0xff]  }
  0x23   : > { %v2156_v6 = vld [vmem:[%s2294_s9 + $0x118] ss:$20 sps:$4 sm:$0xff]   ;;  %v2162_v10 = vld [vmem:[%s2294_s9 + $0x140] ss:$20 sps:$4 sm:$0xff]   ;;  %v2169_v14 = vld [vmem:[%s2294_s9 + $0x168] ss:$20 sps:$4 sm:$0xff]  }
  0x24   : > { %v2158_v8 = vld [vmem:[%s2294_s9 + $0x144] ss:$20 sps:$4 sm:$0xff]   ;;  %v2160_v9 = vld [vmem:[%s2294_s9 + $0xac] ss:$20 sps:$4 sm:$0xff]   ;;  %v2167_v13 = vld [vmem:[%s2294_s9 + $0xd4] ss:$20 sps:$4 sm:$0xff]  }
  0x25   : > { %1765 = vmatpush3.bf16.msra.mxu0 %v2086_v15  ;;  %2062 = vmatpush3.bf16.msra.mxu1 %v2086_v15  ;;  %v2165_v12 = vld [vmem:[%s2294_s9 + $0x16c] ss:$20 sps:$4 sm:$0xff]   ;;  %v2170_v15 = vld [vmem:[%s2294_s9 + $0xd0] ss:$20 sps:$4 sm:$0xff]  }
  0x26   : > { %1766 = vmatprep.subr.bf16.mxu0 %v2087_v16  ;;  %2055 = vmatprep.subr.bf16.mxu1 %v2087_v16  ;;  %v2172_v16 = vld [vmem:[%s2294_s9 + $0x194] ss:$20 sps:$4 sm:$0xff]  }
  0x29   : > { %1767 = vmatpush3.bf16.msra.mxu0 %v2088_v17  ;;  %2063 = vmatpush3.bf16.msra.mxu1 %v2088_v17  ;;  %v2174_v17 = vld [vmem:[%s2294_s9 + $0xfc] ss:$20 sps:$4 sm:$0xff]  }
  0x2a   : > { %1864 = vmatprep.subr.bf16.mxu1 %v2095_v18  ;;  %2000 = vmatprep.subr.bf16.mxu0 %v2098_v19  ;;  %v2176_v18 = vld [vmem:[%s2294_s9 + $0x190] ss:$20 sps:$4 sm:$0xff]  }
  0x2c   : > { %1050 = vmatmul.mubr.bf16.vlgmr.msra.gmra.mxu0 %v2089_v20  ;;  %1146 = vmatmul.mubr.bf16.vlgmr.msra.gmra.mxu1 %v2092_v21  ;;  %v2178_v20 = vld [vmem:[%s2294_s9 + $0x1bc] ss:$20 sps:$4 sm:$0xff]   ;;  %v2180_v21 = vld [vmem:[%s2294_s9 + $0x124] ss:$20 sps:$4 sm:$0xff]  }
  0x2d   : > { %1865 = vmatpush3.bf16.msra.mxu1 %v2096_v22  ;;  %2001 = vmatpush3.bf16.msra.mxu0 %v2098_v19  ;;  %v2177_v19 = vld [vmem:[%s2294_s9 + $0xf8] ss:$20 sps:$4 sm:$0xff]  }
  0x2e   : > { %1866 = vmatprep.subr.bf16.mxu1 %v2097_v23  ;;  %1057 = vmatprep.mubr.bf16.mxu0 %v2100_v24  ;;  %v2182_v22 = vld [vmem:[%s2294_s9 + $0x1b8] ss:$20 sps:$4 sm:$0xff]   ;;  %v2183_v23 = vld [vmem:[%s2294_s9 + $0x120] ss:$20 sps:$4 sm:$0xff]  }
  0x2f   : > { %1153 = vmatprep.mubr.bf16.mxu1 %v2102_v25  ;;  %2002 = vmatprep.subr.bf16.mxu0 %v2117_v26  ;;  %v2185_v24 = vld [vmem:[%s2294_s9 + $0x14c] ss:$20 sps:$4 sm:$0xff]   ;;  %v2187_v25 = vld [vmem:[%s2294_s9 + $0x10] ss:$20 sps:$4 sm:$0xff]  }
  0x31   : > { %1867 = vmatpush3.bf16.msra.mxu1 %v2099_v27  ;;  %2003 = vmatpush3.bf16.msra.mxu0 %v2117_v26  ;;  %v2188_v26 = vld [vmem:[%s2294_s9 + $0x148] ss:$20 sps:$4 sm:$0xff]   ;;  %v2189_v27 = vld [vmem:[%s2294_s9 + $0x38] ss:$20 sps:$4 sm:$0xff]  }
  0x32   : > { %1868 = vmatprep.subr.bf16.mxu1 %v2106_v29  ;;  %2004 = vmatprep.subr.bf16.mxu0 %v2130_v38  ;;  %v2192_v29 = vld [vmem:[%s2294_s9 + $0x60] ss:$20 sps:$4 sm:$0xff]  }
  0x34   : > { %1058 = vmatmul.mubr.bf16.gmra.mxu0 %v2104_v28  ;;  %1154 = vmatmul.mubr.bf16.gmra.mxu1 %v2105_v30  ;;  %v2190_v28 = vld [vmem:[%s2294_s9 + $0x174] ss:$20 sps:$4 sm:$0xff]   ;;  %v2193_v30 = vld [vmem:[%s2294_s9 + $0x170] ss:$20 sps:$4 sm:$0xff]  }
  0x35   : > { %1869 = vmatpush3.bf16.msra.mxu1 %v2107_v31  ;;  %1065 = vmatprep.mubr.bf16.mxu0 %v2110_v32  ;;  %v2194_v31 = vld [vmem:[%s2294_s9 + $0x88] ss:$20 sps:$4 sm:$0xff]  }
  0x36   : > { %1870 = vmatprep.subr.bf16.mxu1 %v2108_v33  ;;  %1161 = vmatprep.mubr.bf16.mxu1 %v2112_v34  ;;  %v2195_v32 = vld [vmem:[%s2294_s9 + $0x19c] ss:$20 sps:$4 sm:$0xff]   ;;  %v2198_v34 = vld [vmem:[%s2294_s9 + $0x198] ss:$20 sps:$4 sm:$0xff]  }
  0x37   : > { %2005 = vmatpush3.bf16.msra.mxu0 %v2130_v38  ;;  %v2197_v33 = vld [vmem:[%s2294_s9 + $0xb0] ss:$20 sps:$4 sm:$0xff]   ;;  %v2203_v38 = vld [vmem:[%s2294_s9 + $0x1c0] ss:$20 sps:$4 sm:$0xff]  }
  0x38   : > { %2006 = vmatprep.subr.bf16.mxu0 %v2144_v45 }
  0x39   : > { %1871 = vmatpush3.bf16.msra.mxu1 %v2109_v35  ;;  %v2199_v35 = vld [vmem:[%s2294_s9 + $0xd8] ss:$20 sps:$4 sm:$0xff]  }
  0x3a   : > { %1872 = vmatprep.subr.bf16.mxu1 %v2116_v36  ;;  %v2200_v36 = vld [vmem:[%s2294_s9 + $0x1c4] ss:$20 sps:$4 sm:$0xff]  }
  0x3b   : > { %2007 = vmatpush3.bf16.msra.mxu0 %v2144_v45  ;;  %v2212_v45 = vld [vmem:[%s2294_s9 + $0x1a0] ss:$20 sps:$4 sm:$0xff]  }
  0x3c   : > { %1066 = vmatmul.mubr.bf16.gmra.mxu0 %v2114_v37  ;;  %1162 = vmatmul.mubr.bf16.gmra.mxu1 %v2115_v39  ;;  %v2202_v37 = vld [vmem:[%s2294_s9 + $0x100] ss:$20 sps:$4 sm:$0xff]   ;;  %v2204_v39 = vld [vmem:[%s2294_s9 + $0x128] ss:$20 sps:$4 sm:$0xff]  }
  0x3d   : > { %1873 = vmatpush3.bf16.msra.mxu1 %v2118_v40  ;;  %1073 = vmatprep.mubr.bf16.mxu0 %v2121_v42  ;;  %v2205_v40 = vld [vmem:[%s2294_s9 + $0x1ec] ss:$20 sps:$4 sm:$0xff]   ;;  %v2208_v42 = vld [vmem:[%s2294_s9 + $0x1e8] ss:$20 sps:$4 sm:$0xff]  }
  0x3e   : > { %1874 = vmatprep.subr.bf16.mxu1 %v2119_v41  ;;  %1169 = vmatprep.mubr.bf16.mxu1 %v2123_v43  ;;  %v2207_v41 = vld [vmem:[%s2294_s9 + $0x150] ss:$20 sps:$4 sm:$0xff]   ;;  %v2209_v43 = vld [vmem:[%s2294_s9 + $0x178] ss:$20 sps:$4 sm:$0xff]  }
  0x3f   : > { %2008 = vmatprep.subr.bf16.mxu0 %v2151_v52 }
  0x40   : > { %2009 = vmatpush3.bf16.msra.mxu0 %v2151_v52  ;;  %v2220_v52 = vld [vmem:[%s2294_s9 + $0x264] ss:$20 sps:$4 sm:$0xff]  }
  0x41   : > { %1875 = vmatpush3.bf16.msra.mxu1 %v2120_v44  ;;  %2010 = vmatprep.subr.bf16.mxu0 %v2164_v57  ;;  %v2210_v44 = vld [vmem:[%s2294_s9 + $0x214] ss:$20 sps:$4 sm:$0xff]  }
  0x42   : > { %1876 = vmatprep.subr.bf16.mxu1 %v2127_v48  ;;  %v2215_v48 = vld [vmem:[%s2294_s9 + $0x23c] ss:$20 sps:$4 sm:$0xff]  }
  0x44   : > { %1074 = vmatmul.mubr.bf16.gmra.mxu0 %v2125_v46  ;;  %1170 = vmatmul.mubr.bf16.gmra.mxu1 %v2126_v47  ;;  %v2213_v46 = vld [vmem:[%s2294_s9 + $0x210] ss:$20 sps:$4 sm:$0xff]   ;;  %v2214_v47 = vld [vmem:[%s2294_s9 + $0x1c8] ss:$20 sps:$4 sm:$0xff]  }
  0x45   : > { %1877 = vmatpush3.bf16.msra.mxu1 %v2128_v49  ;;  %1081 = vmatprep.mubr.bf16.mxu0 %v2132_v51  ;;  %v2217_v49 = vld [vmem:[%s2294_s9 + $0x1f0] ss:$20 sps:$4 sm:$0xff]   ;;  %v2219_v51 = vld [vmem:[%s2294_s9 + $0x218] ss:$20 sps:$4 sm:$0xff]  }
  0x46   : > { %1878 = vmatprep.subr.bf16.mxu1 %v2129_v50  ;;  %1210 = vmatprep.mubr.bf16.mxu1 %v2136_v53  ;;  %v2218_v50 = vld [vmem:[%s2294_s9 + $0x238] ss:$20 sps:$4 sm:$0xff]   ;;  %v2222_v53 = vld [vmem:[%s2294_s9 + $0x240] ss:$20 sps:$4 sm:$0xff]  }
  0x47   : > { %2011 = vmatpush3.bf16.msra.mxu0 %v2164_v57 }
  0x48   : > { %2012 = vmatprep.subr.bf16.mxu0 %v2171_v60 }
  0x49   : > { %1879 = vmatpush3.bf16.msra.mxu1 %v2131_v54  ;;  %v2223_v54 = vld [vmem:[%s2294_s9 + $0x260] ss:$20 sps:$4 sm:$0xff]  }
  0x4b   : > { %2013 = vmatpush3.bf16.msra.mxu0 %v2171_v60 }
  0x4c   : > { %1082 = vmatmul.mubr.bf16.gmra.mxu0 %v2137_v56  ;;  %1211 = vmatmul.mubr.bf16.vlgmr.msra.gmra.mxu1 %v2134_v55  ;;  %v2224_v55 = vld [vmem:[%s2294_s9 + $0x268] ss:$20 sps:$4 sm:$0xff]  }
  0x4d   : > { %1089 = vmatprep.mubr.bf16.mxu0 %v2138_v58  ;;  %1218 = vmatprep.mubr.bf16.mxu1 %v2140_v59 }
  0x4e   : > { %2014 = vmatprep.subr.bf16.mxu0 %v2184_v1 }
  0x4f   : > { %2015 = vmatpush3.bf16.msra.mxu0 %v2184_v1 }
  0x54   : > { %1090 = vmatmul.mubr.bf16.gmra.mxu0 %v2142_v61  ;;  %1219 = vmatmul.mubr.bf16.gmra.mxu1 %v2143_v62 }
  0x55   : > { %1097 = vmatprep.mubr.bf16.mxu0 %v2145_v63  ;;  %1226 = vmatprep.mubr.bf16.mxu1 %v2147_v0 }
  0x5c   : > { %1098 = vmatmul.mubr.bf16.gmra.mxu0 %v2149_v2  ;;  %1227 = vmatmul.mubr.bf16.gmra.mxu1 %v2150_v3 }
  0x5d   : > { %1105 = vmatprep.mubr.bf16.mxu0 %v2152_v4  ;;  %1234 = vmatprep.mubr.bf16.mxu1 %v2154_v5 }
  0x64   : > { %1106 = vmatmul.mubr.bf16.gmra.mxu0 %v2156_v6  ;;  %1235 = vmatmul.mubr.bf16.gmra.mxu1 %v2157_v7 }
  0x65   : > { %1113 = vmatprep.mubr.bf16.mxu0 %v2158_v8  ;;  %1242 = vmatprep.mubr.bf16.mxu1 %v2160_v9 }
  0x6c   : > { %1114 = vmatmul.mubr.bf16.gmra.mxu0 %v2162_v10  ;;  %1243 = vmatmul.mubr.bf16.gmra.mxu1 %v2163_v11 }
  0x6d   : > { %1121 = vmatprep.mubr.bf16.mxu0 %v2165_v12  ;;  %1250 = vmatprep.mubr.bf16.mxu1 %v2167_v13 }
  0x74   : > { %1122 = vmatmul.mubr.bf16.gmra.mxu0 %v2169_v14  ;;  %1251 = vmatmul.mubr.bf16.gmra.mxu1 %v2170_v15 }
  0x75   : > { %1129 = vmatprep.mubr.bf16.mxu0 %v2172_v16  ;;  %1258 = vmatprep.mubr.bf16.mxu1 %v2174_v17 }
  0x7c   : > { %1130 = vmatmul.mubr.bf16.gmra.mxu0 %v2176_v18  ;;  %1259 = vmatmul.mubr.bf16.gmra.mxu1 %v2177_v19 }
  0x7d   : > { %1137 = vmatprep.mubr.bf16.mxu0 %v2178_v20  ;;  %1266 = vmatprep.mubr.bf16.mxu1 %v2180_v21 }
  0x84   : > { %1138 = vmatmul.mubr.bf16.gmra.mxu0 %v2182_v22  ;;  %1267 = vmatmul.mubr.bf16.gmra.mxu1 %v2183_v23 }
  0x85   : > { %1274 = vmatprep.mubr.bf16.mxu1 %v2185_v24  ;;  %2016 = vmatprep.mubr.bf16.mxu0 %v2187_v25 }
  0x8c   : > { %1275 = vmatmul.mubr.bf16.gmra.mxu1 %v2188_v26  ;;  %2017 = vmatmul.mubr.bf16.vlgmr.msra.gmra.mxu0 %v2189_v27 }
  0x8d   : > { %1282 = vmatprep.mubr.bf16.mxu1 %v2190_v28  ;;  %2020 = vmatprep.mubr.bf16.mxu0 %v2192_v29 }
  0x94   : > { %1283 = vmatmul.mubr.bf16.gmra.mxu1 %v2193_v30  ;;  %2021 = vmatmul.mubr.bf16.gmra.mxu0 %v2194_v31 }
  0x95   : > { %1290 = vmatprep.mubr.bf16.mxu1 %v2195_v32  ;;  %2024 = vmatprep.mubr.bf16.mxu0 %v2197_v33 }
  0x9c   : > { %1291 = vmatmul.mubr.bf16.gmra.mxu1 %v2198_v34  ;;  %2025 = vmatmul.mubr.bf16.gmra.mxu0 %v2199_v35 }
  0x9d   : > { %1298 = vmatprep.mubr.bf16.mxu1 %v2200_v36  ;;  %2028 = vmatprep.mubr.bf16.mxu0 %v2202_v37 }
  0xa4   : > { %1299 = vmatmul.mubr.bf16.gmra.mxu1 %v2203_v38  ;;  %2029 = vmatmul.mubr.bf16.gmra.mxu0 %v2204_v39 }
  0xa5   : > { %1306 = vmatprep.mubr.bf16.mxu1 %v2205_v40  ;;  %2032 = vmatprep.mubr.bf16.mxu0 %v2207_v41 }
  0xac   : > { %1307 = vmatmul.mubr.bf16.gmra.mxu1 %v2208_v42  ;;  %2033 = vmatmul.mubr.bf16.gmra.mxu0 %v2209_v43 }
  0xad   : > { %1314 = vmatprep.mubr.bf16.mxu1 %v2210_v44  ;;  %2036 = vmatprep.mubr.bf16.mxu0 %v2212_v45 }
  0xb4   : > { %1315 = vmatmul.mubr.bf16.gmra.mxu1 %v2213_v46  ;;  %2037 = vmatmul.mubr.bf16.gmra.mxu0 %v2214_v47 }
  0xb5   : > { %1322 = vmatprep.mubr.bf16.mxu1 %v2215_v48  ;;  %2040 = vmatprep.mubr.bf16.mxu0 %v2217_v49 }
  0xbc   : > { %1323 = vmatmul.mubr.bf16.gmra.mxu1 %v2218_v50  ;;  %2041 = vmatmul.mubr.bf16.gmra.mxu0 %v2219_v51 }
  0xbd   : > { %1330 = vmatprep.mubr.bf16.mxu1 %v2220_v52  ;;  %2044 = vmatprep.mubr.bf16.mxu0 %v2222_v53 }
  0xc4   : > { %1331 = vmatmul.mubr.bf16.gmra.mxu1 %v2223_v54  ;;  %2045 = vmatmul.mubr.bf16.gmra.mxu0 %v2224_v55 }
  0xec   : > { %v1768_v56 = vpop.f32.mrf.mxu0  ;;  %v1840_v57 = vpop.f32.mrf.mxu1 }
  0xee   : > { %v1769_v58 = vpop.f32.mrf.mxu0  ;;  %v1841_v59 = vpop.f32.mrf.mxu1 }
  0xef   : > { %v2469_v60 = vadd.f32 %v1769_v58, %v1768_v56  ;;  %v2471_v61 = vadd.f32 %v1841_v59, %v1840_v57 }
  0xf0   : > { %v1771_v62 = vpop.f32.mrf.mxu0  ;;  %v1843_v63 = vpop.f32.mrf.mxu1 }
  0xf1   : > { %2791 = vst [vmem:[#allocation2_spill] sm:$0xff] %v2471_v61 }
  0xf2   : > { %v1772_v0 = vpop.f32.mrf.mxu0  ;;  %v1844_v1 = vpop.f32.mrf.mxu1 }
  0xf3   : > { %v2473_v2 = vadd.f32 %v1772_v0, %v1771_v62  ;;  %v2475_v3 = vadd.f32 %v1844_v1, %v1843_v63 }
  0xf4   : > { %v1774_v4 = vpop.f32.mrf.mxu0  ;;  %v1846_v5 = vpop.f32.mrf.mxu1 }
  0xf5   : > { %2792 = vst [vmem:[#allocation3_spill] sm:$0xff] %v2475_v3 }
  0xf6   : > { %v1775_v6 = vpop.f32.mrf.mxu0  ;;  %v1847_v7 = vpop.f32.mrf.mxu1 }
  0xf7   : > { %v2477_v8 = vadd.f32 %v1775_v6, %v1774_v4  ;;  %v2479_v9 = vadd.f32 %v1847_v7, %v1846_v5 }
  0xf8   : > { %v1777_v10 = vpop.f32.mrf.mxu0  ;;  %v1849_v11 = vpop.f32.mrf.mxu1 }
  0xf9   : > { %2793 = vst [vmem:[#allocation4_spill] sm:$0xff] %v2479_v9  ;;  %v2600_v9 = vld [vmem:[%s2789_s2] ss:$0 sm:$0xff] }
  0xfa   : > { %v1778_v12 = vpop.f32.mrf.mxu0  ;;  %v1850_v13 = vpop.f32.mrf.mxu1 }
  0xfb   : > { %v2481_v14 = vadd.f32 %v1778_v12, %v1777_v10  ;;  %v2483_v15 = vadd.f32 %v1850_v13, %v1849_v11 }
  0xfc   : > { %v1780_v16 = vpop.f32.mrf.mxu0  ;;  %v1852_v17 = vpop.f32.mrf.mxu1 }
  0xfd   : > { %2794 = vst [vmem:[#allocation5_spill] sm:$0xff] %v2483_v15 }
  0xfe   : > { %v1781_v18 = vpop.f32.mrf.mxu0  ;;  %v1853_v19 = vpop.f32.mrf.mxu1 }
  0xff   : > { %v2485_v20 = vadd.f32 %v1781_v18, %v1780_v16  ;;  %v2487_v21 = vadd.f32 %v1853_v19, %v1852_v17 }
 0x100   : > { %v1783_v22 = vpop.f32.mrf.mxu0  ;;  %v1855_v23 = vpop.f32.mrf.mxu1 }
 0x101   : > { %2795 = vst [vmem:[#allocation6_spill] sm:$0xff] %v2487_v21 }
 0x102   : > { %v1784_v24 = vpop.f32.mrf.mxu0  ;;  %v1856_v25 = vpop.f32.mrf.mxu1 }
 0x103   : > { %v2489_v26 = vadd.f32 %v1784_v24, %v1783_v22  ;;  %v2491_v27 = vadd.f32 %v1856_v25, %v1855_v23 }
 0x104   : > { %v1786_v28 = vpop.f32.mrf.mxu0  ;;  %v1858_v29 = vpop.f32.mrf.mxu1 }
 0x105   : > { %2796 = vst [vmem:[#allocation7_spill] sm:$0xff] %v2491_v27 }
 0x106   : > { %v1787_v30 = vpop.f32.mrf.mxu0  ;;  %v1859_v31 = vpop.f32.mrf.mxu1 }
 0x107   : > { %v2493_v32 = vadd.f32 %v1787_v30, %v1786_v28  ;;  %v2495_v33 = vadd.f32 %v1859_v31, %v1858_v29 }
 0x108   : > { %v1789_v34 = vpop.f32.mrf.mxu0  ;;  %v1861_v35 = vpop.f32.mrf.mxu1 }
 0x109   : > { %2797 = vst [vmem:[#allocation8_spill] sm:$0xff] %v2495_v33 }
 0x10a   : > { %v1790_v36 = vpop.f32.mrf.mxu0  ;;  %v1862_v37 = vpop.f32.mrf.mxu1 }
 0x10b   : > { %v2497_v38 = vadd.f32 %v1790_v36, %v1789_v34  ;;  %v2499_v39 = vadd.f32 %v1862_v37, %v1861_v35 }
 0x10c   : > { %v1792_v40 = vpop.f32.mrf.mxu0  ;;  %v2501_v41 = vpop.f32.mrf.mxu1 }
 0x10d   : > { %2798 = vst [vmem:[#allocation9_spill] sm:$0xff] %v2499_v39 }
 0x10e   : > { %v1793_v42 = vpop.f32.mrf.mxu0  ;;  %v2503_v43 = vpop.f32.mrf.mxu1 }
 0x10f   : > { %v2505_v44 = vadd.f32 %v1793_v42, %v1792_v40 }
 0x110   : > { %v1795_v45 = vpop.f32.mrf.mxu0  ;;  %v2507_v46 = vpop.f32.mrf.mxu1 }
 0x112   : > { %v1796_v47 = vpop.f32.mrf.mxu0  ;;  %v2509_v48 = vpop.f32.mrf.mxu1 }
 0x113   : > { %v2511_v49 = vadd.f32 %v1796_v47, %v1795_v45 }
 0x114   : > { %v1798_v50 = vpop.f32.mrf.mxu0  ;;  %v1886_v51 = vpop.f32.mrf.mxu1 }
 0x116   : > { %v1799_v52 = vpop.f32.mrf.mxu0  ;;  %v1887_v53 = vpop.f32.mrf.mxu1 }
 0x117   : > { %v2513_v54 = vadd.f32 %v1799_v52, %v1798_v50  ;;  %v1888_v61 = vadd.f32 %v1887_v53, %v1886_v51  ;;  %v1052_v51 = vadd.f32 %v2469_v60, %v2600_v9 }
 0x118   : > { %v1801_v55 = vpop.f32.mrf.mxu0  ;;  %v1889_v56 = vpop.f32.mrf.mxu1 }
 0x11a   : > { %v1802_v57 = vpop.f32.mrf.mxu0  ;;  %v1890_v58 = vpop.f32.mrf.mxu1 }
 0x11b   : > { %v2515_v59 = vadd.f32 %v1802_v57, %v1801_v55  ;;  %v1891_v53 = vadd.f32 %v1890_v58, %v1889_v56 }
 0x11c   : > { %v1804_v62 = vpop.f32.mrf.mxu0  ;;  %v2517_v63 = vpop.f32.mrf.mxu1 }
 0x11e   : > { %v1805_v0 = vpop.f32.mrf.mxu0  ;;  %v2519_v1 = vpop.f32.mrf.mxu1 }
 0x11f   : > { %v2521_v4 = vadd.f32 %v1805_v0, %v1804_v62 }
 0x120   : > { %v1807_v5 = vpop.f32.mrf.mxu0  ;;  %v2523_v6 = vpop.f32.mrf.mxu1 }
 0x122   : > { %v1808_v7 = vpop.f32.mrf.mxu0  ;;  %v2525_v10 = vpop.f32.mrf.mxu1 }
 0x123   : > { %v2527_v11 = vadd.f32 %v1808_v7, %v1807_v5 }
 0x124   : > { %v2529_v12 = vpop.f32.mrf.mxu0  ;;  %v1898_v13 = vpop.f32.mrf.mxu1 }
 0x126   : > { %v2531_v16 = vpop.f32.mrf.mxu0  ;;  %v1899_v17 = vpop.f32.mrf.mxu1 }
 0x127   : > { %v1900_v56 = vadd.f32 %v1899_v17, %v1898_v13  ;;  %v1068_v13 = vadd.f32 %v2485_v20, %v2600_v9  ;;  %v1897_v20 = vadd.f32 %v2525_v10, %v2523_v6  ;;  %v1092_v6 = vadd.f32 %v2513_v54, %v2600_v9 }
 0x128   : > { %v2533_v18 = vpop.f32.mrf.mxu0  ;;  %v2535_v19 = vpop.f32.mrf.mxu1 }
 0x12a   : > { %v2537_v22 = vpop.f32.mrf.mxu0  ;;  %v2539_v23 = vpop.f32.mrf.mxu1 }
 0x12c   : > { %v2541_v24 = vpop.f32.mrf.mxu0  ;;  %v2543_v25 = vpop.f32.mrf.mxu1 }
 0x12e   : > { %v2545_v28 = vpop.f32.mrf.mxu0  ;;  %v2547_v29 = vpop.f32.mrf.mxu1 }
 0x130   : > { %v2549_v30 = vpop.f32.mrf.mxu0  ;;  %v2551_v31 = vpop.f32.mrf.mxu1 }
 0x131   : > { %2799 = vst [vmem:[#allocation10_spill] sm:$0xff] %v2549_v30 }
 0x132   : > { %v2553_v34 = vpop.f32.mrf.mxu0  ;;  %v2555_v35 = vpop.f32.mrf.mxu1 }
 0x133   : > { %2800 = vst [vmem:[#allocation11_spill] sm:$0xff] %v2553_v34 }
 0x134   : > { %v2557_v36 = vpop.f32.mrf.mxu0  ;;  %v2559_v37 = vpop.f32.mrf.mxu1 }
 0x136   : > { %v2561_v40 = vpop.f32.mrf.mxu0  ;;  %v2563_v42 = vpop.f32.mrf.mxu1 }
 0x138   : > { %v2565_v45 = vpop.f32.mrf.mxu0  ;;  %v2567_v47 = vpop.f32.mrf.mxu1 }
 0x13a   : > { %v2569_v50 = vpop.f32.mrf.mxu0  ;;  %v2571_v52 = vpop.f32.mrf.mxu1 }
 0x13b   : > { %2801 = vst [vmem:[#allocation12_spill] sm:$0xff] %v2569_v50  ;;  %v1063_v50 = vadd.f32 %v2481_v14, %v2600_v9  ;;  %v1915_v54 = vadd.f32 %v2571_v52, %v2567_v47 }
 0x13c   : > { %v2573_v55 = vpop.f32.mrf.mxu0  ;;  %v2575_v57 = vpop.f32.mrf.mxu1 }
 0x13d   : > { %2802 = vst [vmem:[#allocation13_spill] sm:$0xff] %v2573_v55  ;;  %v1882_v55 = vadd.f32 %v2503_v43, %v2501_v41 }
 0x13e   : > { %v2577_v62 = vpop.f32.mrf.mxu0  ;;  %v2579_v0 = vpop.f32.mrf.mxu1 }
 0x13f   : > { %2803 = vst [vmem:[#allocation14_spill] sm:$0xff] %v2577_v62  ;;  %v1060_v62 = vadd.f32 %v2477_v8, %v2600_v9  ;;  %v1885_v8 = vadd.f32 %v2509_v48, %v2507_v46  ;;  %v1213_v43 = vadd.f32 %v1882_v55, %v1052_v51  ;;  %v1076_v46 = vadd.f32 %v2493_v32, %v2600_v9 }
 0x140   : > { %v2581_v5 = vpop.f32.mrf.mxu0  ;;  %v2583_v7 = vpop.f32.mrf.mxu1  ;;  %v1903_v32 = vadd.f32 %v2539_v23, %v2535_v19  ;;  %v1071_v19 = vadd.f32 %v2489_v26, %v2600_v9  ;;  %v1906_v26 = vadd.f32 %v2547_v29, %v2543_v25  ;;  %v1095_v25 = vadd.f32 %v2515_v59, %v2600_v9 }
 0x141   : > { %2804 = vst [vmem:[#allocation15_spill] sm:$0xff] %v2581_v5  ;;  %v1221_v34 = vadd.f32 %v1888_v61, %v1060_v62  ;;  %v1224_v62 = vadd.f32 %v1891_v53, %v1063_v50  ;;  %v1812_v29 = vadd.f32 %v2531_v16, %v2529_v12 }
 0x142   : > { %v2585_v39 = vpop.f32.mrf.mxu0  ;;  %v2587_v33 = vpop.f32.mrf.mxu1 }
 0x143   : > { %2805 = vst [vmem:[#allocation16_spill] sm:$0xff] %v2585_v39 }
 0x144   : > { %v2589_v27 = vpop.f32.mrf.mxu0  ;;  %v2591_v21 = vpop.f32.mrf.mxu1 }
 0x145   : > { %2806 = vst [vmem:[#allocation17_spill] sm:$0xff] %v2589_v27 }
 0x146   : > { %v2593_v3 = vpop.f32.mrf.mxu0  ;;  %v2595_v15 = vpop.f32.mrf.mxu1 }
 0x147   : > { %2807 = vst [vmem:[#allocation18_spill] sm:$0xff] %v2593_v3  ;;  %v1924_v12 = vadd.f32 %v2595_v15, %v2591_v21 }
 0x148   : > { %v2602_v5 = vpop.f32.mrf.mxu0  ;;  %v2604_v39 = vpop.f32.mrf.mxu1 }
 0x149   : > { %2808 = vst [vmem:[#allocation19_spill] sm:$0xff] %v2602_v5 }
 0x14a   : > { %v2610_v27 = vpop.f32.mrf.mxu0  ;;  %v2612_v3 = vpop.f32.mrf.mxu1 }
 0x14b   : > { %2809 = vst [vmem:[#allocation20_spill] sm:$0xff] %v2610_v27  ;;  %v1055_v27 = vadd.f32 %v2473_v2, %v2600_v9 }
 0x14c   : > { %v2617_v30 = vpop.f32.mrf.mxu1  ;;  %v2018_v5 = vpop.f32.mrf.mxu0 }
 0x14d   : > { %v1382_v41 = vadd.f32 %v2018_v5, %v1221_v34  ;;  %v1894_v34 = vadd.f32 %v2519_v1, %v2517_v63  ;;  %v1216_v51 = vadd.f32 %v1885_v8, %v1055_v27  ;;  %v1079_v63 = vadd.f32 %v2497_v38, %v2600_v9 }
 0x14e   : > { %v2630_v60 = vpop.f32.mrf.mxu1  ;;  %v1373_v61 = vpop.f32.mrf.mxu0  ;;  %v1912_v38 = vadd.f32 %v2563_v42, %v2559_v37  ;;  %v1084_v37 = vadd.f32 %v2505_v44, %v2600_v9 }
 0x14f   : > { %v1502_v14 = vmax.f32 %v1382_v41, 0.0  ;;  %v1374_v58 = vadd.f32 %v1373_v61, %v1213_v43  ;;  %v1237_v43 = vadd.f32 %v1900_v56, %v1076_v46  ;;  %v1240_v46 = vadd.f32 %v1903_v32, %v1079_v63 }
 0x150   : > { %v2634_v48 = vpop.f32.mrf.mxu1  ;;  %v2019_v2 = vpop.f32.mrf.mxu0  ;;  %v1253_v32 = vadd.f32 %v1912_v38, %v1092_v6  ;;  %v1245_v52 = vadd.f32 %v1906_v26, %v1084_v37  ;;  %v1087_v63 = vadd.f32 %v2511_v49, %v2600_v9  ;;  %v1918_v49 = vadd.f32 %v2579_v0, %v2575_v57 }
 0x151   : > { %1534 = vst [vmem:[%s2628_s30 + $0x10] sm:$0xff] %v1502_v14  ;;  %v1500_v55 = vmax.f32 %v1374_v58, 0.0  ;;  %v1385_v5 = vadd.f32 %v2019_v2, %v1224_v62  ;;  %v1229_v14 = vadd.f32 %v1894_v34, %v1068_v13  ;;  %v1824_v0 = vadd.f32 %v2561_v40, %v2557_v36 }
 0x152   : > { %v2641_v17 = vpop.f32.mrf.mxu1  ;;  %v1376_v50 = vpop.f32.mrf.mxu0 }
 0x153   : > { %1532 = vst [vmem:[%s2628_s30] sm:$0xff] %v1500_v55  ;;  %v1503_v53 = vmax.f32 %v1385_v5, 0.0  ;;  %v1377_v41 = vadd.f32 %v1376_v50, %v1216_v51  ;;  %v1232_v5 = vadd.f32 %v1897_v20, %v1071_v19 }
 0x154   : > { %v2648_v1 = vpop.f32.mrf.mxu1  ;;  %v2022_v27 = vpop.f32.mrf.mxu0 }
 0x155   : > { %1535 = vst [vmem:[%s2628_s30 + $0x18] sm:$0xff] %v1503_v53  ;;  %v1501_v8 = vmax.f32 %v1377_v41, 0.0  ;;  %v1398_v61 = vadd.f32 %v2022_v27, %v1237_v43  ;;  %v1909_v41 = vadd.f32 %v2555_v35, %v2551_v31  ;;  %v1108_v31 = vadd.f32 %v1812_v29, %v2600_v9  ;;  %v2812_v29 = vld [vmem:[#allocation11_spill] sm:$0xff] }
 0x156   : > { %v2655_v23 = vpop.f32.mrf.mxu1  ;;  %v1389_v56 = vpop.f32.mrf.mxu0  ;;  %v1815_v35 = vadd.f32 %v2537_v22, %v2533_v18  ;;  %v1927_v18 = vadd.f32 %v2612_v3, %v2604_v39  ;;  %v1103_v39 = vadd.f32 %v2527_v11, %v2600_v9 }
 0x157   : > { %1533 = vst [vmem:[%s2628_s30 + $0x8] sm:$0xff] %v1501_v8  ;;  %v1506_v58 = vmax.f32 %v1398_v61, 0.0  ;;  %v1390_v62 = vadd.f32 %v1389_v56, %v1229_v14  ;;  %v1256_v8 = vadd.f32 %v1915_v54, %v1095_v25  ;;  %v1248_v21 = vadd.f32 %v1909_v41, %v1087_v63  ;;  %v2810_v54 = vld [vmem:[#allocation12_spill] sm:$0xff]  ;;  %v2811_v25 = vld [vmem:[#allocation10_spill] sm:$0xff]  ;;  %v2813_v63 = vld [vmem:[#allocation17_spill] sm:$0xff] }
 0x158   : > { %v2662_v10 = vpop.f32.mrf.mxu1  ;;  %v2023_v2 = vpop.f32.mrf.mxu0  ;;  %v1100_v56 = vadd.f32 %v2521_v4, %v2600_v9  ;;  %v1111_v57 = vadd.f32 %v1815_v35, %v2600_v9  ;;  %v1921_v4 = vadd.f32 %v2587_v33, %v2583_v7  ;;  %v1936_v36 = vadd.f32 %v2655_v23, %v2648_v1 }
 0x159   : > { %1538 = vst [vmem:[%s2628_s30 + $0x30] sm:$0xff] %v1506_v58  ;;  %v1504_v34 = vmax.f32 %v1390_v62, 0.0  ;;  %v1401_v55 = vadd.f32 %v2023_v2, %v1240_v46  ;;  %v1269_v46 = vadd.f32 %v1924_v12, %v1108_v31  ;;  %v1124_v7 = vadd.f32 %v1824_v0, %v2600_v9 }
 0x15a   : > { %v2669_v42 = vpop.f32.mrf.mxu1  ;;  %v1392_v51 = vpop.f32.mrf.mxu0  ;;  %v1261_v3 = vadd.f32 %v1918_v49, %v1100_v56  ;;  %v1272_v33 = vadd.f32 %v1927_v18, %v1111_v57  ;;  %v1264_v1 = vadd.f32 %v1921_v4, %v1103_v39  ;;  %v2816_v49 = vld [vmem:[#allocation14_spill] sm:$0xff]  ;;  %v2820_v39 = vld [vmem:[#allocation16_spill] sm:$0xff] }
 0x15b   : > { %1536 = vst [vmem:[%s2628_s30 + $0x20] sm:$0xff] %v1504_v34  ;;  %v1507_v13 = vmax.f32 %v1401_v55, 0.0  ;;  %v1393_v50 = vadd.f32 %v1392_v51, %v1232_v5  ;;  %v1818_v55 = vadd.f32 %v2545_v28, %v2541_v24  ;;  %v1930_v24 = vadd.f32 %v2630_v60, %v2617_v30 }
 0x15c   : > { %v2678_v53 = vpop.f32.mrf.mxu1  ;;  %v2026_v44 = vpop.f32.mrf.mxu0  ;;  %v1285_v30 = vadd.f32 %v1936_v36, %v1124_v7 }
 0x15d   : > { %1539 = vst [vmem:[%s2628_s30 + $0x38] sm:$0xff] %v1507_v13  ;;  %v1505_v43 = vmax.f32 %v1393_v50, 0.0  ;;  %v1414_v47 = vadd.f32 %v2026_v44, %v1253_v32  ;;  %v1827_v13 = vadd.f32 %v2810_v54, %v2565_v45  ;;  %v1116_v23 = vadd.f32 %v1818_v55, %v2600_v9 }
 0x15e   : > { %v2685_v27 = vpop.f32.mrf.mxu1  ;;  %v1405_v59 = vpop.f32.mrf.mxu0  ;;  %v1821_v44 = vadd.f32 %v2812_v29, %v2811_v25  ;;  %v1939_v45 = vadd.f32 %v2669_v42, %v2662_v10 }
 0x15f   : > { %1537 = vst [vmem:[%s2628_s30 + $0x28] sm:$0xff] %v1505_v43  ;;  %v1510_v16 = vmax.f32 %v1414_v47, 0.0  ;;  %v1406_v20 = vadd.f32 %v1405_v59, %v1245_v52  ;;  %v1127_v60 = vadd.f32 %v1827_v13, %v2600_v9  ;;  %v2814_v59 = vld [vmem:[#allocation18_spill] sm:$0xff]  ;;  %v1277_v10 = vadd.f32 %v1930_v24, %v1116_v23 }
 0x160   : > { %v2693_v61 = vpop.f32.mrf.mxu1  ;;  %v2027_v14 = vpop.f32.mrf.mxu0  ;;  %v1836_v12 = vadd.f32 %v2814_v59, %v2813_v63  ;;  %v1119_v42 = vadd.f32 %v1821_v44, %v2600_v9  ;;  %v2821_v44 = vld [vmem:[#allocation4_spill] sm:$0xff] }
 0x161   : > { %1542 = vst [vmem:[%s2628_s30 + $0x50] sm:$0xff] %v1510_v16  ;;  %v1508_v19 = vmax.f32 %v1406_v20, 0.0  ;;  %v1417_v15 = vadd.f32 %v2027_v14, %v1256_v8  ;;  %v1933_v8 = vadd.f32 %v2641_v17, %v2634_v48  ;;  %v2815_v14 = vld [vmem:[#allocation13_spill] sm:$0xff]  ;;  %v2817_v17 = vld [vmem:[#allocation19_spill] sm:$0xff] }
 0x162   : > { %v2700_v38 = vpop.f32.mrf.mxu1  ;;  %v1408_v58 = vpop.f32.mrf.mxu0  ;;  %v1140_v48 = vadd.f32 %v1836_v12, %v2600_v9 }
 0x163   : > { %1540 = vst [vmem:[%s2628_s30 + $0x40] sm:$0xff] %v1508_v19  ;;  %v1511_v22 = vmax.f32 %v1417_v15, 0.0  ;;  %v1409_v62 = vadd.f32 %v1408_v58, %v1248_v21  ;;  %v1830_v19 = vadd.f32 %v2816_v49, %v2815_v14  ;;  %v1945_v54 = vadd.f32 %v2700_v38, %v2693_v61 }
 0x164   : > { %v1946_v6 = vpop.f32.mrf.mxu1  ;;  %v2030_v2 = vpop.f32.mrf.mxu0 }
 0x165   : > { %1543 = vst [vmem:[%s2628_s30 + $0x58] sm:$0xff] %v1511_v22  ;;  %v1509_v26 = vmax.f32 %v1409_v62, 0.0  ;;  %v1430_v34 = vadd.f32 %v2030_v2, %v1269_v46  ;;  %v1288_v22 = vadd.f32 %v1939_v45, %v1127_v60  ;;  %v2818_v62 = vld [vmem:[#allocation20_spill] sm:$0xff]  ;;  %v1942_v2 = vadd.f32 %v2685_v27, %v2678_v53 }
 0x166   : > { %v1947_v5 = vpop.f32.mrf.mxu1  ;;  %v1421_v37 = vpop.f32.mrf.mxu0  ;;  %v1839_v46 = vadd.f32 %v2818_v62, %v2817_v17 }
 0x167   : > { %1541 = vst [vmem:[%s2628_s30 + $0x48] sm:$0xff] %v1509_v26  ;;  %v1514_v40 = vmax.f32 %v1430_v34, 0.0  ;;  %v1422_v51 = vadd.f32 %v1421_v37, %v1261_v3  ;;  %v1948_v56 = vadd.f32 %v1947_v5, %v1946_v6  ;;  %v1280_v6 = vadd.f32 %v1933_v8, %v1119_v42  ;;  %v2819_v3 = vld [vmem:[#allocation15_spill] sm:$0xff] }
 0x168   : > { %v1949_v50 = vpop.f32.mrf.mxu1  ;;  %v2031_v11 = vpop.f32.mrf.mxu0  ;;  %v1132_v34 = vadd.f32 %v1830_v19, %v2600_v9  ;;  %v1833_v55 = vadd.f32 %v2820_v39, %v2819_v3  ;;  %v1143_v53 = vadd.f32 %v1839_v46, %v2600_v9 }
 0x169   : > { %1546 = vst [vmem:[%s2628_s30 + $0x70] sm:$0xff] %v1514_v40  ;;  %v1512_v28 = vmax.f32 %v1422_v51, 0.0  ;;  %v1433_v32 = vadd.f32 %v2031_v11, %v1272_v33  ;;  %v1301_v33 = vadd.f32 %v1948_v56, %v1140_v48 }
 0x16a   : > { %v1950_v41 = vpop.f32.mrf.mxu1  ;;  %v1424_v43 = vpop.f32.mrf.mxu0  ;;  %v1293_v24 = vadd.f32 %v1942_v2, %v1132_v34  ;;  %v2825_v34 = vld [vmem:[#allocation6_spill] sm:$0xff] }
 0x16b   : > { %1544 = vst [vmem:[%s2628_s30 + $0x60] sm:$0xff] %v1512_v28  ;;  %v1515_v47 = vmax.f32 %v1433_v32, 0.0  ;;  %v1425_v52 = vadd.f32 %v1424_v43, %v1264_v1  ;;  %v1951_v36 = vadd.f32 %v1950_v41, %v1949_v50  ;;  %v1135_v28 = vadd.f32 %v1833_v55, %v2600_v9 }
 0x16c   : > { %v1952_v16 = vpop.f32.mrf.mxu1  ;;  %v2034_v20 = vpop.f32.mrf.mxu0  ;;  %v1156_v41 = vadd.f32 %v2821_v44, %v2600_v9  ;;  %v1164_v3 = vadd.f32 %v2825_v34, %v2600_v9  ;;  %v2828_v44 = vld [vmem:[#allocation9_spill] sm:$0xff] }
 0x16d   : > { %1547 = vst [vmem:[%s2628_s30 + $0x78] sm:$0xff] %v1515_v47  ;;  %v1513_v31 = vmax.f32 %v1425_v52, 0.0  ;;  %v1446_v35 = vadd.f32 %v2034_v20, %v1285_v30  ;;  %v1304_v29 = vadd.f32 %v1951_v36, %v1143_v53  ;;  %v1296_v52 = vadd.f32 %v1945_v54, %v1135_v28  ;;  %v2822_v30 = vld [vmem:[#allocation2_spill] sm:$0xff]  ;;  %v2827_v54 = vld [vmem:[#allocation8_spill] sm:$0xff] }
 0x16e   : > { %v1953_v15 = vpop.f32.mrf.mxu1  ;;  %v1437_v21 = vpop.f32.mrf.mxu0  ;;  %v1148_v60 = vadd.f32 %v2822_v30, %v2600_v9 }
 0x16f   : > { %1545 = vst [vmem:[%s2628_s30 + $0x68] sm:$0xff] %v1513_v31  ;;  %v1518_v58 = vmax.f32 %v1446_v35, 0.0  ;;  %v1438_v18 = vadd.f32 %v1437_v21, %v1277_v10  ;;  %v1954_v38 = vadd.f32 %v1953_v15, %v1952_v16  ;;  %v2823_v35 = vld [vmem:[#allocation5_spill] sm:$0xff] }
 0x170   : > { %v1955_v57 = vpop.f32.mrf.mxu1  ;;  %v2035_v0 = vpop.f32.mrf.mxu0  ;;  %v1159_v10 = vadd.f32 %v2823_v35, %v2600_v9 }
 0x171   : > { %1550 = vst [vmem:[%s2628_s30 + $0x90] sm:$0xff] %v1518_v58  ;;  %v1516_v4 = vmax.f32 %v1438_v18, 0.0  ;;  %v1449_v26 = vadd.f32 %v2035_v0, %v1288_v22  ;;  %v1309_v15 = vadd.f32 %v1954_v38, %v1148_v60  ;;  %v2824_v58 = vld [vmem:[#allocation3_spill] sm:$0xff] }
 0x172   : > { %v1956_v5 = vpop.f32.mrf.mxu1  ;;  %v1440_v37 = vpop.f32.mrf.mxu0  ;;  %v1151_v18 = vadd.f32 %v2824_v58, %v2600_v9 }
 0x173   : > { %1548 = vst [vmem:[%s2628_s30 + $0x80] sm:$0xff] %v1516_v4  ;;  %v1519_v40 = vmax.f32 %v1449_v26, 0.0  ;;  %v1441_v51 = vadd.f32 %v1440_v37, %v1280_v6  ;;  %v1957_v14 = vadd.f32 %v1956_v5, %v1955_v57 }
 0x174   : > { %v1958_v27 = vpop.f32.mrf.mxu1  ;;  %v2038_v7 = vpop.f32.mrf.mxu0 }
 0x175   : > { %1551 = vst [vmem:[%s2628_s30 + $0x98] sm:$0xff] %v1519_v40  ;;  %v1517_v13 = vmax.f32 %v1441_v51, 0.0  ;;  %v1462_v11 = vadd.f32 %v2038_v7, %v1301_v33  ;;  %v1312_v4 = vadd.f32 %v1957_v14, %v1151_v18 }
 0x176   : > { %v1959_v50 = vpop.f32.mrf.mxu1  ;;  %v1453_v32 = vpop.f32.mrf.mxu0 }
 0x177   : > { %1549 = vst [vmem:[%s2628_s30 + $0x88] sm:$0xff] %v1517_v13  ;;  %v1522_v1 = vmax.f32 %v1462_v11, 0.0  ;;  %v1960_v23 = vadd.f32 %v1959_v50, %v1958_v27  ;;  %v1454_v25 = vadd.f32 %v1453_v32, %v1293_v24  ;;  %v2826_v27 = vld [vmem:[#allocation7_spill] sm:$0xff]  ;;  %v1172_v13 = vadd.f32 %v2827_v54, %v2600_v9 }
 0x178   : > { %v1961_v43 = vpop.f32.mrf.mxu1  ;;  %v2039_v61 = vpop.f32.mrf.mxu0  ;;  %v1167_v7 = vadd.f32 %v2826_v27, %v2600_v9 }
 0x179   : > { %1554 = vst [vmem:[%s2628_s30 + $0xb0] sm:$0xff] %v1522_v1  ;;  %v1520_v45 = vmax.f32 %v1454_v25, 0.0  ;;  %v1465_v47 = vadd.f32 %v2039_v61, %v1304_v29  ;;  %v1317_v31 = vadd.f32 %v1960_v23, %v1156_v41  ;;  %v1175_v41 = vadd.f32 %v2828_v44, %v2600_v9 }
 0x17a   : > { %v1962_v63 = vpop.f32.mrf.mxu1  ;;  %v1456_v59 = vpop.f32.mrf.mxu0 }
 0x17b   : > { %1552 = vst [vmem:[%s2628_s30 + $0xa0] sm:$0xff] %v1520_v45  ;;  %v1523_v12 = vmax.f32 %v1465_v47, 0.0  ;;  %v1963_v20 = vadd.f32 %v1962_v63, %v1961_v43  ;;  %v1457_v8 = vadd.f32 %v1456_v59, %v1296_v52 }
 0x17c   : > { %v1964_v16 = vpop.f32.mrf.mxu1  ;;  %v2042_v42 = vpop.f32.mrf.mxu0 }
 0x17d   : > { %1555 = vst [vmem:[%s2628_s30 + $0xb8] sm:$0xff] %v1523_v12  ;;  %v1521_v49 = vmax.f32 %v1457_v8, 0.0  ;;  %v1478_v19 = vadd.f32 %v2042_v42, %v1317_v31  ;;  %v1320_v17 = vadd.f32 %v1963_v20, %v1159_v10 }
 0x17e   : > { %v1965_v21 = vpop.f32.mrf.mxu1  ;;  %v1469_v56 = vpop.f32.mrf.mxu0 }
 0x17f   : > { %1553 = vst [vmem:[%s2628_s30 + $0xa8] sm:$0xff] %v1521_v49  ;;  %v1526_v22 = vmax.f32 %v1478_v19, 0.0  ;;  %v1470_v48 = vadd.f32 %v1469_v56, %v1309_v15  ;;  %v1966_v0 = vadd.f32 %v1965_v21, %v1964_v16 }
 0x180   : > { %v1967_v62 = vpop.f32.mrf.mxu1  ;;  %v2043_v46 = vpop.f32.mrf.mxu0 }
 0x181   : > { %1558 = vst [vmem:[%s2628_s30 + $0xd0] sm:$0xff] %v1526_v22  ;;  %v1524_v57 = vmax.f32 %v1470_v48, 0.0  ;;  %v1481_v2 = vadd.f32 %v2043_v46, %v1320_v17  ;;  %v1325_v51 = vadd.f32 %v1966_v0, %v1164_v3 }
 0x182   : > { %v1968_v26 = vpop.f32.mrf.mxu1  ;;  %v1472_v6 = vpop.f32.mrf.mxu0 }
 0x183   : > { %1556 = vst [vmem:[%s2628_s30 + $0xc0] sm:$0xff] %v1524_v57  ;;  %v1527_v39 = vmax.f32 %v1481_v2, 0.0  ;;  %v1473_v55 = vadd.f32 %v1472_v6, %v1312_v4  ;;  %v1969_v36 = vadd.f32 %v1968_v26, %v1967_v62 }
 0x184   : > { %v1970_v5 = vpop.f32.mrf.mxu1  ;;  %v2046_v37 = vpop.f32.mrf.mxu0 }
 0x185   : > { %1559 = vst [vmem:[%s2628_s30 + $0xd8] sm:$0xff] %v1527_v39  ;;  %v1525_v40 = vmax.f32 %v1473_v55, 0.0  ;;  %v1328_v23 = vadd.f32 %v1969_v36, %v1167_v7 }
 0x186   : > { %v1971_v33 = vpop.f32.mrf.mxu1  ;;  %v1485_v53 = vpop.f32.mrf.mxu0 }
 0x187   : > { %1557 = vst [vmem:[%s2628_s30 + $0xc8] sm:$0xff] %v1525_v40  ;;  %v1972_v11 = vadd.f32 %v1971_v33, %v1970_v5  ;;  %v1486_v24 = vadd.f32 %v1485_v53, %v1325_v51 }
 0x188   : > { %v1973_v28 = vpop.f32.mrf.mxu1  ;;  %v2047_v50 = vpop.f32.mrf.mxu0 }
 0x189   : > { %v1333_v32 = vadd.f32 %v1972_v11, %v1172_v13  ;;  %v1528_v1 = vmax.f32 %v1486_v24, 0.0 }
 0x18a   : > { %v1974_v25 = vpop.f32.mrf.mxu1  ;;  %v1488_v29 = vpop.f32.mrf.mxu0 }
 0x18b   : > { %v1494_v43 = vadd.f32 %v2046_v37, %v1333_v32  ;;  %1560 = vst [vmem:[%s2628_s30 + $0xe0] sm:$0xff] %v1528_v1  ;;  %v1975_v61 = vadd.f32 %v1974_v25, %v1973_v28  ;;  %v1489_v38 = vadd.f32 %v1488_v29, %v1328_v23 }
 0x18d   : > { %v1530_v45 = vmax.f32 %v1494_v43, 0.0  ;;  %v1336_v47 = vadd.f32 %v1975_v61, %v1175_v41  ;;  %v1529_v52 = vmax.f32 %v1489_v38, 0.0 }
 0x18f   : > { %1562 = vst [vmem:[%s2628_s30 + $0xf0] sm:$0xff] %v1530_v45  ;;  %v1497_v30 = vadd.f32 %v2047_v50, %v1336_v47  ;;  %1561 = vst [vmem:[%s2628_s30 + $0xe8] sm:$0xff] %v1529_v52 }
 0x191   : > { %v1531_v60 = vmax.f32 %v1497_v30, 0.0 }
 0x193   : > { %1563 = vst [vmem:[%s2628_s30 + $0xf8] sm:$0xff] %v1531_v60 }
 0x194 PF: > { %s13_s12 = sadd.s32 1, %s2231_s12  }
 0x195   : > { %p10_p4 = scmp.ge.s32.totalorder %s13_s12, 4  }
 0x197   :  { %12 = sbr.rel (!%p10_p4) target bundleno = 1 (0x1), region = 62 }

// kernel: inception_a.12
= control target key start
LH: loop header
LB: loop body
LE: loop exit
PB: predicated region body
PF: predicated region fallthrough
CT: control target
= control target key end

     0   :  { %s2958_s12 = smov 0   ;;  %s3620_s0 = inlined_call_operand.vmem [shape: bf16[512,896], index: 0, kind: input, shape index: {}]   ;;  %s3621_s1 = inlined_call_operand.vmem [shape: bf16[896,128], index: 1, kind: input, shape index: {}]   ;;  %s3622_s2 = inlined_call_operand.vmem [shape: f32[1,128], index: 2, kind: input, shape index: {}]   ;;  %s3623_s3 = inlined_call_operand.vmem [shape: f32[512,128], index: 3, kind: output, shape index: {}]  }
   0x1 LB: > { %s2101_s13 = sadd.s32 4294967295, %s2936_s12   ;;  %p2105_p0 = scmp.ge.s32.totalorder %s2936_s12, 1  ;;  %s2936_s12 = sphi %s2958_s12, %s13_s12  }
   0x2   : > { %p139_p1 = scmp.lt.s32.totalorder %s2936_s12, 3 }
   0x4   : > { %p140_p2 = pnand %p2105_p0, %p139_p1 }
   0x6   : > { %143 = sbr.rel (%p140_p2) target bundleno = 468 (0x1d4), region = 32 }
   0xb   : > { %v2714_v0 = vld [vmem:[%s3621_s1 + $0x78] sm:$0xff]   ;;  %s2106_s16 = sshll.u32 %s2101_s13, 5  ;;  %v2716_v2 = vld [vmem:[%s3621_s1 + $0x70] sm:$0xff]   ;;  %v2718_v4 = vld [vmem:[%s3621_s1 + $0x68] sm:$0xff]  }
   0xc   : > { %v2715_v1 = vld [vmem:[%s3621_s1 + $0x38] sm:$0xff]   ;;  %2281 = vmatprep.subr.bf16.mxu0 %v2714_v0  ;;  %2689 = vmatprep.subr.bf16.mxu1 %v2714_v0  ;;  %p165_p3 = scmp.lt.s32.totalorder %s2106_s16, 63  ;;  %v2717_v3 = vld [vmem:[%s3621_s1 + $0x30] sm:$0xff]   ;;  %v2719_v5 = vld [vmem:[%s3621_s1 + $0x28] sm:$0xff]  }
   0xd   : > { %2282 = vmatpush3.bf16.msra.mxu0 %v2715_v1  ;;  %2697 = vmatpush3.bf16.msra.mxu1 %v2715_v1  ;;  %v2720_v6 = vld [vmem:[%s3621_s1 + $0x60] sm:$0xff]   ;;  %v2722_v8 = vld [vmem:[%s3621_s1 + $0x58] sm:$0xff]   ;;  %v2724_v10 = vld [vmem:[%s3621_s1 + $0x50] sm:$0xff]  }
   0xe   : > { %2283 = vmatprep.subr.bf16.mxu0 %v2716_v2  ;;  %2690 = vmatprep.subr.bf16.mxu1 %v2716_v2  ;;  %s3649_s16 = smov (!%p165_p3, %s2106_s16), 63  ;;  %v2721_v7 = vld [vmem:[%s3621_s1 + $0x20] sm:$0xff]   ;;  %v2723_v9 = vld [vmem:[%s3621_s1 + $0x18] sm:$0xff]   ;;  %v2725_v13 = vld [vmem:[%s3621_s1 + $0x10] sm:$0xff]  }
   0xf   : > { %s2705_s29 = smul.u32 28, %s3649_s16  ;;  %v2726_v14 = vld [vmem:[%s3621_s1 + $0x48] sm:$0xff]   ;;  %v2728_v16 = vld [vmem:[%s3621_s1 + $0x40] sm:$0xff]   ;;  %v2736_v18 = vld [vmem:[%s3621_s1 + $0xf8] sm:$0xff]   ;;  %s2109_s8 = sshll.u32 %s3649_s16, 3 }
  0x10   : > { %v2727_v15 = vld [vmem:[%s3621_s1 + $0x8] sm:$0xff]   ;;  %v2729_v17 = vld [vmem:[%s3621_s1] sm:$0xff]   ;;  %v2737_v21 = vld [vmem:[%s3621_s1 + $0x178] sm:$0xff]   ;;  %s3501_s13 = scalar_lea.vmem %s3623_s3, %s2109_s8 }
  0x11   : > { %2284 = vmatpush3.bf16.msra.mxu0 %v2717_v3  ;;  %2698 = vmatpush3.bf16.msra.mxu1 %v2717_v3  ;;  %s2999_s9 = scalar_lea.vmem %s3620_s0, %s2705_s29  ;;  %v2738_v22 = vld [vmem:[%s3621_s1 + $0xb8] sm:$0xff]   ;;  %v2740_v24 = vld [vmem:[%s3621_s1 + $0xf0] sm:$0xff]   ;;  %v2748_v32 = vld [vmem:[%s3621_s1 + $0xe8] sm:$0xff]  }
  0x12   : > { %2285 = vmatprep.subr.bf16.mxu0 %v2718_v4  ;;  %2691 = vmatprep.subr.bf16.mxu1 %v2718_v4  ;;  %v2732_v11 = vld [vmem:[%s2999_s9 + $0x4] ss:$28 sps:$4 sm:$0xff]   ;;  %v2739_v23 = vld [vmem:[%s3621_s1 + $0x138] sm:$0xff]   ;;  %v2751_v27 = vld [vmem:[%s3621_s1 + $0x170] sm:$0xff]  }
  0x13   : > { %v2735_v12 = vld [vmem:[%s2999_s9 + $0x2a4] ss:$28 sps:$4 sm:$0xff]   ;;  %1369 = vmatprep.mubr.bf16.mxu0 %v2732_v11  ;;  %v2742_v25 = vld [vmem:[%s2999_s9 + $0x3c] ss:$28 sps:$4 sm:$0xff]   ;;  %v2741_v28 = vld [vmem:[%s3621_s1 + $0xb0] sm:$0xff]  }
  0x14   : > { %1465 = vmatprep.mubr.bf16.mxu1 %v2735_v12  ;;  %v2730_v19 = vld [vmem:[%s2999_s9] ss:$28 sps:$4 sm:$0xff]   ;;  %v2753_v29 = vld [vmem:[%s3621_s1 + $0x130] sm:$0xff]   ;;  %v2749_v33 = vld [vmem:[%s3621_s1 + $0xa8] sm:$0xff]  }
  0x15   : > { %2286 = vmatpush3.bf16.msra.mxu0 %v2719_v5  ;;  %2699 = vmatpush3.bf16.msra.mxu1 %v2719_v5  ;;  %v2733_v20 = vld [vmem:[%s2999_s9 + $0x2a0] ss:$28 sps:$4 sm:$0xff]   ;;  %v2746_v30 = vld [vmem:[%s2999_s9 + $0x38] ss:$28 sps:$4 sm:$0xff]   ;;  %v2758_v39 = vld [vmem:[%s2999_s9 + $0x70] ss:$28 sps:$4 sm:$0xff]  }
  0x16   : > { %2287 = vmatprep.subr.bf16.mxu0 %v2720_v6  ;;  %2692 = vmatprep.subr.bf16.mxu1 %v2720_v6  ;;  %v2744_v26 = vld [vmem:[%s2999_s9 + $0x2dc] ss:$28 sps:$4 sm:$0xff]   ;;  %v2750_v34 = vld [vmem:[%s3621_s1 + $0xe0] sm:$0xff]   ;;  %v2754_v35 = vld [vmem:[%s2999_s9 + $0x74] ss:$28 sps:$4 sm:$0xff]  }
  0x17   : > { %v2747_v31 = vld [vmem:[%s2999_s9 + $0x2d8] ss:$28 sps:$4 sm:$0xff]   ;;  %v2752_v37 = vld [vmem:[%s3621_s1 + $0xa0] sm:$0xff]   ;;  %v2759_v40 = vld [vmem:[%s2999_s9 + $0x310] ss:$28 sps:$4 sm:$0xff]  }
  0x18   : > { %v2756_v36 = vld [vmem:[%s2999_s9 + $0x314] ss:$28 sps:$4 sm:$0xff]   ;;  %v2760_v38 = vld [vmem:[%s3621_s1 + $0xd8] sm:$0xff]   ;;  %v2771_v41 = vld [vmem:[%s3621_s1 + $0x168] sm:$0xff]  }
  0x19   : > { %2288 = vmatpush3.bf16.msra.mxu0 %v2721_v7  ;;  %2700 = vmatpush3.bf16.msra.mxu1 %v2721_v7  ;;  %v2761_v42 = vld [vmem:[%s3621_s1 + $0x98] sm:$0xff]   ;;  %v2762_v43 = vld [vmem:[%s3621_s1 + $0xd0] sm:$0xff]   ;;  %v2773_v44 = vld [vmem:[%s3621_s1 + $0x128] sm:$0xff]  }
  0x1a   : > { %2289 = vmatprep.subr.bf16.mxu0 %v2722_v8  ;;  %2693 = vmatprep.subr.bf16.mxu1 %v2722_v8  ;;  %v2764_v45 = vld [vmem:[%s2999_s9 + $0xac] ss:$28 sps:$4 sm:$0xff]   ;;  %v2763_v47 = vld [vmem:[%s3621_s1 + $0x90] sm:$0xff]   ;;  %v2782_v51 = vld [vmem:[%s3621_s1 + $0x160] sm:$0xff]  }
  0x1b   : > { %v2766_v46 = vld [vmem:[%s2999_s9 + $0x34c] ss:$28 sps:$4 sm:$0xff]   ;;  %v2784_v53 = vld [vmem:[%s3621_s1 + $0x120] sm:$0xff]   ;;  %v2783_v58 = vld [vmem:[%s3621_s1 + $0x1b8] sm:$0xff]  }
  0x1c   : > { %v2770_v48 = vld [vmem:[%s3621_s1 + $0xc8] sm:$0xff]   ;;  %v2776_v54 = vld [vmem:[%s2999_s9 + $0xe4] ss:$28 sps:$4 sm:$0xff]   ;;  %v2797_v60 = vld [vmem:[%s3621_s1 + $0x158] sm:$0xff]  }
  0x1d   : > { %2290 = vmatpush3.bf16.msra.mxu0 %v2723_v9  ;;  %2701 = vmatpush3.bf16.msra.mxu1 %v2723_v9  ;;  %v2768_v49 = vld [vmem:[%s2999_s9 + $0xa8] ss:$28 sps:$4 sm:$0xff]   ;;  %v2798_v61 = vld [vmem:[%s3621_s1 + $0x118] sm:$0xff]   ;;  %v2799_v1 = vld [vmem:[%s3621_s1 + $0x1b0] sm:$0xff]  }
  0x1e   : > { %2291 = vmatprep.subr.bf16.mxu0 %v2724_v10  ;;  %2694 = vmatprep.subr.bf16.mxu1 %v2724_v10  ;;  %v2769_v50 = vld [vmem:[%s2999_s9 + $0x348] ss:$28 sps:$4 sm:$0xff]   ;;  %v2781_v62 = vld [vmem:[%s2999_s9 + $0xe0] ss:$28 sps:$4 sm:$0xff]   ;;  %v2806_v2 = vld [vmem:[%s3621_s1 + $0x150] sm:$0xff]  }
  0x1f   : > { %v2772_v52 = vld [vmem:[%s3621_s1 + $0x88] sm:$0xff]   ;;  %v2774_v55 = vld [vmem:[%s3621_s1 + $0xc0] sm:$0xff]   ;;  %v2785_v63 = vld [vmem:[%s2999_s9 + $0x11c] ss:$28 sps:$4 sm:$0xff]  }
  0x20   : > { %v2780_v56 = vld [vmem:[%s2999_s9 + $0xc] ss:$28 sps:$4 sm:$0xff]   ;;  %v2775_v57 = vld [vmem:[%s3621_s1 + $0x80] sm:$0xff]   ;;  %v2807_v3 = vld [vmem:[%s3621_s1 + $0x110] sm:$0xff]  }
  0x21   : > { %2292 = vmatpush3.bf16.msra.mxu0 %v2725_v13  ;;  %2702 = vmatpush3.bf16.msra.mxu1 %v2725_v13  ;;  %v2778_v59 = vld [vmem:[%s2999_s9 + $0x8] ss:$28 sps:$4 sm:$0xff]   ;;  %v2789_v4 = vld [vmem:[%s2999_s9 + $0x118] ss:$28 sps:$4 sm:$0xff]   ;;  %v2790_v5 = vld [vmem:[%s2999_s9 + $0x40] ss:$28 sps:$4 sm:$0xff]  }
  0x22   : > { %2293 = vmatprep.subr.bf16.mxu0 %v2726_v14  ;;  %2695 = vmatprep.subr.bf16.mxu1 %v2726_v14  ;;  %v2787_v0 = vld [vmem:[%s2999_s9 + $0x44] ss:$28 sps:$4 sm:$0xff]   ;;  %v2791_v6 = vld [vmem:[%s2999_s9 + $0x154] ss:$28 sps:$4 sm:$0xff]   ;;  %v2814_v7 = vld [vmem:[%s3621_s1 + $0x1a8] sm:$0xff]  }
  0x23   : > { %v2793_v8 = vld [vmem:[%s2999_s9 + $0x7c] ss:$28 sps:$4 sm:$0xff]   ;;  %v2821_v9 = vld [vmem:[%s3621_s1 + $0x148] sm:$0xff]   ;;  %v2802_v14 = vld [vmem:[%s2999_s9 + $0xb4] ss:$28 sps:$4 sm:$0xff]  }
  0x24   : > { %v2822_v10 = vld [vmem:[%s3621_s1 + $0x108] sm:$0xff]   ;;  %v2796_v12 = vld [vmem:[%s2999_s9 + $0x78] ss:$28 sps:$4 sm:$0xff]  }
  0x25   : > { %2294 = vmatpush3.bf16.msra.mxu0 %v2727_v15  ;;  %2703 = vmatpush3.bf16.msra.mxu1 %v2727_v15  ;;  %v2795_v11 = vld [vmem:[%s2999_s9 + $0x150] ss:$28 sps:$4 sm:$0xff]   ;;  %v2829_v15 = vld [vmem:[%s3621_s1 + $0x140] sm:$0xff]  }
  0x26   : > { %2295 = vmatprep.subr.bf16.mxu0 %v2728_v16  ;;  %2696 = vmatprep.subr.bf16.mxu1 %v2728_v16  ;;  %v2800_v13 = vld [vmem:[%s2999_s9 + $0x18c] ss:$28 sps:$4 sm:$0xff]   ;;  %v2830_v16 = vld [vmem:[%s3621_s1 + $0x1a0] sm:$0xff]  }
  0x29   : > { %2296 = vmatpush3.bf16.msra.mxu0 %v2729_v17  ;;  %2704 = vmatpush3.bf16.msra.mxu1 %v2729_v17  ;;  %v2831_v17 = vld [vmem:[%s3621_s1 + $0x100] sm:$0xff]  }
  0x2a   : > { %2393 = vmatprep.subr.bf16.mxu1 %v2736_v18  ;;  %2505 = vmatprep.subr.bf16.mxu0 %v2737_v21  ;;  %v2804_v18 = vld [vmem:[%s2999_s9 + $0x188] ss:$28 sps:$4 sm:$0xff]  }
  0x2b   : > { %v2810_v21 = vld [vmem:[%s2999_s9 + $0xec] ss:$28 sps:$4 sm:$0xff]  }
  0x2c   : > { %1370 = vmatmul.mubr.bf16.vlgmr.msra.gmra.mxu0 %v2730_v19  ;;  %1466 = vmatmul.mubr.bf16.vlgmr.msra.gmra.mxu1 %v2733_v20  ;;  %v2805_v19 = vld [vmem:[%s2999_s9 + $0xb0] ss:$28 sps:$4 sm:$0xff]   ;;  %v2808_v20 = vld [vmem:[%s2999_s9 + $0x1c4] ss:$28 sps:$4 sm:$0xff]  }
  0x2d   : > { %2394 = vmatpush3.bf16.msra.mxu1 %v2738_v22  ;;  %2506 = vmatpush3.bf16.msra.mxu0 %v2739_v23  ;;  %v2844_v22 = vld [vmem:[%s3621_s1 + $0x198] sm:$0xff]  }
  0x2e   : > { %2395 = vmatprep.subr.bf16.mxu1 %v2740_v24  ;;  %1377 = vmatprep.mubr.bf16.mxu0 %v2742_v25  ;;  %v2812_v23 = vld [vmem:[%s2999_s9 + $0x1c0] ss:$28 sps:$4 sm:$0xff]   ;;  %v2813_v24 = vld [vmem:[%s2999_s9 + $0xe8] ss:$28 sps:$4 sm:$0xff]   ;;  %v2857_v25 = vld [vmem:[%s3621_s1 + $0x190] sm:$0xff]  }
  0x2f   : > { %1473 = vmatprep.mubr.bf16.mxu1 %v2744_v26  ;;  %2507 = vmatprep.subr.bf16.mxu0 %v2751_v27  ;;  %v2815_v26 = vld [vmem:[%s2999_s9 + $0x1fc] ss:$28 sps:$4 sm:$0xff]   ;;  %v2817_v27 = vld [vmem:[%s2999_s9 + $0x124] ss:$28 sps:$4 sm:$0xff]  }
  0x31   : > { %2396 = vmatpush3.bf16.msra.mxu1 %v2741_v28  ;;  %2508 = vmatpush3.bf16.msra.mxu0 %v2753_v29  ;;  %v2870_v28 = vld [vmem:[%s3621_s1 + $0x188] sm:$0xff]   ;;  %v2819_v29 = vld [vmem:[%s2999_s9 + $0x1f8] ss:$28 sps:$4 sm:$0xff]  }
  0x32   : > { %2397 = vmatprep.subr.bf16.mxu1 %v2748_v32  ;;  %2509 = vmatprep.subr.bf16.mxu0 %v2771_v41  ;;  %v2825_v32 = vld [vmem:[%s2999_s9 + $0x15c] ss:$28 sps:$4 sm:$0xff]   ;;  %v2842_v41 = vld [vmem:[%s2999_s9 + $0x14] ss:$28 sps:$4 sm:$0xff]  }
  0x34   : > { %1378 = vmatmul.mubr.bf16.gmra.mxu0 %v2746_v30  ;;  %1474 = vmatmul.mubr.bf16.gmra.mxu1 %v2747_v31  ;;  %v2820_v30 = vld [vmem:[%s2999_s9 + $0x120] ss:$28 sps:$4 sm:$0xff]   ;;  %v2823_v31 = vld [vmem:[%s2999_s9 + $0x234] ss:$28 sps:$4 sm:$0xff]  }
  0x35   : > { %2398 = vmatpush3.bf16.msra.mxu1 %v2749_v33  ;;  %1385 = vmatprep.mubr.bf16.mxu0 %v2754_v35  ;;  %v2883_v33 = vld [vmem:[%s3621_s1 + $0x180] sm:$0xff]   ;;  %v2828_v35 = vld [vmem:[%s2999_s9 + $0x158] ss:$28 sps:$4 sm:$0xff]  }
  0x36   : > { %2399 = vmatprep.subr.bf16.mxu1 %v2750_v34  ;;  %1481 = vmatprep.mubr.bf16.mxu1 %v2756_v36  ;;  %v2827_v34 = vld [vmem:[%s2999_s9 + $0x230] ss:$28 sps:$4 sm:$0xff]  }
  0x37   : > { %2510 = vmatpush3.bf16.msra.mxu0 %v2773_v44  ;;  %v2832_v36 = vld [vmem:[%s2999_s9 + $0x26c] ss:$28 sps:$4 sm:$0xff]   ;;  %v2845_v44 = vld [vmem:[%s2999_s9 + $0x204] ss:$28 sps:$4 sm:$0xff]  }
  0x38   : > { %2511 = vmatprep.subr.bf16.mxu0 %v2782_v51  ;;  %v2856_v51 = vld [vmem:[%s2999_s9 + $0x80] ss:$28 sps:$4 sm:$0xff]  }
  0x39   : > { %2400 = vmatpush3.bf16.msra.mxu1 %v2752_v37  ;;  %v2834_v37 = vld [vmem:[%s2999_s9 + $0x194] ss:$28 sps:$4 sm:$0xff]  }
  0x3a   : > { %2401 = vmatprep.subr.bf16.mxu1 %v2760_v38  ;;  %v2836_v38 = vld [vmem:[%s2999_s9 + $0x268] ss:$28 sps:$4 sm:$0xff]  }
  0x3b   : > { %2512 = vmatpush3.bf16.msra.mxu0 %v2784_v53  ;;  %v2860_v53 = vld [vmem:[%s2999_s9 + $0xbc] ss:$28 sps:$4 sm:$0xff]  }
  0x3c   : > { %1386 = vmatmul.mubr.bf16.gmra.mxu0 %v2758_v39  ;;  %1482 = vmatmul.mubr.bf16.gmra.mxu1 %v2759_v40  ;;  %v2837_v39 = vld [vmem:[%s2999_s9 + $0x190] ss:$28 sps:$4 sm:$0xff]  }
  0x3d   : > { %2402 = vmatpush3.bf16.msra.mxu1 %v2761_v42  ;;  %1393 = vmatprep.mubr.bf16.mxu0 %v2764_v45  ;;  %v2838_v40 = vld [vmem:[%s2999_s9 + $0x1cc] ss:$28 sps:$4 sm:$0xff]  }
  0x3e   : > { %2403 = vmatprep.subr.bf16.mxu1 %v2762_v43  ;;  %1489 = vmatprep.mubr.bf16.mxu1 %v2766_v46  ;;  %v2840_v42 = vld [vmem:[%s2999_s9 + $0x10] ss:$28 sps:$4 sm:$0xff]   ;;  %v2843_v43 = vld [vmem:[%s2999_s9 + $0x1c8] ss:$28 sps:$4 sm:$0xff]   ;;  %v2849_v46 = vld [vmem:[%s2999_s9 + $0x200] ss:$28 sps:$4 sm:$0xff]  }
  0x3f   : > { %2513 = vmatprep.subr.bf16.mxu0 %v2797_v60  ;;  %v2847_v45 = vld [vmem:[%s2999_s9 + $0x4c] ss:$28 sps:$4 sm:$0xff]   ;;  %v2871_v60 = vld [vmem:[%s2999_s9 + $0x2e4] ss:$28 sps:$4 sm:$0xff]  }
  0x40   : > { %2514 = vmatpush3.bf16.msra.mxu0 %v2798_v61  ;;  %v2873_v61 = vld [vmem:[%s2999_s9 + $0x12c] ss:$28 sps:$4 sm:$0xff]  }
  0x41   : > { %2404 = vmatpush3.bf16.msra.mxu1 %v2763_v47  ;;  %2515 = vmatprep.subr.bf16.mxu0 %v2806_v2  ;;  %v2850_v47 = vld [vmem:[%s2999_s9 + $0x48] ss:$28 sps:$4 sm:$0xff]   ;;  %v2881_v2 = vld [vmem:[%s2999_s9 + $0x318] ss:$28 sps:$4 sm:$0xff]  }
  0x42   : > { %2405 = vmatprep.subr.bf16.mxu1 %v2770_v48  ;;  %v2851_v48 = vld [vmem:[%s2999_s9 + $0x23c] ss:$28 sps:$4 sm:$0xff]  }
  0x44   : > { %1394 = vmatmul.mubr.bf16.gmra.mxu0 %v2768_v49  ;;  %1490 = vmatmul.mubr.bf16.gmra.mxu1 %v2769_v50  ;;  %v2853_v49 = vld [vmem:[%s2999_s9 + $0x84] ss:$28 sps:$4 sm:$0xff]   ;;  %v2855_v50 = vld [vmem:[%s2999_s9 + $0x238] ss:$28 sps:$4 sm:$0xff]  }
  0x45   : > { %2406 = vmatpush3.bf16.msra.mxu1 %v2772_v52  ;;  %1401 = vmatprep.mubr.bf16.mxu0 %v2776_v54  ;;  %v2858_v52 = vld [vmem:[%s2999_s9 + $0x274] ss:$28 sps:$4 sm:$0xff]  }
  0x46   : > { %2407 = vmatprep.subr.bf16.mxu1 %v2774_v55  ;;  %1530 = vmatprep.mubr.bf16.mxu1 %v2780_v56  ;;  %v2862_v54 = vld [vmem:[%s2999_s9 + $0x270] ss:$28 sps:$4 sm:$0xff]   ;;  %v2863_v55 = vld [vmem:[%s2999_s9 + $0xb8] ss:$28 sps:$4 sm:$0xff]  }
  0x47   : > { %2516 = vmatpush3.bf16.msra.mxu0 %v2807_v3  ;;  %v2864_v56 = vld [vmem:[%s2999_s9 + $0x2ac] ss:$28 sps:$4 sm:$0xff]   ;;  %v2882_v3 = vld [vmem:[%s2999_s9 + $0x160] ss:$28 sps:$4 sm:$0xff]  }
  0x48   : > { %2517 = vmatprep.subr.bf16.mxu0 %v2821_v9  ;;  %v2892_v9 = vld [vmem:[%s2999_s9 + $0x18] ss:$28 sps:$4 sm:$0xff]  }
  0x49   : > { %2408 = vmatpush3.bf16.msra.mxu1 %v2775_v57  ;;  %v2866_v57 = vld [vmem:[%s2999_s9 + $0xf4] ss:$28 sps:$4 sm:$0xff]  }
  0x4a   : > { %2641 = vmatprep.subr.bf16.mxu1 %v2783_v58 }
  0x4b   : > { %2518 = vmatpush3.bf16.msra.mxu0 %v2822_v10  ;;  %v2893_v10 = vld [vmem:[%s2999_s9 + $0x1d0] ss:$28 sps:$4 sm:$0xff]  }
  0x4c   : > { %1402 = vmatmul.mubr.bf16.gmra.mxu0 %v2781_v62  ;;  %1531 = vmatmul.mubr.bf16.vlgmr.msra.gmra.mxu1 %v2778_v59  ;;  %v2869_v59 = vld [vmem:[%s2999_s9 + $0xf0] ss:$28 sps:$4 sm:$0xff]   ;;  %v2875_v62 = vld [vmem:[%s2999_s9 + $0x2e0] ss:$28 sps:$4 sm:$0xff]  }
  0x4d   : > { %2642 = vmatpush3.bf16.msra.mxu1 %v2783_v58  ;;  %1409 = vmatprep.mubr.bf16.mxu0 %v2785_v63  ;;  %v2868_v58 = vld [vmem:[%s2999_s9 + $0x2a8] ss:$28 sps:$4 sm:$0xff]  }
  0x4e   : > { %1538 = vmatprep.mubr.bf16.mxu1 %v2787_v0  ;;  %2643 = vmatprep.subr.bf16.mxu1 %v2799_v1  ;;  %v2876_v63 = vld [vmem:[%s2999_s9 + $0x128] ss:$28 sps:$4 sm:$0xff]   ;;  %v2877_v0 = vld [vmem:[%s2999_s9 + $0x31c] ss:$28 sps:$4 sm:$0xff]  }
  0x4f   : > { %2519 = vmatprep.subr.bf16.mxu0 %v2829_v15  ;;  %v2899_v15 = vld [vmem:[%s2999_s9 + $0xc0] ss:$28 sps:$4 sm:$0xff]  }
  0x50   : > { %2520 = vmatpush3.bf16.msra.mxu0 %v2831_v17  ;;  %v2902_v17 = vld [vmem:[%s2999_s9 + $0xf8] ss:$28 sps:$4 sm:$0xff]  }
  0x51   : > { %2644 = vmatpush3.bf16.msra.mxu1 %v2799_v1  ;;  %v2879_v1 = vld [vmem:[%s2999_s9 + $0x164] ss:$28 sps:$4 sm:$0xff]  }
  0x52   : > { %2645 = vmatprep.subr.bf16.mxu1 %v2814_v7 }
  0x54   : > { %1410 = vmatmul.mubr.bf16.gmra.mxu0 %v2789_v4  ;;  %1539 = vmatmul.mubr.bf16.gmra.mxu1 %v2790_v5  ;;  %v2884_v4 = vld [vmem:[%s2999_s9 + $0x354] ss:$28 sps:$4 sm:$0xff]   ;;  %v2886_v5 = vld [vmem:[%s2999_s9 + $0x19c] ss:$28 sps:$4 sm:$0xff]  }
  0x55   : > { %1417 = vmatprep.mubr.bf16.mxu0 %v2791_v6  ;;  %1546 = vmatprep.mubr.bf16.mxu1 %v2793_v8  ;;  %v2888_v6 = vld [vmem:[%s2999_s9 + $0x350] ss:$28 sps:$4 sm:$0xff]  }
  0x56   : > { %2646 = vmatpush3.bf16.msra.mxu1 %v2814_v7  ;;  %v2889_v7 = vld [vmem:[%s2999_s9 + $0x198] ss:$28 sps:$4 sm:$0xff]  }
  0x57   : > { %2647 = vmatprep.subr.bf16.mxu1 %v2830_v16  ;;  %v2890_v8 = vld [vmem:[%s2999_s9 + $0x1d4] ss:$28 sps:$4 sm:$0xff]  }
  0x5a   : > { %2648 = vmatpush3.bf16.msra.mxu1 %v2830_v16  ;;  %v2900_v16 = vld [vmem:[%s2999_s9 + $0x244] ss:$28 sps:$4 sm:$0xff]  }
  0x5b   : > { %2649 = vmatprep.subr.bf16.mxu1 %v2844_v22 }
  0x5c   : > { %1418 = vmatmul.mubr.bf16.gmra.mxu0 %v2795_v11  ;;  %1547 = vmatmul.mubr.bf16.gmra.mxu1 %v2796_v12  ;;  %v2894_v11 = vld [vmem:[%s2999_s9 + $0x50] ss:$28 sps:$4 sm:$0xff]  }
  0x5d   : > { %1425 = vmatprep.mubr.bf16.mxu0 %v2800_v13  ;;  %1554 = vmatprep.mubr.bf16.mxu1 %v2802_v14  ;;  %v2895_v12 = vld [vmem:[%s2999_s9 + $0x20c] ss:$28 sps:$4 sm:$0xff]  }
  0x5e   : > { %2650 = vmatpush3.bf16.msra.mxu1 %v2844_v22  ;;  %v2897_v13 = vld [vmem:[%s2999_s9 + $0x88] ss:$28 sps:$4 sm:$0xff]   ;;  %v2908_v22 = vld [vmem:[%s2999_s9 + $0x278] ss:$28 sps:$4 sm:$0xff]  }
  0x5f   : > { %2651 = vmatprep.subr.bf16.mxu1 %v2857_v25  ;;  %v2898_v14 = vld [vmem:[%s2999_s9 + $0x208] ss:$28 sps:$4 sm:$0xff]  }
  0x62   : > { %2652 = vmatpush3.bf16.msra.mxu1 %v2857_v25  ;;  %v2912_v25 = vld [vmem:[%s2999_s9 + $0x1d8] ss:$28 sps:$4 sm:$0xff]  }
  0x63   : > { %2653 = vmatprep.subr.bf16.mxu1 %v2870_v28 }
  0x64   : > { %1426 = vmatmul.mubr.bf16.gmra.mxu0 %v2804_v18  ;;  %1555 = vmatmul.mubr.bf16.gmra.mxu1 %v2805_v19  ;;  %v2903_v18 = vld [vmem:[%s2999_s9 + $0x240] ss:$28 sps:$4 sm:$0xff]   ;;  %v2904_v19 = vld [vmem:[%s2999_s9 + $0x130] ss:$28 sps:$4 sm:$0xff]  }
  0x65   : > { %1433 = vmatprep.mubr.bf16.mxu0 %v2808_v20  ;;  %1562 = vmatprep.mubr.bf16.mxu1 %v2810_v21  ;;  %v2905_v20 = vld [vmem:[%s2999_s9 + $0x27c] ss:$28 sps:$4 sm:$0xff]   ;;  %v2907_v21 = vld [vmem:[%s2999_s9 + $0x168] ss:$28 sps:$4 sm:$0xff]  }
  0x66   : > { %2654 = vmatpush3.bf16.msra.mxu1 %v2870_v28  ;;  %v2915_v28 = vld [vmem:[%s2999_s9 + $0x2ec] ss:$28 sps:$4 sm:$0xff]  }
  0x67   : > { %2655 = vmatprep.subr.bf16.mxu1 %v2883_v33 }
  0x6a   : > { %2656 = vmatpush3.bf16.msra.mxu1 %v2883_v33 }
  0x6c   : > { %1434 = vmatmul.mubr.bf16.gmra.mxu0 %v2812_v23  ;;  %1563 = vmatmul.mubr.bf16.gmra.mxu1 %v2813_v24  ;;  %v2909_v23 = vld [vmem:[%s2999_s9 + $0x1a0] ss:$28 sps:$4 sm:$0xff]   ;;  %v2910_v24 = vld [vmem:[%s2999_s9 + $0x2b4] ss:$28 sps:$4 sm:$0xff]  }
  0x6d   : > { %1441 = vmatprep.mubr.bf16.mxu0 %v2815_v26  ;;  %1570 = vmatprep.mubr.bf16.mxu1 %v2817_v27  ;;  %v2913_v26 = vld [vmem:[%s2999_s9 + $0x2b0] ss:$28 sps:$4 sm:$0xff]  }
  0x6e   : > { %v2914_v27 = vld [vmem:[%s2999_s9 + $0x210] ss:$28 sps:$4 sm:$0xff]  }
  0x74   : > { %1442 = vmatmul.mubr.bf16.gmra.mxu0 %v2819_v29  ;;  %1571 = vmatmul.mubr.bf16.gmra.mxu1 %v2820_v30  ;;  %v2917_v29 = vld [vmem:[%s2999_s9 + $0x248] ss:$28 sps:$4 sm:$0xff]  }
  0x75   : > { %1449 = vmatprep.mubr.bf16.mxu0 %v2823_v31  ;;  %1578 = vmatprep.mubr.bf16.mxu1 %v2825_v32 }
  0x7c   : > { %1450 = vmatmul.mubr.bf16.gmra.mxu0 %v2827_v34  ;;  %1579 = vmatmul.mubr.bf16.gmra.mxu1 %v2828_v35 }
  0x7d   : > { %1457 = vmatprep.mubr.bf16.mxu0 %v2832_v36  ;;  %1586 = vmatprep.mubr.bf16.mxu1 %v2834_v37 }
  0x84   : > { %1458 = vmatmul.mubr.bf16.gmra.mxu0 %v2836_v38  ;;  %1587 = vmatmul.mubr.bf16.gmra.mxu1 %v2837_v39  ;;  %v2918_v38 = vld [vmem:[%s2999_s9 + $0x2e8] ss:$28 sps:$4 sm:$0xff]   ;;  %v2919_v39 = vld [vmem:[%s2999_s9 + $0x280] ss:$28 sps:$4 sm:$0xff]  }
  0x85   : > { %1594 = vmatprep.mubr.bf16.mxu1 %v2838_v40  ;;  %1691 = vmatprep.mubr.bf16.mxu0 %v2842_v41  ;;  %v2920_v40 = vld [vmem:[%s2999_s9 + $0x324] ss:$28 sps:$4 sm:$0xff]   ;;  %v2922_v41 = vld [vmem:[%s2999_s9 + $0x2b8] ss:$28 sps:$4 sm:$0xff]  }
  0x8c   : > { %1595 = vmatmul.mubr.bf16.gmra.mxu1 %v2843_v43  ;;  %1692 = vmatmul.mubr.bf16.vlgmr.msra.gmra.mxu0 %v2840_v42 }
  0x8d   : > { %1602 = vmatprep.mubr.bf16.mxu1 %v2845_v44  ;;  %1699 = vmatprep.mubr.bf16.mxu0 %v2847_v45 }
  0x94   : > { %1603 = vmatmul.mubr.bf16.gmra.mxu1 %v2849_v46  ;;  %1700 = vmatmul.mubr.bf16.gmra.mxu0 %v2850_v47 }
  0x95   : > { %1610 = vmatprep.mubr.bf16.mxu1 %v2851_v48  ;;  %1707 = vmatprep.mubr.bf16.mxu0 %v2853_v49 }
  0x9c   : > { %1611 = vmatmul.mubr.bf16.gmra.mxu1 %v2855_v50  ;;  %1708 = vmatmul.mubr.bf16.gmra.mxu0 %v2856_v51 }
  0x9d   : > { %1618 = vmatprep.mubr.bf16.mxu1 %v2858_v52  ;;  %1715 = vmatprep.mubr.bf16.mxu0 %v2860_v53 }
  0xa4   : > { %1619 = vmatmul.mubr.bf16.gmra.mxu1 %v2862_v54  ;;  %1716 = vmatmul.mubr.bf16.gmra.mxu0 %v2863_v55  ;;  %v2923_v54 = vld [vmem:[%s2999_s9 + $0x320] ss:$28 sps:$4 sm:$0xff]   ;;  %v2924_v55 = vld [vmem:[%s2999_s9 + $0x2f0] ss:$28 sps:$4 sm:$0xff]  }
  0xa5   : > { %1626 = vmatprep.mubr.bf16.mxu1 %v2864_v56  ;;  %1723 = vmatprep.mubr.bf16.mxu0 %v2866_v57  ;;  %v2925_v56 = vld [vmem:[%s2999_s9 + $0x35c] ss:$28 sps:$4 sm:$0xff]   ;;  %v2927_v57 = vld [vmem:[%s2999_s9 + $0x328] ss:$28 sps:$4 sm:$0xff]  }
  0xac   : > { %1627 = vmatmul.mubr.bf16.gmra.mxu1 %v2868_v58  ;;  %1724 = vmatmul.mubr.bf16.gmra.mxu0 %v2869_v59 }
  0xad   : > { %1634 = vmatprep.mubr.bf16.mxu1 %v2871_v60  ;;  %1731 = vmatprep.mubr.bf16.mxu0 %v2873_v61 }
  0xb4   : > { %1635 = vmatmul.mubr.bf16.gmra.mxu1 %v2875_v62  ;;  %1732 = vmatmul.mubr.bf16.gmra.mxu0 %v2876_v63 }
  0xb5   : > { %1642 = vmatprep.mubr.bf16.mxu1 %v2877_v0  ;;  %1739 = vmatprep.mubr.bf16.mxu0 %v2879_v1 }
  0xbc   : > { %1643 = vmatmul.mubr.bf16.gmra.mxu1 %v2881_v2  ;;  %1740 = vmatmul.mubr.bf16.gmra.mxu0 %v2882_v3 }
  0xbd   : > { %1650 = vmatprep.mubr.bf16.mxu1 %v2884_v4  ;;  %1747 = vmatprep.mubr.bf16.mxu0 %v2886_v5 }
  0xc4   : > { %1651 = vmatmul.mubr.bf16.gmra.mxu1 %v2888_v6  ;;  %1748 = vmatmul.mubr.bf16.gmra.mxu0 %v2889_v7  ;;  %v2928_v6 = vld [vmem:[%s2999_s9 + $0x358] ss:$28 sps:$4 sm:$0xff]   ;;  %v2929_v7 = vld [vmem:[%s2999_s9 + $0x360] ss:$28 sps:$4 sm:$0xff]  }
  0xc5   : > { %1755 = vmatprep.mubr.bf16.mxu0 %v2890_v8  ;;  %2657 = vmatprep.mubr.bf16.mxu1 %v2892_v9 }
  0xcc   : > { %1756 = vmatmul.mubr.bf16.gmra.mxu0 %v2893_v10  ;;  %2658 = vmatmul.mubr.bf16.vlgmr.msra.gmra.mxu1 %v2894_v11 }
  0xcd   : > { %1763 = vmatprep.mubr.bf16.mxu0 %v2895_v12  ;;  %2661 = vmatprep.mubr.bf16.mxu1 %v2897_v13 }
  0xd4   : > { %1764 = vmatmul.mubr.bf16.gmra.mxu0 %v2898_v14  ;;  %2662 = vmatmul.mubr.bf16.gmra.mxu1 %v2899_v15 }
  0xd5   : > { %1771 = vmatprep.mubr.bf16.mxu0 %v2900_v16  ;;  %2665 = vmatprep.mubr.bf16.mxu1 %v2902_v17 }
  0xdc   : > { %1772 = vmatmul.mubr.bf16.gmra.mxu0 %v2903_v18  ;;  %2666 = vmatmul.mubr.bf16.gmra.mxu1 %v2904_v19 }
  0xdd   : > { %1779 = vmatprep.mubr.bf16.mxu0 %v2905_v20  ;;  %2669 = vmatprep.mubr.bf16.mxu1 %v2907_v21 }
  0xe4   : > { %1780 = vmatmul.mubr.bf16.gmra.mxu0 %v2908_v22  ;;  %2670 = vmatmul.mubr.bf16.gmra.mxu1 %v2909_v23 }
  0xe5   : > { %1787 = vmatprep.mubr.bf16.mxu0 %v2910_v24  ;;  %2673 = vmatprep.mubr.bf16.mxu1 %v2912_v25  ;;  %v3283_v24 = vld [vmem:[%s3622_s2] ss:$0 sm:$0xff] }
  0xec   : > { %v2297_v30 = vpop.f32.mrf.mxu0  ;;  %v2369_v31 = vpop.f32.mrf.mxu1  ;;  %1788 = vmatmul.mubr.bf16.gmra.mxu0 %v2913_v26  ;;  %2674 = vmatmul.mubr.bf16.gmra.mxu1 %v2914_v27 }
  0xed   : > { %1795 = vmatprep.mubr.bf16.mxu0 %v2915_v28  ;;  %2677 = vmatprep.mubr.bf16.mxu1 %v2917_v29 }
  0xee   : > { %v2298_v32 = vpop.f32.mrf.mxu0  ;;  %v2370_v33 = vpop.f32.mrf.mxu1 }
  0xef   : > { %v3244_v34 = vadd.f32 %v2298_v32, %v2297_v30  ;;  %v3246_v35 = vadd.f32 %v2370_v33, %v2369_v31 }
  0xf0   : > { %v2300_v36 = vpop.f32.mrf.mxu0  ;;  %v2372_v37 = vpop.f32.mrf.mxu1 }
  0xf1   : > { %v1372_v29 = vadd.f32 %v3244_v34, %v3283_v24 }
  0xf2   : > { %v2301_v42 = vpop.f32.mrf.mxu0  ;;  %v2373_v43 = vpop.f32.mrf.mxu1 }
  0xf3   : > { %v3252_v44 = vadd.f32 %v2301_v42, %v2300_v36  ;;  %v3254_v45 = vadd.f32 %v2373_v43, %v2372_v37 }
  0xf4   : > { %v2303_v46 = vpop.f32.mrf.mxu0  ;;  %v2375_v47 = vpop.f32.mrf.mxu1  ;;  %1796 = vmatmul.mubr.bf16.gmra.mxu0 %v2918_v38  ;;  %2678 = vmatmul.mubr.bf16.gmra.mxu1 %v2919_v39 }
  0xf5   : > { %1803 = vmatprep.mubr.bf16.mxu0 %v2920_v40  ;;  %2681 = vmatprep.mubr.bf16.mxu1 %v2922_v41  ;;  %v1375_v39 = vadd.f32 %v3252_v44, %v3283_v24 }
  0xf6   : > { %v2304_v48 = vpop.f32.mrf.mxu0  ;;  %v2376_v49 = vpop.f32.mrf.mxu1 }
  0xf7   : > { %v3256_v50 = vadd.f32 %v2304_v48, %v2303_v46  ;;  %v3258_v51 = vadd.f32 %v2376_v49, %v2375_v47 }
  0xf8   : > { %v2306_v52 = vpop.f32.mrf.mxu0  ;;  %v2378_v53 = vpop.f32.mrf.mxu1 }
  0xf9   : > { %v1380_v48 = vadd.f32 %v3256_v50, %v3283_v24 }
  0xfa   : > { %v2307_v58 = vpop.f32.mrf.mxu0  ;;  %v2379_v59 = vpop.f32.mrf.mxu1 }
  0xfb   : > { %v3264_v60 = vadd.f32 %v2307_v58, %v2306_v52  ;;  %v3266_v61 = vadd.f32 %v2379_v59, %v2378_v53 }
  0xfc   : > { %v2309_v62 = vpop.f32.mrf.mxu0  ;;  %v2381_v63 = vpop.f32.mrf.mxu1  ;;  %1804 = vmatmul.mubr.bf16.gmra.mxu0 %v2923_v54  ;;  %2682 = vmatmul.mubr.bf16.gmra.mxu1 %v2924_v55 }
  0xfd   : > { %1811 = vmatprep.mubr.bf16.mxu0 %v2925_v56  ;;  %2685 = vmatprep.mubr.bf16.mxu1 %v2927_v57  ;;  %v1383_v57 = vadd.f32 %v3264_v60, %v3283_v24 }
  0xfe   : > { %v2310_v0 = vpop.f32.mrf.mxu0  ;;  %v2382_v1 = vpop.f32.mrf.mxu1 }
  0xff   : > { %v2311_v2 = vadd.f32 %v2310_v0, %v2309_v62  ;;  %v3268_v3 = vadd.f32 %v2382_v1, %v2381_v63 }
 0x100   : > { %v2312_v4 = vpop.f32.mrf.mxu0  ;;  %v2384_v5 = vpop.f32.mrf.mxu1 }
 0x102   : > { %v2313_v8 = vpop.f32.mrf.mxu0  ;;  %v2385_v9 = vpop.f32.mrf.mxu1 }
 0x103   : > { %v2314_v10 = vadd.f32 %v2313_v8, %v2312_v4  ;;  %v3272_v11 = vadd.f32 %v2385_v9, %v2384_v5  ;;  %v1388_v4 = vadd.f32 %v2311_v2, %v3283_v24 }
 0x104   : > { %v2315_v12 = vpop.f32.mrf.mxu0  ;;  %v2387_v13 = vpop.f32.mrf.mxu1  ;;  %1812 = vmatmul.mubr.bf16.gmra.mxu0 %v2928_v6  ;;  %2686 = vmatmul.mubr.bf16.gmra.mxu1 %v2929_v7 }
 0x106   : > { %v2316_v14 = vpop.f32.mrf.mxu0  ;;  %v2388_v15 = vpop.f32.mrf.mxu1 }
 0x107   : > { %v2317_v16 = vadd.f32 %v2316_v14, %v2315_v12  ;;  %v3274_v17 = vadd.f32 %v2388_v15, %v2387_v13  ;;  %v1391_v13 = vadd.f32 %v2314_v10, %v3283_v24 }
 0x108   : > { %v2318_v18 = vpop.f32.mrf.mxu0  ;;  %v2390_v19 = vpop.f32.mrf.mxu1 }
 0x10a   : > { %v2319_v20 = vpop.f32.mrf.mxu0  ;;  %v2391_v21 = vpop.f32.mrf.mxu1 }
 0x10b   : > { %v3276_v22 = vadd.f32 %v2319_v20, %v2318_v18  ;;  %v3278_v23 = vadd.f32 %v2391_v21, %v2390_v19 }
 0x10c   : > { %v2321_v25 = vpop.f32.mrf.mxu0  ;;  %v2409_v26 = vpop.f32.mrf.mxu1 }
 0x10e   : > { %v2322_v27 = vpop.f32.mrf.mxu0  ;;  %v2410_v28 = vpop.f32.mrf.mxu1 }
 0x10f   : > { %v3287_v30 = vadd.f32 %v2322_v27, %v2321_v25  ;;  %v2411_v31 = vadd.f32 %v2410_v28, %v2409_v26  ;;  %v1396_v25 = vadd.f32 %v2317_v16, %v3283_v24 }
 0x110   : > { %v2324_v32 = vpop.f32.mrf.mxu0  ;;  %v2412_v33 = vpop.f32.mrf.mxu1 }
 0x111   : > { %v3289_v36 = vadd.f32 %v2411_v31, %v1372_v29 }
 0x112   : > { %v2325_v37 = vpop.f32.mrf.mxu0  ;;  %v2413_v38 = vpop.f32.mrf.mxu1 }
 0x113   : > { %v3293_v40 = vadd.f32 %v2325_v37, %v2324_v32  ;;  %v2414_v41 = vadd.f32 %v2413_v38, %v2412_v33  ;;  %v1399_v33 = vadd.f32 %v3276_v22, %v3283_v24 }
 0x114   : > { %v2327_v42 = vpop.f32.mrf.mxu0  ;;  %v2415_v43 = vpop.f32.mrf.mxu1 }
 0x115   : > { %v3295_v46 = vadd.f32 %v2414_v41, %v1375_v39 }
 0x116   : > { %v2328_v34 = vpop.f32.mrf.mxu0  ;;  %v2416_v47 = vpop.f32.mrf.mxu1 }
 0x117   : > { %v3299_v49 = vadd.f32 %v2328_v34, %v2327_v42  ;;  %v2417_v52 = vadd.f32 %v2416_v47, %v2415_v43  ;;  %v1404_v34 = vadd.f32 %v3287_v30, %v3283_v24 }
 0x118   : > { %v2330_v53 = vpop.f32.mrf.mxu0  ;;  %v2418_v54 = vpop.f32.mrf.mxu1 }
 0x119   : > { %v3301_v55 = vadd.f32 %v2417_v52, %v1380_v48 }
 0x11a   : > { %v2331_v44 = vpop.f32.mrf.mxu0  ;;  %v2419_v56 = vpop.f32.mrf.mxu1 }
 0x11b   : > { %v3305_v58 = vadd.f32 %v2331_v44, %v2330_v53  ;;  %v2420_v59 = vadd.f32 %v2419_v56, %v2418_v54  ;;  %v1407_v56 = vadd.f32 %v3293_v40, %v3283_v24 }
 0x11c   : > { %v2333_v62 = vpop.f32.mrf.mxu0  ;;  %v2421_v63 = vpop.f32.mrf.mxu1 }
 0x11d   : > { %v3307_v0 = vadd.f32 %v2420_v59, %v1383_v57  ;;  %v1415_v40 = vadd.f32 %v3305_v58, %v3283_v24 }
 0x11e   : > { %v2334_v50 = vpop.f32.mrf.mxu0  ;;  %v2422_v1 = vpop.f32.mrf.mxu1 }
 0x11f   : > { %v3310_v5 = vadd.f32 %v2334_v50, %v2333_v62  ;;  %v2423_v6 = vadd.f32 %v2422_v1, %v2421_v63 }
 0x120   : > { %v2336_v7 = vpop.f32.mrf.mxu0  ;;  %v2424_v8 = vpop.f32.mrf.mxu1 }
 0x121   : > { %v3312_v9 = vadd.f32 %v2423_v6, %v1388_v4  ;;  %v1412_v4 = vadd.f32 %v3299_v49, %v3283_v24  ;;  %v1420_v49 = vadd.f32 %v3310_v5, %v3283_v24 }
 0x122   : > { %v2337_v12 = vpop.f32.mrf.mxu0  ;;  %v2425_v60 = vpop.f32.mrf.mxu1 }
 0x123   : > { %v3315_v14 = vadd.f32 %v2337_v12, %v2336_v7  ;;  %v2426_v15 = vadd.f32 %v2425_v60, %v2424_v8 }
 0x124   : > { %v2339_v18 = vpop.f32.mrf.mxu0  ;;  %v2427_v19 = vpop.f32.mrf.mxu1 }
 0x125   : > { %v3317_v20 = vadd.f32 %v2426_v15, %v1391_v13  ;;  %v1423_v58 = vadd.f32 %v3315_v14, %v3283_v24 }
 0x126   : > { %v2340_v21 = vpop.f32.mrf.mxu0  ;;  %v2428_v2 = vpop.f32.mrf.mxu1 }
 0x127   : > { %v3320_v26 = vadd.f32 %v2340_v21, %v2339_v18  ;;  %v2429_v27 = vadd.f32 %v2428_v2, %v2427_v19 }
 0x128   : > { %v2342_v28 = vpop.f32.mrf.mxu0  ;;  %v2430_v29 = vpop.f32.mrf.mxu1 }
 0x129   : > { %v3322_v31 = vadd.f32 %v2429_v27, %v1396_v25  ;;  %v1428_v5 = vadd.f32 %v3320_v26, %v3283_v24 }
 0x12a   : > { %v2343_v32 = vpop.f32.mrf.mxu0  ;;  %v2431_v10 = vpop.f32.mrf.mxu1 }
 0x12b   : > { %v3326_v37 = vadd.f32 %v2343_v32, %v2342_v28  ;;  %v2432_v38 = vadd.f32 %v2431_v10, %v2430_v29 }
 0x12c   : > { %v2345_v39 = vpop.f32.mrf.mxu0  ;;  %v2433_v41 = vpop.f32.mrf.mxu1 }
 0x12d   : > { %v3328_v42 = vadd.f32 %v2432_v38, %v1399_v33  ;;  %v1431_v14 = vadd.f32 %v3326_v37, %v3283_v24 }
 0x12e   : > { %v2346_v16 = vpop.f32.mrf.mxu0  ;;  %v2434_v43 = vpop.f32.mrf.mxu1 }
 0x12f   : > { %v3332_v47 = vadd.f32 %v2346_v16, %v2345_v39  ;;  %v2435_v48 = vadd.f32 %v2434_v43, %v2433_v41 }
 0x130   : > { %v2348_v52 = vpop.f32.mrf.mxu0  ;;  %v2436_v53 = vpop.f32.mrf.mxu1 }
 0x131   : > { %v3334_v54 = vadd.f32 %v2435_v48, %v1404_v34 }
 0x132   : > { %v2349_v22 = vpop.f32.mrf.mxu0  ;;  %v2437_v44 = vpop.f32.mrf.mxu1 }
 0x133   : > { %v2350_v57 = vadd.f32 %v2349_v22, %v2348_v52  ;;  %v2438_v59 = vadd.f32 %v2437_v44, %v2436_v53 }
 0x134   : > { %v2351_v62 = vpop.f32.mrf.mxu0  ;;  %v2439_v63 = vpop.f32.mrf.mxu1 }
 0x135   : > { %v3338_v50 = vadd.f32 %v2438_v59, %v1407_v56 }
 0x136   : > { %v2352_v1 = vpop.f32.mrf.mxu0  ;;  %v2440_v30 = vpop.f32.mrf.mxu1 }
 0x137   : > { %v2353_v6 = vadd.f32 %v2352_v1, %v2351_v62  ;;  %v2441_v7 = vadd.f32 %v2440_v30, %v2439_v63 }
 0x138   : > { %v2354_v8 = vpop.f32.mrf.mxu0  ;;  %v2442_v12 = vpop.f32.mrf.mxu1 }
 0x139   : > { %v3342_v60 = vadd.f32 %v2441_v7, %v1412_v4 }
 0x13a   : > { %v2355_v13 = vpop.f32.mrf.mxu0  ;;  %v2443_v15 = vpop.f32.mrf.mxu1 }
 0x13b   : > { %v2356_v18 = vadd.f32 %v2355_v13, %v2354_v8  ;;  %v2444_v19 = vadd.f32 %v2443_v15, %v2442_v12 }
 0x13c   : > { %v2357_v21 = vpop.f32.mrf.mxu0  ;;  %v2445_v2 = vpop.f32.mrf.mxu1 }
 0x13d   : > { %v3346_v25 = vadd.f32 %v2444_v19, %v1415_v40  ;;  %v1436_v40 = vadd.f32 %v3332_v47, %v3283_v24  ;;  %v1444_v47 = vadd.f32 %v2353_v6, %v3283_v24 }
 0x13e   : > { %v2358_v27 = vpop.f32.mrf.mxu0  ;;  %v2446_v28 = vpop.f32.mrf.mxu1 }
 0x13f   : > { %v2359_v29 = vadd.f32 %v2358_v27, %v2357_v21  ;;  %v2447_v32 = vadd.f32 %v2446_v28, %v2445_v2 }
 0x140   : > { %v2360_v10 = vpop.f32.mrf.mxu0  ;;  %v2448_v33 = vpop.f32.mrf.mxu1 }
 0x141   : > { %v3350_v38 = vadd.f32 %v2447_v32, %v1420_v49  ;;  %v1439_v49 = vadd.f32 %v2350_v57, %v3283_v24  ;;  %v1447_v57 = vadd.f32 %v2356_v18, %v3283_v24  ;;  %v1452_v6 = vadd.f32 %v2359_v29, %v3283_v24 }
 0x142   : > { %v2361_v39 = vpop.f32.mrf.mxu0  ;;  %v2449_v41 = vpop.f32.mrf.mxu1 }
 0x143   : > { %v2362_v16 = vadd.f32 %v2361_v39, %v2360_v10  ;;  %v2450_v43 = vadd.f32 %v2449_v41, %v2448_v33 }
 0x144   : > { %v2363_v34 = vpop.f32.mrf.mxu0  ;;  %v2451_v48 = vpop.f32.mrf.mxu1 }
 0x145   : > { %v3354_v52 = vadd.f32 %v2450_v43, %v1423_v58  ;;  %v1455_v18 = vadd.f32 %v2362_v16, %v3283_v24 }
 0x146   : > { %v2364_v53 = vpop.f32.mrf.mxu0  ;;  %v2452_v22 = vpop.f32.mrf.mxu1 }
 0x147   : > { %v2365_v44 = vadd.f32 %v2364_v53, %v2363_v34  ;;  %v2453_v56 = vadd.f32 %v2452_v22, %v2451_v48 }
 0x148   : > { %v2366_v59 = vpop.f32.mrf.mxu0  ;;  %v2454_v62 = vpop.f32.mrf.mxu1 }
 0x149   : > { %v3358_v63 = vadd.f32 %v2453_v56, %v1428_v5  ;;  %v1460_v29 = vadd.f32 %v2365_v44, %v3283_v24  ;;  %v1468_v44 = vadd.f32 %v3246_v35, %v3283_v24 }
 0x14a   : > { %v2367_v1 = vpop.f32.mrf.mxu0  ;;  %v2455_v30 = vpop.f32.mrf.mxu1 }
 0x14b   : > { %v2368_v4 = vadd.f32 %v2367_v1, %v2366_v59  ;;  %v2456_v7 = vadd.f32 %v2455_v30, %v2454_v62 }
 0x14c   : > { %v2457_v8 = vpop.f32.mrf.mxu1  ;;  %v3362_v12 = vpop.f32.mrf.mxu0 }
 0x14d   : > { %v3364_v13 = vadd.f32 %v2456_v7, %v1431_v14  ;;  %v1463_v16 = vadd.f32 %v2368_v4, %v3283_v24 }
 0x14e   : > { %v2458_v15 = vpop.f32.mrf.mxu1  ;;  %v3366_v26 = vpop.f32.mrf.mxu0 }
 0x14f   : > { %v2459_v19 = vadd.f32 %v2458_v15, %v2457_v8 }
 0x150   : > { %v2460_v21 = vpop.f32.mrf.mxu1  ;;  %v3370_v2 = vpop.f32.mrf.mxu0 }
 0x151   : > { %v3372_v27 = vadd.f32 %v2459_v19, %v1436_v40 }
 0x152   : > { %v2461_v37 = vpop.f32.mrf.mxu1  ;;  %v3374_v28 = vpop.f32.mrf.mxu0 }
 0x153   : > { %v2462_v32 = vadd.f32 %v2461_v37, %v2460_v21 }
 0x154   : > { %v2463_v10 = vpop.f32.mrf.mxu1  ;;  %v3377_v33 = vpop.f32.mrf.mxu0 }
 0x155   : > { %v3379_v39 = vadd.f32 %v2462_v32, %v1439_v49 }
 0x156   : > { %v2464_v41 = vpop.f32.mrf.mxu1  ;;  %v3381_v58 = vpop.f32.mrf.mxu0 }
 0x157   : > { %3624 = vst [vmem:[#allocation2_spill] sm:$0xff] %v3379_v39  ;;  %v2465_v43 = vadd.f32 %v2464_v41, %v2463_v10 }
 0x158   : > { %v2466_v34 = vpop.f32.mrf.mxu1  ;;  %v3384_v48 = vpop.f32.mrf.mxu0 }
 0x159   : > { %v3386_v53 = vadd.f32 %v2465_v43, %v1444_v47 }
 0x15a   : > { %v2467_v22 = vpop.f32.mrf.mxu1  ;;  %v3388_v5 = vpop.f32.mrf.mxu0 }
 0x15b   : > { %v2468_v56 = vadd.f32 %v2467_v22, %v2466_v34 }
 0x15c   : > { %v2469_v59 = vpop.f32.mrf.mxu1  ;;  %v3391_v62 = vpop.f32.mrf.mxu0 }
 0x15d   : > { %v3393_v1 = vadd.f32 %v2468_v56, %v1447_v57 }
 0x15e   : > { %v2470_v30 = vpop.f32.mrf.mxu1  ;;  %v3395_v14 = vpop.f32.mrf.mxu0 }
 0x15f   : > { %3625 = vst [vmem:[#allocation3_spill] sm:$0xff] %v3393_v1  ;;  %v2471_v7 = vadd.f32 %v2470_v30, %v2469_v59 }
 0x160   : > { %v2472_v8 = vpop.f32.mrf.mxu1  ;;  %v3398_v15 = vpop.f32.mrf.mxu0 }
 0x161   : > { %v3400_v40 = vadd.f32 %v2471_v7, %v1452_v6 }
 0x162   : > { %v2473_v19 = vpop.f32.mrf.mxu1  ;;  %v3402_v21 = vpop.f32.mrf.mxu0 }
 0x163   : > { %3626 = vst [vmem:[#allocation4_spill] sm:$0xff] %v3400_v40  ;;  %v2474_v37 = vadd.f32 %v2473_v19, %v2472_v8 }
 0x164   : > { %v2475_v49 = vpop.f32.mrf.mxu1  ;;  %v3405_v32 = vpop.f32.mrf.mxu0 }
 0x165   : > { %v3407_v10 = vadd.f32 %v2474_v37, %v1455_v18 }
 0x166   : > { %v2476_v41 = vpop.f32.mrf.mxu1  ;;  %v3409_v47 = vpop.f32.mrf.mxu0 }
 0x167   : > { %3627 = vst [vmem:[#allocation5_spill] sm:$0xff] %v3407_v10  ;;  %v2477_v43 = vadd.f32 %v2476_v41, %v2475_v49 }
 0x168   : > { %v2478_v34 = vpop.f32.mrf.mxu1  ;;  %v3412_v22 = vpop.f32.mrf.mxu0 }
 0x169   : > { %v3414_v57 = vadd.f32 %v2477_v43, %v1460_v29 }
 0x16a   : > { %v2479_v56 = vpop.f32.mrf.mxu1  ;;  %v3416_v59 = vpop.f32.mrf.mxu0 }
 0x16b   : > { %3628 = vst [vmem:[#allocation6_spill] sm:$0xff] %v3414_v57  ;;  %v2480_v30 = vadd.f32 %v2479_v56, %v2478_v34  ;;  %v1471_v34 = vadd.f32 %v3254_v45, %v3283_v24 }
 0x16c   : > { %v2481_v6 = vpop.f32.mrf.mxu1  ;;  %v3419_v7 = vpop.f32.mrf.mxu0 }
 0x16d   : > { %v3421_v8 = vadd.f32 %v2480_v30, %v1463_v16 }
 0x16e   : > { %v2482_v19 = vpop.f32.mrf.mxu1  ;;  %v3423_v18 = vpop.f32.mrf.mxu0 }
 0x16f   : > { %3629 = vst [vmem:[#allocation7_spill] sm:$0xff] %v3421_v8  ;;  %v2483_v37 = vadd.f32 %v2482_v19, %v2481_v6  ;;  %v1476_v6 = vadd.f32 %v3258_v51, %v3283_v24 }
 0x170   : > { %v2484_v49 = vpop.f32.mrf.mxu1  ;;  %v3427_v41 = vpop.f32.mrf.mxu0 }
 0x171   : > { %v3429_v29 = vadd.f32 %v2483_v37, %v1468_v44 }
 0x172   : > { %v2485_v43 = vpop.f32.mrf.mxu1  ;;  %v3431_v4 = vpop.f32.mrf.mxu0 }
 0x173   : > { %3630 = vst [vmem:[#allocation8_spill] sm:$0xff] %v3429_v29  ;;  %v2486_v56 = vadd.f32 %v2485_v43, %v2484_v49  ;;  %v1479_v49 = vadd.f32 %v3266_v61, %v3283_v24 }
 0x174   : > { %v2487_v16 = vpop.f32.mrf.mxu1  ;;  %v3435_v30 = vpop.f32.mrf.mxu0 }
 0x175   : > { %v3437_v10 = vadd.f32 %v2486_v56, %v1471_v34 }
 0x176   : > { %v2488_v8 = vpop.f32.mrf.mxu1  ;;  %v3439_v35 = vpop.f32.mrf.mxu0 }
 0x177   : > { %3631 = vst [vmem:[#allocation9_spill] sm:$0xff] %v3437_v10  ;;  %v2489_v19 = vadd.f32 %v2488_v8, %v2487_v16  ;;  %v1484_v8 = vadd.f32 %v3268_v3, %v3283_v24 }
 0x178   : > { %v2490_v44 = vpop.f32.mrf.mxu1  ;;  %v3443_v37 = vpop.f32.mrf.mxu0 }
 0x179   : > { %v3445_v29 = vadd.f32 %v2489_v19, %v1476_v6 }
 0x17a   : > { %v2491_v40 = vpop.f32.mrf.mxu1  ;;  %v3447_v45 = vpop.f32.mrf.mxu0 }
 0x17b   : > { %3632 = vst [vmem:[#allocation10_spill] sm:$0xff] %v3445_v29  ;;  %v2492_v43 = vadd.f32 %v2491_v40, %v2490_v44  ;;  %v1487_v40 = vadd.f32 %v3272_v11, %v3283_v24  ;;  %v2523_v11 = vadd.f32 %v3366_v26, %v3362_v12  ;;  %v2526_v12 = vadd.f32 %v3374_v28, %v3370_v2 }
 0x17c   : > { %v2493_v34 = vpop.f32.mrf.mxu1  ;;  %v3451_v56 = vpop.f32.mrf.mxu0 }
 0x17d   : > { %v3453_v10 = vadd.f32 %v2492_v43, %v1479_v49 }
 0x17e   : > { %v2494_v57 = vpop.f32.mrf.mxu1  ;;  %v3455_v51 = vpop.f32.mrf.mxu0 }
 0x17f   : > { %3633 = vst [vmem:[#allocation11_spill] sm:$0xff] %v3453_v10  ;;  %v2495_v16 = vadd.f32 %v2494_v57, %v2493_v34  ;;  %v1492_v34 = vadd.f32 %v3274_v17, %v3283_v24  ;;  %v2532_v17 = vadd.f32 %v3388_v5, %v3384_v48 }
 0x180   : > { %v2496_v6 = vpop.f32.mrf.mxu1  ;;  %v3459_v19 = vpop.f32.mrf.mxu0 }
 0x181   : > { %v3461_v29 = vadd.f32 %v2495_v16, %v1484_v8  ;;  %v2529_v8 = vadd.f32 %v3381_v58, %v3377_v33  ;;  %v1705_v28 = vadd.f32 %v2532_v17, %v3307_v0 }
 0x182   : > { %v2497_v39 = vpop.f32.mrf.mxu1  ;;  %v3463_v61 = vpop.f32.mrf.mxu0 }
 0x183   : > { %3634 = vst [vmem:[#allocation12_spill] sm:$0xff] %v3461_v29  ;;  %v2498_v44 = vadd.f32 %v2497_v39, %v2496_v6  ;;  %v1702_v33 = vadd.f32 %v2529_v8, %v3301_v55  ;;  %v2541_v55 = vadd.f32 %v3409_v47, %v3405_v32  ;;  %v2544_v32 = vadd.f32 %v3416_v59, %v3412_v22 }
 0x184   : > { %v2499_v49 = vpop.f32.mrf.mxu1  ;;  %v3467_v43 = vpop.f32.mrf.mxu0  ;;  %v2553_v22 = vadd.f32 %v3439_v35, %v3435_v30  ;;  %v2556_v30 = vadd.f32 %v3447_v45, %v3443_v37 }
 0x185   : > { %v3469_v10 = vadd.f32 %v2498_v44, %v1487_v40  ;;  %v1495_v44 = vadd.f32 %v3278_v23, %v3283_v24 }
 0x186   : > { %v2500_v3 = vpop.f32.mrf.mxu1  ;;  %v3471_v57 = vpop.f32.mrf.mxu0 }
 0x187   : > { %3635 = vst [vmem:[#allocation13_spill] sm:$0xff] %v3469_v10  ;;  %v2501_v16 = vadd.f32 %v2500_v3, %v2499_v49  ;;  %v2565_v45 = vadd.f32 %v3471_v57, %v3467_v43 }
 0x188   : > { %v2502_v29 = vpop.f32.mrf.mxu1  ;;  %v3477_v1 = vpop.f32.mrf.mxu0 }
 0x189   : > { %v3481_v39 = vadd.f32 %v2501_v16, %v1492_v34  ;;  %v1694_v34 = vadd.f32 %v2523_v11, %v3289_v36  ;;  %v1697_v16 = vadd.f32 %v2526_v12, %v3295_v46 }
 0x18a   : > { %v2503_v6 = vpop.f32.mrf.mxu1  ;;  %v3483_v40 = vpop.f32.mrf.mxu0 }
 0x18b   : > { %v2504_v10 = vadd.f32 %v2503_v6, %v2502_v29  ;;  %v2568_v57 = vadd.f32 %v3483_v40, %v3477_v1 }
 0x18c   : > { %v3491_v58 = vpop.f32.mrf.mxu0  ;;  %v2659_v49 = vpop.f32.mrf.mxu1 }
 0x18d   : > { %v3495_v26 = vadd.f32 %v2504_v10, %v1495_v44  ;;  %v1863_v3 = vadd.f32 %v2659_v49, %v1702_v33  ;;  %v2535_v10 = vadd.f32 %v3395_v14, %v3391_v62  ;;  %v1718_v44 = vadd.f32 %v2541_v55, %v3322_v31 }
 0x18e   : > { %v3503_v23 = vpop.f32.mrf.mxu0  ;;  %v1854_v24 = vpop.f32.mrf.mxu1  ;;  %v2538_v14 = vadd.f32 %v3402_v21, %v3398_v15  ;;  %v2547_v15 = vadd.f32 %v3423_v18, %v3419_v7  ;;  %v2550_v7 = vadd.f32 %v3431_v4, %v3427_v41  ;;  %v2559_v4 = vadd.f32 %v3455_v51, %v3451_v56 }
 0x18f   : > { %v1983_v48 = vmax.f32 %v1863_v3, 0.0  ;;  %v1855_v2 = vadd.f32 %v1854_v24, %v1694_v34  ;;  %v1710_v49 = vadd.f32 %v2535_v10, %v3312_v9  ;;  %v1721_v34 = vadd.f32 %v2544_v32, %v3328_v42 }
 0x190   : > { %v3508_v5 = vpop.f32.mrf.mxu0  ;;  %v2660_v36 = vpop.f32.mrf.mxu1  ;;  %v1737_v32 = vadd.f32 %v2556_v30, %v3346_v25  ;;  %v2562_v56 = vadd.f32 %v3463_v61, %v3459_v19  ;;  %v2571_v19 = vadd.f32 %v3503_v23, %v3491_v58 }
 0x191   : > { %2015 = vst [vmem:[%s3501_s13 + $0x10] sm:$0xff] %v1983_v48  ;;  %v1981_v29 = vmax.f32 %v1855_v2, 0.0  ;;  %v1866_v8 = vadd.f32 %v2660_v36, %v1705_v28  ;;  %v1713_v48 = vadd.f32 %v2538_v14, %v3317_v20  ;;  %v1734_v36 = vadd.f32 %v2553_v22, %v3342_v60 }
 0x192   : > { %v3514_v11 = vpop.f32.mrf.mxu0  ;;  %v1857_v6 = vpop.f32.mrf.mxu1 }
 0x193   : > { %2013 = vst [vmem:[%s3501_s13] sm:$0xff] %v1981_v29  ;;  %v1984_v0 = vmax.f32 %v1866_v8, 0.0  ;;  %v1858_v47 = vadd.f32 %v1857_v6, %v1697_v16  ;;  %v1726_v8 = vadd.f32 %v2547_v15, %v3334_v54  ;;  %v2574_v58 = vadd.f32 %v3514_v11, %v3508_v5 }
 0x194   : > { %v3520_v17 = vpop.f32.mrf.mxu0  ;;  %v2663_v62 = vpop.f32.mrf.mxu1 }
 0x195   : > { %2016 = vst [vmem:[%s3501_s13 + $0x18] sm:$0xff] %v1984_v0  ;;  %v1982_v46 = vmax.f32 %v1858_v47, 0.0  ;;  %v1879_v33 = vadd.f32 %v2663_v62, %v1718_v44  ;;  %v1729_v44 = vadd.f32 %v2550_v7, %v3338_v50  ;;  %v3636_v7 = vld [vmem:[#allocation3_spill] sm:$0xff] }
 0x196   : > { %v2576_v12 = vpop.f32.mrf.mxu0  ;;  %v1870_v3 = vpop.f32.mrf.mxu1 }
 0x197   : > { %2014 = vst [vmem:[%s3501_s13 + $0x8] sm:$0xff] %v1982_v46  ;;  %v1987_v31 = vmax.f32 %v1879_v33, 0.0  ;;  %v1871_v59 = vadd.f32 %v1870_v3, %v1710_v49  ;;  %v1750_v46 = vadd.f32 %v2565_v45, %v3358_v63  ;;  %v1742_v3 = vadd.f32 %v2559_v4, %v3350_v38  ;;  %v3638_v4 = vld [vmem:[#allocation6_spill] sm:$0xff] }
 0x198   : > { %v3530_v24 = vpop.f32.mrf.mxu0  ;;  %v2664_v55 = vpop.f32.mrf.mxu1  ;;  %v2577_v1 = vadd.f32 %v2576_v12, %v3520_v17  ;;  %v1753_v63 = vadd.f32 %v2568_v57, %v3364_v13  ;;  %v1745_v38 = vadd.f32 %v2562_v56, %v3354_v52  ;;  %v1758_v52 = vadd.f32 %v2571_v19, %v3372_v27  ;;  %v3639_v57 = vld [vmem:[#allocation4_spill] sm:$0xff] }
 0x199   : > { %2019 = vst [vmem:[%s3501_s13 + $0x30] sm:$0xff] %v1987_v31  ;;  %v1985_v9 = vmax.f32 %v1871_v59, 0.0  ;;  %v1882_v21 = vadd.f32 %v2664_v55, %v1721_v34 }
 0x19a   : > { %v2579_v2 = vpop.f32.mrf.mxu0  ;;  %v1873_v28 = vpop.f32.mrf.mxu1  ;;  %v1766_v13 = vadd.f32 %v2577_v1, %v3386_v53  ;;  %v3641_v1 = vld [vmem:[#allocation5_spill] sm:$0xff] }
 0x19b   : > { %2017 = vst [vmem:[%s3501_s13 + $0x20] sm:$0xff] %v1985_v9  ;;  %v1988_v42 = vmax.f32 %v1882_v21, 0.0  ;;  %v1874_v35 = vadd.f32 %v1873_v28, %v1713_v48  ;;  %v2580_v17 = vadd.f32 %v2579_v2, %v3530_v24 }
 0x19c   : > { %v3540_v10 = vpop.f32.mrf.mxu0  ;;  %v2667_v29 = vpop.f32.mrf.mxu1 }
 0x19d   : > { %2020 = vst [vmem:[%s3501_s13 + $0x38] sm:$0xff] %v1988_v42  ;;  %v1986_v20 = vmax.f32 %v1874_v35, 0.0  ;;  %v1895_v18 = vadd.f32 %v2667_v29, %v1734_v36  ;;  %v1769_v53 = vadd.f32 %v2580_v17, %v3636_v7  ;;  %v3645_v7 = vld [vmem:[#allocation9_spill] sm:$0xff] }
 0x19e   : > { %v3546_v16 = vpop.f32.mrf.mxu0  ;;  %v1886_v37 = vpop.f32.mrf.mxu1 }
 0x19f   : > { %2018 = vst [vmem:[%s3501_s13 + $0x28] sm:$0xff] %v1986_v20  ;;  %v1991_v60 = vmax.f32 %v1895_v18, 0.0  ;;  %v1887_v6 = vadd.f32 %v1886_v37, %v1726_v8  ;;  %v2583_v5 = vadd.f32 %v3546_v16, %v3540_v10  ;;  %v3637_v37 = vld [vmem:[#allocation2_spill] sm:$0xff] }
 0x1a0   : > { %v3552_v0 = vpop.f32.mrf.mxu0  ;;  %v2668_v41 = vpop.f32.mrf.mxu1  ;;  %v1761_v27 = vadd.f32 %v2574_v58, %v3637_v37 }
 0x1a1   : > { %2023 = vst [vmem:[%s3501_s13 + $0x50] sm:$0xff] %v1991_v60  ;;  %v1989_v54 = vmax.f32 %v1887_v6, 0.0  ;;  %v1898_v47 = vadd.f32 %v2668_v41, %v1737_v32 }
 0x1a2   : > { %v3558_v62 = vpop.f32.mrf.mxu0  ;;  %v1889_v43 = vpop.f32.mrf.mxu1 }
 0x1a3   : > { %2021 = vst [vmem:[%s3501_s13 + $0x40] sm:$0xff] %v1989_v54  ;;  %v1992_v25 = vmax.f32 %v1898_v47, 0.0  ;;  %v1890_v14 = vadd.f32 %v1889_v43, %v1729_v44  ;;  %v2586_v10 = vadd.f32 %v3558_v62, %v3552_v0 }
 0x1a4   : > { %v2587_v33 = vpop.f32.mrf.mxu0  ;;  %v2671_v49 = vpop.f32.mrf.mxu1 }
 0x1a5   : > { %2024 = vst [vmem:[%s3501_s13 + $0x58] sm:$0xff] %v1992_v25  ;;  %v1990_v50 = vmax.f32 %v1890_v14, 0.0  ;;  %v1911_v51 = vadd.f32 %v2671_v49, %v1750_v46  ;;  %v1774_v25 = vadd.f32 %v2583_v5, %v3639_v57 }
 0x1a6   : > { %v2588_v22 = vpop.f32.mrf.mxu0  ;;  %v1902_v31 = vpop.f32.mrf.mxu1 }
 0x1a7   : > { %2022 = vst [vmem:[%s3501_s13 + $0x48] sm:$0xff] %v1990_v50  ;;  %v1995_v40 = vmax.f32 %v1911_v51, 0.0  ;;  %v1903_v59 = vadd.f32 %v1902_v31, %v1742_v3  ;;  %v2589_v24 = vadd.f32 %v2588_v22, %v2587_v33  ;;  %v3640_v50 = vld [vmem:[#allocation7_spill] sm:$0xff] }
 0x1a8   : > { %v2590_v34 = vpop.f32.mrf.mxu0  ;;  %v2672_v55 = vpop.f32.mrf.mxu1 }
 0x1a9   : > { %2027 = vst [vmem:[%s3501_s13 + $0x70] sm:$0xff] %v1995_v40  ;;  %v1993_v61 = vmax.f32 %v1903_v59, 0.0  ;;  %v1914_v15 = vadd.f32 %v2672_v55, %v1753_v63  ;;  %v1782_v54 = vadd.f32 %v2589_v24, %v3638_v4  ;;  %v1777_v40 = vadd.f32 %v2586_v10, %v3641_v1 }
 0x1aa   : > { %v2591_v9 = vpop.f32.mrf.mxu0  ;;  %v1905_v21 = vpop.f32.mrf.mxu1 }
 0x1ab   : > { %2025 = vst [vmem:[%s3501_s13 + $0x60] sm:$0xff] %v1993_v61  ;;  %v1996_v12 = vmax.f32 %v1914_v15, 0.0  ;;  %v1906_v48 = vadd.f32 %v1905_v21, %v1745_v38  ;;  %v2592_v6 = vadd.f32 %v2591_v9, %v2590_v34  ;;  %v3642_v61 = vld [vmem:[#allocation10_spill] sm:$0xff] }
 0x1ac   : > { %v2593_v28 = vpop.f32.mrf.mxu0  ;;  %v2675_v30 = vpop.f32.mrf.mxu1 }
 0x1ad   : > { %2028 = vst [vmem:[%s3501_s13 + $0x78] sm:$0xff] %v1996_v12  ;;  %v1994_v23 = vmax.f32 %v1906_v48, 0.0  ;;  %v1927_v42 = vadd.f32 %v2675_v30, %v1766_v13  ;;  %v1785_v51 = vadd.f32 %v2592_v6, %v3640_v50  ;;  %v3643_v48 = vld [vmem:[#allocation8_spill] sm:$0xff] }
 0x1ae   : > { %v2594_v35 = vpop.f32.mrf.mxu0  ;;  %v1918_v36 = vpop.f32.mrf.mxu1 }
 0x1af   : > { %2026 = vst [vmem:[%s3501_s13 + $0x68] sm:$0xff] %v1994_v23  ;;  %v1999_v2 = vmax.f32 %v1927_v42, 0.0  ;;  %v1919_v29 = vadd.f32 %v1918_v36, %v1758_v52  ;;  %v2595_v31 = vadd.f32 %v2594_v35, %v2593_v28  ;;  %v3644_v42 = vld [vmem:[#allocation11_spill] sm:$0xff] }
 0x1b0   : > { %v2596_v20 = vpop.f32.mrf.mxu0  ;;  %v2676_v18 = vpop.f32.mrf.mxu1 }
 0x1b1   : > { %2031 = vst [vmem:[%s3501_s13 + $0x90] sm:$0xff] %v1999_v2  ;;  %v1997_v11 = vmax.f32 %v1919_v29, 0.0  ;;  %v1930_v8 = vadd.f32 %v2676_v18, %v1769_v53  ;;  %v1790_v13 = vadd.f32 %v2595_v31, %v3643_v48 }
 0x1b2   : > { %v2597_v45 = vpop.f32.mrf.mxu0  ;;  %v1921_v60 = vpop.f32.mrf.mxu1 }
 0x1b3   : > { %2029 = vst [vmem:[%s3501_s13 + $0x80] sm:$0xff] %v1997_v11  ;;  %v2000_v32 = vmax.f32 %v1930_v8, 0.0  ;;  %v1922_v41 = vadd.f32 %v1921_v60, %v1761_v27  ;;  %v2598_v21 = vadd.f32 %v2597_v45, %v2596_v20  ;;  %v3646_v60 = vld [vmem:[#allocation12_spill] sm:$0xff] }
 0x1b4   : > { %v2599_v47 = vpop.f32.mrf.mxu0  ;;  %v2679_v44 = vpop.f32.mrf.mxu1 }
 0x1b5   : > { %2032 = vst [vmem:[%s3501_s13 + $0x98] sm:$0xff] %v2000_v32  ;;  %v1998_v16 = vmax.f32 %v1922_v41, 0.0  ;;  %v1943_v43 = vadd.f32 %v2679_v44, %v1782_v54  ;;  %v1793_v53 = vadd.f32 %v2598_v21, %v3645_v7 }
 0x1b6   : > { %v2600_v14 = vpop.f32.mrf.mxu0  ;;  %v1934_v46 = vpop.f32.mrf.mxu1 }
 0x1b7   : > { %2030 = vst [vmem:[%s3501_s13 + $0x88] sm:$0xff] %v1998_v16  ;;  %v2003_v33 = vmax.f32 %v1943_v43, 0.0  ;;  %v2601_v49 = vadd.f32 %v2600_v14, %v2599_v47  ;;  %v1935_v56 = vadd.f32 %v1934_v46, %v1774_v25  ;;  %v3647_v43 = vld [vmem:[#allocation13_spill] sm:$0xff] }
 0x1b8   : > { %v2602_v3 = vpop.f32.mrf.mxu0  ;;  %v2680_v22 = vpop.f32.mrf.mxu1 }
 0x1b9   : > { %2035 = vst [vmem:[%s3501_s13 + $0xb0] sm:$0xff] %v2003_v33  ;;  %v2001_v0 = vmax.f32 %v1935_v56, 0.0  ;;  %v1946_v62 = vadd.f32 %v2680_v22, %v1785_v51  ;;  %v1798_v15 = vadd.f32 %v2601_v49, %v3642_v61 }
 0x1ba   : > { %v2603_v59 = vpop.f32.mrf.mxu0  ;;  %v1937_v63 = vpop.f32.mrf.mxu1 }
 0x1bb   : > { %2033 = vst [vmem:[%s3501_s13 + $0xa0] sm:$0xff] %v2001_v0  ;;  %v2004_v34 = vmax.f32 %v1946_v62, 0.0  ;;  %v2604_v55 = vadd.f32 %v2603_v59, %v2602_v3  ;;  %v1938_v19 = vadd.f32 %v1937_v63, %v1777_v40 }
 0x1bc   : > { %v2605_v38 = vpop.f32.mrf.mxu0  ;;  %v2683_v9 = vpop.f32.mrf.mxu1 }
 0x1bd   : > { %2036 = vst [vmem:[%s3501_s13 + $0xb8] sm:$0xff] %v2004_v34  ;;  %v2002_v17 = vmax.f32 %v1938_v19, 0.0  ;;  %v1959_v12 = vadd.f32 %v2683_v9, %v1798_v15  ;;  %v1801_v52 = vadd.f32 %v2604_v55, %v3644_v42 }
 0x1be   : > { %v2606_v28 = vpop.f32.mrf.mxu0  ;;  %v1950_v30 = vpop.f32.mrf.mxu1 }
 0x1bf   : > { %2034 = vst [vmem:[%s3501_s13 + $0xa8] sm:$0xff] %v2002_v17  ;;  %v2007_v58 = vmax.f32 %v1959_v12, 0.0  ;;  %v1951_v23 = vadd.f32 %v1950_v30, %v1790_v13  ;;  %v2607_v24 = vadd.f32 %v2606_v28, %v2605_v38 }
 0x1c0   : > { %v2608_v35 = vpop.f32.mrf.mxu0  ;;  %v2684_v36 = vpop.f32.mrf.mxu1 }
 0x1c1   : > { %2039 = vst [vmem:[%s3501_s13 + $0xd0] sm:$0xff] %v2007_v58  ;;  %v2005_v2 = vmax.f32 %v1951_v23, 0.0  ;;  %v1962_v29 = vadd.f32 %v2684_v36, %v1801_v52  ;;  %v1806_v6 = vadd.f32 %v2607_v24, %v3646_v60 }
 0x1c2   : > { %v2609_v20 = vpop.f32.mrf.mxu0  ;;  %v1953_v18 = vpop.f32.mrf.mxu1 }
 0x1c3   : > { %2037 = vst [vmem:[%s3501_s13 + $0xc0] sm:$0xff] %v2005_v2  ;;  %v2008_v5 = vmax.f32 %v1962_v29, 0.0  ;;  %v1954_v11 = vadd.f32 %v1953_v18, %v1793_v53  ;;  %v2610_v27 = vadd.f32 %v2609_v20, %v2608_v35 }
 0x1c4   : > { %v2611_v8 = vpop.f32.mrf.mxu0  ;;  %v2687_v37 = vpop.f32.mrf.mxu1 }
 0x1c5   : > { %2040 = vst [vmem:[%s3501_s13 + $0xd8] sm:$0xff] %v2008_v5  ;;  %v2006_v45 = vmax.f32 %v1954_v11, 0.0  ;;  %v1809_v57 = vadd.f32 %v2610_v27, %v3647_v43 }
 0x1c6   : > { %v2612_v32 = vpop.f32.mrf.mxu0  ;;  %v1966_v41 = vpop.f32.mrf.mxu1 }
 0x1c7   : > { %2038 = vst [vmem:[%s3501_s13 + $0xc8] sm:$0xff] %v2006_v45  ;;  %v2613_v4 = vadd.f32 %v2612_v32, %v2611_v8  ;;  %v1967_v54 = vadd.f32 %v1966_v41, %v1806_v6 }
 0x1c8   : > { %v2614_v47 = vpop.f32.mrf.mxu0  ;;  %v2688_v44 = vpop.f32.mrf.mxu1 }
 0x1c9   : > { %v1814_v10 = vadd.f32 %v2613_v4, %v3481_v39  ;;  %v2009_v16 = vmax.f32 %v1967_v54, 0.0 }
 0x1ca   : > { %v2615_v25 = vpop.f32.mrf.mxu0  ;;  %v1969_v14 = vpop.f32.mrf.mxu1 }
 0x1cb   : > { %v1975_v46 = vadd.f32 %v2687_v37, %v1814_v10  ;;  %2041 = vst [vmem:[%s3501_s13 + $0xe0] sm:$0xff] %v2009_v16  ;;  %v2616_v33 = vadd.f32 %v2615_v25, %v2614_v47  ;;  %v1970_v49 = vadd.f32 %v1969_v14, %v1809_v57 }
 0x1cd   : > { %v2011_v56 = vmax.f32 %v1975_v46, 0.0  ;;  %v1817_v50 = vadd.f32 %v2616_v33, %v3495_v26  ;;  %v2010_v51 = vmax.f32 %v1970_v49, 0.0 }
 0x1cf   : > { %2043 = vst [vmem:[%s3501_s13 + $0xf0] sm:$0xff] %v2011_v56  ;;  %v1978_v3 = vadd.f32 %v2688_v44, %v1817_v50  ;;  %2042 = vst [vmem:[%s3501_s13 + $0xe8] sm:$0xff] %v2010_v51 }
 0x1d1   : > { %v2012_v22 = vmax.f32 %v1978_v3, 0.0 }
 0x1d3   : > { %2044 = vst [vmem:[%s3501_s13 + $0xf8] sm:$0xff] %v2012_v22 }
 0x1d4 PF: > { %s13_s12 = sadd.s32 1, %s2936_s12  }
 0x1d5   : > { %p10_p4 = scmp.ge.s32.totalorder %s13_s12, 4  }
 0x1d7   :  { %12 = sbr.rel (!%p10_p4) target bundleno = 1 (0x1), region = 62 }

</bundles_post_ra>
